<compile_context>
chip_gen: v7x
topology: tpu7x:2x2x1
jax: 0.10.0
libtpu: 0.0.40
codegen_flags: <defaults>
</compile_context>

<pallas_src>
import math
import functools

import jax
import jax.numpy as jnp
from jax import lax
from jax.experimental import pallas as pl
from jax.experimental.pallas import tpu as pltpu

# ---------------- configuration (small, consistent with the module) ----------------
VOCAB = 64        # cfg.vocab_size
VOCAB_PAD = 128   # lane-dense padded logits width (multiple of 128)
N_EMBD = 32       # cfg.n_embd
N_HEAD = 4        # cfg.n_head
BLOCK_SIZE = 16   # cfg.block_size
N_LAYER = 2       # cfg.n_layer
RANK = 16         # lora rank
LN_EPS = 1e-5     # PyTorch nn.LayerNorm default eps


# ---------------- in-kernel helpers (2-D activations) ----------------
def _layernorm2d(x, g, b):
    # x: [R, C] f32; g, b: [1, C] f32
    mu = jnp.mean(x, axis=-1, keepdims=True)
    xc = x - mu
    var = jnp.mean(xc * xc, axis=-1, keepdims=True)
    return xc * lax.rsqrt(var + LN_EPS) * g + b


def _linear2d(x_b, w_b, b=None):
    # x_b: [R, Cin] bf16, w_b: [Cout, Cin] bf16 (PyTorch layout), b: [1, Cout] f32 or None
    y = lax.dot_general(x_b, w_b,
                        dimension_numbers=(((1,), (1,)), ((), ())),
                        preferred_element_type=jnp.float32)
    if b is not None:
        y = y + b
    return y


def _gelu_tanh(x):
    c = math.sqrt(2.0 / math.pi)
    return 0.5 * x * (1.0 + jnp.tanh(c * (x + 0.044715 * x * x * x)))


# ---------------- fused decoder kernel ----------------
def decoder_kernel(x_ref,
                   ln1g_ref, ln1b_ref,
                   wq_ref, bq_ref, wk_ref, bk_ref, wv_ref, bv_ref,
                   wo_ref, bo_ref,
                   ln2g_ref, ln2b_ref, wfc_ref, bfc_ref, wmp_ref, bmp_ref,
                   lnfg_ref, lnfb_ref, wlm_ref,
                   out_ref, *, batch, n_head, n_layer):
    """Whole decoder: N_LAYER transformer blocks + ln_f + (padded) lm_head."""
    x = x_ref[...]                                   # [R, C] f32, R = B*T
    R, C = x.shape
    B = batch
    T = R // B
    H = n_head
    dh = C // H

    # additive causal mask, hoisted once for all layers / heads
    row = lax.broadcasted_iota(jnp.int32, (T, T), 0)
    col = lax.broadcasted_iota(jnp.int32, (T, T), 1)
    mask_add = jnp.where(col <= row, 0.0, -1e30).astype(jnp.float32)[None, :, :]  # [1,T,T]

    for li in range(n_layer):                        # static unroll (n_layer = 2)
        # ---------------- attention ----------------
        h1 = _layernorm2d(x, ln1g_ref[li], ln1b_ref[li])
        hb = h1.astype(jnp.bfloat16)

        # per-head q/k/v via direct small MXU dots (weights pre-split per head;
        # 1/sqrt(dh) is already folded into wq/bq).  No lane slicing.
        q_parts, k_parts, v_parts = [], [], []
        for hi in range(H):
            q_i = _linear2d(hb, wq_ref[li, hi], bq_ref[li, hi])   # [R, dh] f32
            k_i = _linear2d(hb, wk_ref[li, hi], bk_ref[li, hi])
            v_i = _linear2d(hb, wv_ref[li, hi], bv_ref[li, hi])
            q_parts.append(q_i.reshape(B, T, dh))
            k_parts.append(k_i.reshape(B, T, dh))
            v_parts.append(v_i.reshape(B, T, dh))

        # batch heads into a single leading dim: [H*B, T, dh] (leading-axis concat)
        qh = jnp.concatenate(q_parts, axis=0).astype(jnp.bfloat16)
        kh = jnp.concatenate(k_parts, axis=0).astype(jnp.bfloat16)
        vh = jnp.concatenate(v_parts, axis=0).astype(jnp.bfloat16)

        att = jnp.einsum('ztd,zsd->zts', qh, kh,
                         preferred_element_type=jnp.float32)      # [H*B, T, T] f32
        att = att + mask_add                                      # additive causal mask
        att = att - jnp.max(att, axis=-1, keepdims=True)
        p = jnp.exp(att)
        # approx reciprocal runs on the EUP slot; rows sum to 1 within ~1e-3
        p = p * pl.reciprocal(jnp.sum(p, axis=-1, keepdims=True), approx=True)
        yh = jnp.einsum('zts,zsd->ztd', p.astype(jnp.bfloat16), vh,
                        preferred_element_type=jnp.float32)       # [H*B, T, dh] f32

        # output projection accumulated per head (avoids lane re-assembly concat)
        attn_out = None
        for hi in range(H):
            y_i = yh[hi * B:(hi + 1) * B].reshape(R, dh).astype(jnp.bfloat16)
            contrib = lax.dot_general(y_i, wo_ref[li, hi],        # wo: [C, dh]
                                      dimension_numbers=(((1,), (1,)), ((), ())),
                                      preferred_element_type=jnp.float32)
            attn_out = contrib if attn_out is None else attn_out + contrib
        x = x + attn_out + bo_ref[li]

        # ---------------- MLP ----------------
        h2 = _layernorm2d(x, ln2g_ref[li], ln2b_ref[li]).astype(jnp.bfloat16)
        fc = _gelu_tanh(_linear2d(h2, wfc_ref[li], bfc_ref[li]))          # [R, 4C] f32
        x = x + _linear2d(fc.astype(jnp.bfloat16), wmp_ref[li], bmp_ref[li])

    # ---------------- ln_f + lm_head (lane-dense padded store) ----------------
    xf = _layernorm2d(x, lnfg_ref[...], lnfb_ref[...]).astype(jnp.bfloat16)
    out_ref[...] = lax.dot_general(xf, wlm_ref[...],
                                   dimension_numbers=(((1,), (1,)), ((), ())),
                                   preferred_element_type=jnp.float32)   # [R, VOCAB_PAD]


# ---------------- pallas_call wrapper ----------------
def _vmem():
    return pl.BlockSpec(memory_space=pltpu.MemorySpace.VMEM)


def decoder_pallas(x_emb, params):
    """x_emb: [B, T, C] post-embedding activations -> logits [B, T, VOCAB]."""
    B, T, C = x_emb.shape
    x2 = x_emb.reshape(B * T, C)
    blk = params['blocks']
    args = (x2,
            blk['ln1_g'], blk['ln1_b'],
            blk['wq_h'], blk['bq_h'], blk['wk_h'], blk['bk_h'], blk['wv_h'], blk['bv_h'],
            blk['wo_h'], blk['b_aproj'],
            blk['ln2_g'], blk['ln2_b'], blk['w_fc'], blk['b_fc'],
            blk['w_mproj'], blk['b_mproj'],
            params['lnf_g'], params['lnf_b'], params['wlm_pad'])
    kernel = functools.partial(decoder_kernel, batch=B,
                               n_head=N_HEAD, n_layer=N_LAYER)
    out = pl.pallas_call(
        kernel,
        out_shape=jax.ShapeDtypeStruct((B * T, VOCAB_PAD), jnp.float32),
        in_specs=[_vmem() for _ in args],
        out_specs=_vmem(),
    )(*args)
    # strip lane padding, restore [B, T, VOCAB]
    return out[:, :VOCAB].reshape(B, T, VOCAB)


# ---------------- parameter initialization (deterministic, synthetic) ----------------
def _lora_linear(key, out_f, in_f, r, lora_alpha, bias=True, scale=0.02):
    kw, ka, kb, kbias = jax.random.split(key, 4)
    w = scale * jax.random.normal(kw, (out_f, in_f), jnp.float32)
    a = scale * jax.random.normal(ka, (r, in_f), jnp.float32)
    bm = scale * jax.random.normal(kb, (out_f, r), jnp.float32)
    w_eff = w + (lora_alpha / r) * (bm @ a)          # merged LoRA delta
    b = scale * jax.random.normal(kbias, (1, out_f), jnp.float32) if bias else None
    return w, w_eff, b


def init_params(key):
    C, V, H = N_EMBD, VOCAB, N_HEAD
    dh = C // H
    qscale = 1.0 / math.sqrt(dh)
    keys = jax.random.split(key, 2 + N_LAYER)

    # lm_head (LoRA, bias=False, default lora_alpha=1) -- base weight tied to wte
    w_lm_base, w_lm_eff, _ = _lora_linear(keys[0], V, C, RANK, lora_alpha=1.0, bias=False)
    wpe = 0.02 * jax.random.normal(keys[1], (BLOCK_SIZE, C), jnp.float32)

    per_layer = []
    for li in range(N_LAYER):
        lk = jax.random.split(keys[2 + li], 4)
        _, w_attn, b_attn = _lora_linear(lk[0], 3 * C, C, RANK, lora_alpha=0.5 * RANK)
        _, w_aproj, b_aproj = _lora_linear(lk[1], C, C, RANK, lora_alpha=0.5 * RANK)
        _, w_fc, b_fc = _lora_linear(lk[2], 4 * C, C, RANK, lora_alpha=0.5 * RANK)
        _, w_mproj, b_mproj = _lora_linear(lk[3], C, 4 * C, RANK, lora_alpha=0.5 * RANK)

        b_attn = b_attn[0]                                   # [3C]
        wq, wk, wv = w_attn[:C], w_attn[C:2 * C], w_attn[2 * C:]
        bq, bk, bv = b_attn[:C], b_attn[C:2 * C], b_attn[2 * C:]
        # fold 1/sqrt(dh) into the q weight & bias (zero runtime cost)
        wq = wq * qscale
        bq = bq * qscale

        per_layer.append(dict(
            ln1_g=jnp.ones((1, C), jnp.float32), ln1_b=jnp.zeros((1, C), jnp.float32),
            # per-head split of c_attn / c_proj (head h uses channels h*dh:(h+1)*dh)
            wq_h=wq.reshape(H, dh, C), bq_h=bq.reshape(H, 1, dh),
            wk_h=wk.reshape(H, dh, C), bk_h=bk.reshape(H, 1, dh),
            wv_h=wv.reshape(H, dh, C), bv_h=bv.reshape(H, 1, dh),
            wo_h=w_aproj.reshape(C, H, dh).transpose(1, 0, 2),  # [H, C, dh]
            b_aproj=b_aproj,
            ln2_g=jnp.ones((1, C), jnp.float32), ln2_b=jnp.zeros((1, C), jnp.float32),
            w_fc=w_fc, b_fc=b_fc,
            w_mproj=w_mproj, b_mproj=b_mproj))

    # stack per-layer params with a leading layer axis (single fused kernel input)
    blocks = {k: jnp.stack([layer[k] for layer in per_layer], axis=0)
              for k in per_layer[0]}
    # MXU-operand weights to bf16 (accumulation stays f32 in-kernel); biases / LN stay f32
    for k in ('wq_h', 'wk_h', 'wv_h', 'wo_h', 'w_fc', 'w_mproj'):
        blocks[k] = blocks[k].astype(jnp.bfloat16)

    # zero-pad lm_head weight rows 64 -> 128 for a lane-dense final store
    wlm_pad = jnp.zeros((VOCAB_PAD, C), jnp.float32).at[:V].set(w_lm_eff).astype(jnp.bfloat16)

    return dict(
        wte=w_lm_base,              # weight tying: wte.weight = lm_head.weight (base)
        wpe=wpe,
        blocks=blocks,
        lnf_g=jnp.ones((1, C), jnp.float32),
        lnf_b=jnp.zeros((1, C), jnp.float32),
        wlm_pad=wlm_pad)


# ---------------- full Decoder forward ----------------
def decoder_forward(token_ids, params, image_features=None, max_len=None):
    # torch.narrow(x, 1, 0, min(T, block_size))
    token_ids = token_ids[:, :BLOCK_SIZE]
    T = token_ids.shape[1]

    # wte / wpe embedding lookup (glue: gather in plain JAX)
    x = params['wte'][token_ids] + params['wpe'][:T][None, :, :]

    if image_features is not None:
        # TODO(synk): verify image-prefix positional/mask handling against the reference usage.
        x = jnp.concatenate([image_features.astype(jnp.float32), x], axis=1)

    logits = decoder_pallas(x, params)

    if image_features is not None:
        logits = logits[:, -max_len:, :]
    return logits


# ---------------- main ----------------
if __name__ == "__main__":
    key = jax.random.PRNGKey(0)
    k_params, k_ids = jax.random.split(key)

    params = init_params(k_params)

    B, T = 2, 8
    token_ids = jax.random.randint(k_ids, (B, T), 0, VOCAB, dtype=jnp.int32)

    fwd = jax.jit(lambda ids: decoder_forward(ids, params))
    logits = fwd(token_ids)
    jax.block_until_ready(logits)

    assert logits.shape == (B, T, VOCAB), logits.shape
    assert logits.dtype == jnp.float32
    assert bool(jnp.all(jnp.isfinite(logits)))

    # TODO(synk): checkpoint loading (torch.load) path is out of scope — weights are synthetic.
    print("KERNEL_OK")
</pallas_src>

<mosaic_0001>
module attributes {stable_mosaic.version = 11 : i64} {
  func.func @decoder_kernel(%arg0: memref<16x32xf32, #tpu.memory_space<vmem>>, %arg1: memref<2x1x32xf32, #tpu.memory_space<vmem>>, %arg2: memref<2x1x32xf32, #tpu.memory_space<vmem>>, %arg3: memref<2x4x8x32xbf16, #tpu.memory_space<vmem>>, %arg4: memref<2x4x1x8xf32, #tpu.memory_space<vmem>>, %arg5: memref<2x4x8x32xbf16, #tpu.memory_space<vmem>>, %arg6: memref<2x4x1x8xf32, #tpu.memory_space<vmem>>, %arg7: memref<2x4x8x32xbf16, #tpu.memory_space<vmem>>, %arg8: memref<2x4x1x8xf32, #tpu.memory_space<vmem>>, %arg9: memref<2x4x32x8xbf16, #tpu.memory_space<vmem>>, %arg10: memref<2x1x32xf32, #tpu.memory_space<vmem>>, %arg11: memref<2x1x32xf32, #tpu.memory_space<vmem>>, %arg12: memref<2x1x32xf32, #tpu.memory_space<vmem>>, %arg13: memref<2x128x32xbf16, #tpu.memory_space<vmem>>, %arg14: memref<2x1x128xf32, #tpu.memory_space<vmem>>, %arg15: memref<2x32x128xbf16, #tpu.memory_space<vmem>>, %arg16: memref<2x1x32xf32, #tpu.memory_space<vmem>>, %arg17: memref<1x32xf32, #tpu.memory_space<vmem>>, %arg18: memref<1x32xf32, #tpu.memory_space<vmem>>, %arg19: memref<128x32xbf16, #tpu.memory_space<vmem>>, %arg20: memref<16x128xf32, #tpu.memory_space<vmem>>) attributes {dimension_semantics = [], scalar_prefetch = 0 : i64, scratch_operands = 0 : i64, tpu.core_type = #tpu.core_type<tc>} {
    %c0 = arith.constant 0 : index
    %c0_0 = arith.constant 0 : index
    %0 = vector.load %arg0[%c0, %c0_0] : memref<16x32xf32, #tpu.memory_space<vmem>>, vector<16x32xf32>
    %1 = tpu.iota {dimensions = array<i32: 0>} : vector<8x8xi32>
    %2 = tpu.iota {dimensions = array<i32: 1>} : vector<8x8xi32>
    %3 = arith.cmpi sle, %2, %1 : vector<8x8xi32>
    %cst = arith.constant 0.000000e+00 : f32
    %cst_1 = arith.constant -1.000000e+30 : f32
    %4 = vector.broadcast %cst : f32 to vector<8x8xf32>
    %5 = vector.broadcast %cst_1 : f32 to vector<8x8xf32>
    %6 = arith.select %3, %4, %5 : vector<8x8xi1>, vector<8x8xf32>
    %7 = vector.shape_cast %6 : vector<8x8xf32> to vector<1x8x8xf32>
    %c0_2 = arith.constant 0 : index
    %c0_3 = arith.constant 0 : index
    %c0_4 = arith.constant 0 : index
    %8 = vector.load %arg1[%c0_2, %c0_3, %c0_4] : memref<2x1x32xf32, #tpu.memory_space<vmem>>, vector<1x1x32xf32>
    %9 = vector.shape_cast %8 : vector<1x1x32xf32> to vector<1x32xf32>
    %c0_5 = arith.constant 0 : index
    %c0_6 = arith.constant 0 : index
    %c0_7 = arith.constant 0 : index
    %10 = vector.load %arg2[%c0_5, %c0_6, %c0_7] : memref<2x1x32xf32, #tpu.memory_space<vmem>>, vector<1x1x32xf32>
    %11 = vector.shape_cast %10 : vector<1x1x32xf32> to vector<1x32xf32>
    %cst_8 = arith.constant dense<0.000000e+00> : vector<16xf32>
    %12 = vector.multi_reduction <add>, %0, %cst_8 [1] : vector<16x32xf32> to vector<16xf32>
    %13 = vector.shape_cast %12 : vector<16xf32> to vector<16x1xf32>
    %cst_9 = arith.constant 3.200000e+01 : f32
    %14 = vector.broadcast %cst_9 : f32 to vector<16x1xf32>
    %15 = arith.divf %13, %14 : vector<16x1xf32>
    %16 = vector.broadcast %15 : vector<16x1xf32> to vector<16x32xf32>
    %17 = arith.subf %0, %16 : vector<16x32xf32>
    %18 = arith.mulf %17, %17 : vector<16x32xf32>
    %cst_10 = arith.constant dense<0.000000e+00> : vector<16xf32>
    %19 = vector.multi_reduction <add>, %18, %cst_10 [1] : vector<16x32xf32> to vector<16xf32>
    %20 = vector.shape_cast %19 : vector<16xf32> to vector<16x1xf32>
    %cst_11 = arith.constant 3.200000e+01 : f32
    %21 = vector.broadcast %cst_11 : f32 to vector<16x1xf32>
    %22 = arith.divf %20, %21 : vector<16x1xf32>
    %cst_12 = arith.constant 9.99999974E-6 : f32
    %23 = vector.broadcast %cst_12 : f32 to vector<16x1xf32>
    %24 = arith.addf %22, %23 : vector<16x1xf32>
    %25 = math.rsqrt %24 : vector<16x1xf32>
    %26 = vector.broadcast %25 : vector<16x1xf32> to vector<16x32xf32>
    %27 = arith.mulf %17, %26 : vector<16x32xf32>
    %28 = vector.broadcast %9 : vector<1x32xf32> to vector<16x32xf32>
    %29 = arith.mulf %27, %28 : vector<16x32xf32>
    %30 = vector.broadcast %11 : vector<1x32xf32> to vector<16x32xf32>
    %31 = arith.addf %29, %30 : vector<16x32xf32>
    %32 = arith.truncf %31 : vector<16x32xf32> to vector<16x32xbf16>
    %c0_13 = arith.constant 0 : index
    %c0_14 = arith.constant 0 : index
    %c0_15 = arith.constant 0 : index
    %c0_16 = arith.constant 0 : index
    %33 = vector.load %arg3[%c0_13, %c0_14, %c0_15, %c0_16] : memref<2x4x8x32xbf16, #tpu.memory_space<vmem>>, vector<1x1x8x32xbf16>
    %34 = vector.shape_cast %33 : vector<1x1x8x32xbf16> to vector<8x32xbf16>
    %c0_17 = arith.constant 0 : index
    %c0_18 = arith.constant 0 : index
    %c0_19 = arith.constant 0 : index
    %c0_20 = arith.constant 0 : index
    %35 = vector.load %arg4[%c0_17, %c0_18, %c0_19, %c0_20] : memref<2x4x1x8xf32, #tpu.memory_space<vmem>>, vector<1x1x1x8xf32>
    %36 = vector.shape_cast %35 : vector<1x1x1x8xf32> to vector<1x8xf32>
    %cst_21 = arith.constant dense<0.000000e+00> : vector<16x8xf32>
    %37 = tpu.matmul %32, %34, %cst_21 {dimension_numbers = #tpu.dot_dimension_numbers<[1], [1], [0], [0], [0, 0, 1, 0], [], []>} : vector<16x32xbf16>, vector<8x32xbf16>, vector<16x8xf32> -> vector<16x8xf32>
    %38 = vector.broadcast %36 : vector<1x8xf32> to vector<16x8xf32>
    %39 = arith.addf %37, %38 : vector<16x8xf32>
    %c0_22 = arith.constant 0 : index
    %c0_23 = arith.constant 0 : index
    %c0_24 = arith.constant 0 : index
    %c0_25 = arith.constant 0 : index
    %40 = vector.load %arg5[%c0_22, %c0_23, %c0_24, %c0_25] : memref<2x4x8x32xbf16, #tpu.memory_space<vmem>>, vector<1x1x8x32xbf16>
    %41 = vector.shape_cast %40 : vector<1x1x8x32xbf16> to vector<8x32xbf16>
    %c0_26 = arith.constant 0 : index
    %c0_27 = arith.constant 0 : index
    %c0_28 = arith.constant 0 : index
    %c0_29 = arith.constant 0 : index
    %42 = vector.load %arg6[%c0_26, %c0_27, %c0_28, %c0_29] : memref<2x4x1x8xf32, #tpu.memory_space<vmem>>, vector<1x1x1x8xf32>
    %43 = vector.shape_cast %42 : vector<1x1x1x8xf32> to vector<1x8xf32>
    %cst_30 = arith.constant dense<0.000000e+00> : vector<16x8xf32>
    %44 = tpu.matmul %32, %41, %cst_30 {dimension_numbers = #tpu.dot_dimension_numbers<[1], [1], [0], [0], [0, 0, 1, 0], [], []>} : vector<16x32xbf16>, vector<8x32xbf16>, vector<16x8xf32> -> vector<16x8xf32>
    %45 = vector.broadcast %43 : vector<1x8xf32> to vector<16x8xf32>
    %46 = arith.addf %44, %45 : vector<16x8xf32>
    %c0_31 = arith.constant 0 : index
    %c0_32 = arith.constant 0 : index
    %c0_33 = arith.constant 0 : index
    %c0_34 = arith.constant 0 : index
    %47 = vector.load %arg7[%c0_31, %c0_32, %c0_33, %c0_34] : memref<2x4x8x32xbf16, #tpu.memory_space<vmem>>, vector<1x1x8x32xbf16>
    %48 = vector.shape_cast %47 : vector<1x1x8x32xbf16> to vector<8x32xbf16>
    %c0_35 = arith.constant 0 : index
    %c0_36 = arith.constant 0 : index
    %c0_37 = arith.constant 0 : index
    %c0_38 = arith.constant 0 : index
    %49 = vector.load %arg8[%c0_35, %c0_36, %c0_37, %c0_38] : memref<2x4x1x8xf32, #tpu.memory_space<vmem>>, vector<1x1x1x8xf32>
    %50 = vector.shape_cast %49 : vector<1x1x1x8xf32> to vector<1x8xf32>
    %cst_39 = arith.constant dense<0.000000e+00> : vector<16x8xf32>
    %51 = tpu.matmul %32, %48, %cst_39 {dimension_numbers = #tpu.dot_dimension_numbers<[1], [1], [0], [0], [0, 0, 1, 0], [], []>} : vector<16x32xbf16>, vector<8x32xbf16>, vector<16x8xf32> -> vector<16x8xf32>
    %52 = vector.broadcast %50 : vector<1x8xf32> to vector<16x8xf32>
    %53 = arith.addf %51, %52 : vector<16x8xf32>
    %54 = vector.shape_cast %39 : vector<16x8xf32> to vector<2x8x8xf32>
    %55 = vector.shape_cast %46 : vector<16x8xf32> to vector<2x8x8xf32>
    %56 = vector.shape_cast %53 : vector<16x8xf32> to vector<2x8x8xf32>
    %c0_40 = arith.constant 0 : index
    %c1 = arith.constant 1 : index
    %c0_41 = arith.constant 0 : index
    %c0_42 = arith.constant 0 : index
    %57 = vector.load %arg3[%c0_40, %c1, %c0_41, %c0_42] : memref<2x4x8x32xbf16, #tpu.memory_space<vmem>>, vector<1x1x8x32xbf16>
    %58 = vector.shape_cast %57 : vector<1x1x8x32xbf16> to vector<8x32xbf16>
    %c0_43 = arith.constant 0 : index
    %c1_44 = arith.constant 1 : index
    %c0_45 = arith.constant 0 : index
    %c0_46 = arith.constant 0 : index
    %59 = vector.load %arg4[%c0_43, %c1_44, %c0_45, %c0_46] : memref<2x4x1x8xf32, #tpu.memory_space<vmem>>, vector<1x1x1x8xf32>
    %60 = vector.shape_cast %59 : vector<1x1x1x8xf32> to vector<1x8xf32>
    %cst_47 = arith.constant dense<0.000000e+00> : vector<16x8xf32>
    %61 = tpu.matmul %32, %58, %cst_47 {dimension_numbers = #tpu.dot_dimension_numbers<[1], [1], [0], [0], [0, 0, 1, 0], [], []>} : vector<16x32xbf16>, vector<8x32xbf16>, vector<16x8xf32> -> vector<16x8xf32>
    %62 = vector.broadcast %60 : vector<1x8xf32> to vector<16x8xf32>
    %63 = arith.addf %61, %62 : vector<16x8xf32>
    %c0_48 = arith.constant 0 : index
    %c1_49 = arith.constant 1 : index
    %c0_50 = arith.constant 0 : index
    %c0_51 = arith.constant 0 : index
    %64 = vector.load %arg5[%c0_48, %c1_49, %c0_50, %c0_51] : memref<2x4x8x32xbf16, #tpu.memory_space<vmem>>, vector<1x1x8x32xbf16>
    %65 = vector.shape_cast %64 : vector<1x1x8x32xbf16> to vector<8x32xbf16>
    %c0_52 = arith.constant 0 : index
    %c1_53 = arith.constant 1 : index
    %c0_54 = arith.constant 0 : index
    %c0_55 = arith.constant 0 : index
    %66 = vector.load %arg6[%c0_52, %c1_53, %c0_54, %c0_55] : memref<2x4x1x8xf32, #tpu.memory_space<vmem>>, vector<1x1x1x8xf32>
    %67 = vector.shape_cast %66 : vector<1x1x1x8xf32> to vector<1x8xf32>
    %cst_56 = arith.constant dense<0.000000e+00> : vector<16x8xf32>
    %68 = tpu.matmul %32, %65, %cst_56 {dimension_numbers = #tpu.dot_dimension_numbers<[1], [1], [0], [0], [0, 0, 1, 0], [], []>} : vector<16x32xbf16>, vector<8x32xbf16>, vector<16x8xf32> -> vector<16x8xf32>
    %69 = vector.broadcast %67 : vector<1x8xf32> to vector<16x8xf32>
    %70 = arith.addf %68, %69 : vector<16x8xf32>
    %c0_57 = arith.constant 0 : index
    %c1_58 = arith.constant 1 : index
    %c0_59 = arith.constant 0 : index
    %c0_60 = arith.constant 0 : index
    %71 = vector.load %arg7[%c0_57, %c1_58, %c0_59, %c0_60] : memref<2x4x8x32xbf16, #tpu.memory_space<vmem>>, vector<1x1x8x32xbf16>
    %72 = vector.shape_cast %71 : vector<1x1x8x32xbf16> to vector<8x32xbf16>
    %c0_61 = arith.constant 0 : index
    %c1_62 = arith.constant 1 : index
    %c0_63 = arith.constant 0 : index
    %c0_64 = arith.constant 0 : index
    %73 = vector.load %arg8[%c0_61, %c1_62, %c0_63, %c0_64] : memref<2x4x1x8xf32, #tpu.memory_space<vmem>>, vector<1x1x1x8xf32>
    %74 = vector.shape_cast %73 : vector<1x1x1x8xf32> to vector<1x8xf32>
    %cst_65 = arith.constant dense<0.000000e+00> : vector<16x8xf32>
    %75 = tpu.matmul %32, %72, %cst_65 {dimension_numbers = #tpu.dot_dimension_numbers<[1], [1], [0], [0], [0, 0, 1, 0], [], []>} : vector<16x32xbf16>, vector<8x32xbf16>, vector<16x8xf32> -> vector<16x8xf32>
    %76 = vector.broadcast %74 : vector<1x8xf32> to vector<16x8xf32>
    %77 = arith.addf %75, %76 : vector<16x8xf32>
    %78 = vector.shape_cast %63 : vector<16x8xf32> to vector<2x8x8xf32>
    %79 = vector.shape_cast %70 : vector<16x8xf32> to vector<2x8x8xf32>
    %80 = vector.shape_cast %77 : vector<16x8xf32> to vector<2x8x8xf32>
    %c0_66 = arith.constant 0 : index
    %c2 = arith.constant 2 : index
    %c0_67 = arith.constant 0 : index
    %c0_68 = arith.constant 0 : index
    %81 = vector.load %arg3[%c0_66, %c2, %c0_67, %c0_68] : memref<2x4x8x32xbf16, #tpu.memory_space<vmem>>, vector<1x1x8x32xbf16>
    %82 = vector.shape_cast %81 : vector<1x1x8x32xbf16> to vector<8x32xbf16>
    %c0_69 = arith.constant 0 : index
    %c2_70 = arith.constant 2 : index
    %c0_71 = arith.constant 0 : index
    %c0_72 = arith.constant 0 : index
    %83 = vector.load %arg4[%c0_69, %c2_70, %c0_71, %c0_72] : memref<2x4x1x8xf32, #tpu.memory_space<vmem>>, vector<1x1x1x8xf32>
    %84 = vector.shape_cast %83 : vector<1x1x1x8xf32> to vector<1x8xf32>
    %cst_73 = arith.constant dense<0.000000e+00> : vector<16x8xf32>
    %85 = tpu.matmul %32, %82, %cst_73 {dimension_numbers = #tpu.dot_dimension_numbers<[1], [1], [0], [0], [0, 0, 1, 0], [], []>} : vector<16x32xbf16>, vector<8x32xbf16>, vector<16x8xf32> -> vector<16x8xf32>
    %86 = vector.broadcast %84 : vector<1x8xf32> to vector<16x8xf32>
    %87 = arith.addf %85, %86 : vector<16x8xf32>
    %c0_74 = arith.constant 0 : index
    %c2_75 = arith.constant 2 : index
    %c0_76 = arith.constant 0 : index
    %c0_77 = arith.constant 0 : index
    %88 = vector.load %arg5[%c0_74, %c2_75, %c0_76, %c0_77] : memref<2x4x8x32xbf16, #tpu.memory_space<vmem>>, vector<1x1x8x32xbf16>
    %89 = vector.shape_cast %88 : vector<1x1x8x32xbf16> to vector<8x32xbf16>
    %c0_78 = arith.constant 0 : index
    %c2_79 = arith.constant 2 : index
    %c0_80 = arith.constant 0 : index
    %c0_81 = arith.constant 0 : index
    %90 = vector.load %arg6[%c0_78, %c2_79, %c0_80, %c0_81] : memref<2x4x1x8xf32, #tpu.memory_space<vmem>>, vector<1x1x1x8xf32>
    %91 = vector.shape_cast %90 : vector<1x1x1x8xf32> to vector<1x8xf32>
    %cst_82 = arith.constant dense<0.000000e+00> : vector<16x8xf32>
    %92 = tpu.matmul %32, %89, %cst_82 {dimension_numbers = #tpu.dot_dimension_numbers<[1], [1], [0], [0], [0, 0, 1, 0], [], []>} : vector<16x32xbf16>, vector<8x32xbf16>, vector<16x8xf32> -> vector<16x8xf32>
    %93 = vector.broadcast %91 : vector<1x8xf32> to vector<16x8xf32>
    %94 = arith.addf %92, %93 : vector<16x8xf32>
    %c0_83 = arith.constant 0 : index
    %c2_84 = arith.constant 2 : index
    %c0_85 = arith.constant 0 : index
    %c0_86 = arith.constant 0 : index
    %95 = vector.load %arg7[%c0_83, %c2_84, %c0_85, %c0_86] : memref<2x4x8x32xbf16, #tpu.memory_space<vmem>>, vector<1x1x8x32xbf16>
    %96 = vector.shape_cast %95 : vector<1x1x8x32xbf16> to vector<8x32xbf16>
    %c0_87 = arith.constant 0 : index
    %c2_88 = arith.constant 2 : index
    %c0_89 = arith.constant 0 : index
    %c0_90 = arith.constant 0 : index
    %97 = vector.load %arg8[%c0_87, %c2_88, %c0_89, %c0_90] : memref<2x4x1x8xf32, #tpu.memory_space<vmem>>, vector<1x1x1x8xf32>
    %98 = vector.shape_cast %97 : vector<1x1x1x8xf32> to vector<1x8xf32>
    %cst_91 = arith.constant dense<0.000000e+00> : vector<16x8xf32>
    %99 = tpu.matmul %32, %96, %cst_91 {dimension_numbers = #tpu.dot_dimension_numbers<[1], [1], [0], [0], [0, 0, 1, 0], [], []>} : vector<16x32xbf16>, vector<8x32xbf16>, vector<16x8xf32> -> vector<16x8xf32>
    %100 = vector.broadcast %98 : vector<1x8xf32> to vector<16x8xf32>
    %101 = arith.addf %99, %100 : vector<16x8xf32>
    %102 = vector.shape_cast %87 : vector<16x8xf32> to vector<2x8x8xf32>
    %103 = vector.shape_cast %94 : vector<16x8xf32> to vector<2x8x8xf32>
    %104 = vector.shape_cast %101 : vector<16x8xf32> to vector<2x8x8xf32>
    %c0_92 = arith.constant 0 : index
    %c3 = arith.constant 3 : index
    %c0_93 = arith.constant 0 : index
    %c0_94 = arith.constant 0 : index
    %105 = vector.load %arg3[%c0_92, %c3, %c0_93, %c0_94] : memref<2x4x8x32xbf16, #tpu.memory_space<vmem>>, vector<1x1x8x32xbf16>
    %106 = vector.shape_cast %105 : vector<1x1x8x32xbf16> to vector<8x32xbf16>
    %c0_95 = arith.constant 0 : index
    %c3_96 = arith.constant 3 : index
    %c0_97 = arith.constant 0 : index
    %c0_98 = arith.constant 0 : index
    %107 = vector.load %arg4[%c0_95, %c3_96, %c0_97, %c0_98] : memref<2x4x1x8xf32, #tpu.memory_space<vmem>>, vector<1x1x1x8xf32>
    %108 = vector.shape_cast %107 : vector<1x1x1x8xf32> to vector<1x8xf32>
    %cst_99 = arith.constant dense<0.000000e+00> : vector<16x8xf32>
    %109 = tpu.matmul %32, %106, %cst_99 {dimension_numbers = #tpu.dot_dimension_numbers<[1], [1], [0], [0], [0, 0, 1, 0], [], []>} : vector<16x32xbf16>, vector<8x32xbf16>, vector<16x8xf32> -> vector<16x8xf32>
    %110 = vector.broadcast %108 : vector<1x8xf32> to vector<16x8xf32>
    %111 = arith.addf %109, %110 : vector<16x8xf32>
    %c0_100 = arith.constant 0 : index
    %c3_101 = arith.constant 3 : index
    %c0_102 = arith.constant 0 : index
    %c0_103 = arith.constant 0 : index
    %112 = vector.load %arg5[%c0_100, %c3_101, %c0_102, %c0_103] : memref<2x4x8x32xbf16, #tpu.memory_space<vmem>>, vector<1x1x8x32xbf16>
    %113 = vector.shape_cast %112 : vector<1x1x8x32xbf16> to vector<8x32xbf16>
    %c0_104 = arith.constant 0 : index
    %c3_105 = arith.constant 3 : index
    %c0_106 = arith.constant 0 : index
    %c0_107 = arith.constant 0 : index
    %114 = vector.load %arg6[%c0_104, %c3_105, %c0_106, %c0_107] : memref<2x4x1x8xf32, #tpu.memory_space<vmem>>, vector<1x1x1x8xf32>
    %115 = vector.shape_cast %114 : vector<1x1x1x8xf32> to vector<1x8xf32>
    %cst_108 = arith.constant dense<0.000000e+00> : vector<16x8xf32>
    %116 = tpu.matmul %32, %113, %cst_108 {dimension_numbers = #tpu.dot_dimension_numbers<[1], [1], [0], [0], [0, 0, 1, 0], [], []>} : vector<16x32xbf16>, vector<8x32xbf16>, vector<16x8xf32> -> vector<16x8xf32>
    %117 = vector.broadcast %115 : vector<1x8xf32> to vector<16x8xf32>
    %118 = arith.addf %116, %117 : vector<16x8xf32>
    %c0_109 = arith.constant 0 : index
    %c3_110 = arith.constant 3 : index
    %c0_111 = arith.constant 0 : index
    %c0_112 = arith.constant 0 : index
    %119 = vector.load %arg7[%c0_109, %c3_110, %c0_111, %c0_112] : memref<2x4x8x32xbf16, #tpu.memory_space<vmem>>, vector<1x1x8x32xbf16>
    %120 = vector.shape_cast %119 : vector<1x1x8x32xbf16> to vector<8x32xbf16>
    %c0_113 = arith.constant 0 : index
    %c3_114 = arith.constant 3 : index
    %c0_115 = arith.constant 0 : index
    %c0_116 = arith.constant 0 : index
    %121 = vector.load %arg8[%c0_113, %c3_114, %c0_115, %c0_116] : memref<2x4x1x8xf32, #tpu.memory_space<vmem>>, vector<1x1x1x8xf32>
    %122 = vector.shape_cast %121 : vector<1x1x1x8xf32> to vector<1x8xf32>
    %cst_117 = arith.constant dense<0.000000e+00> : vector<16x8xf32>
    %123 = tpu.matmul %32, %120, %cst_117 {dimension_numbers = #tpu.dot_dimension_numbers<[1], [1], [0], [0], [0, 0, 1, 0], [], []>} : vector<16x32xbf16>, vector<8x32xbf16>, vector<16x8xf32> -> vector<16x8xf32>
    %124 = vector.broadcast %122 : vector<1x8xf32> to vector<16x8xf32>
    %125 = arith.addf %123, %124 : vector<16x8xf32>
    %126 = vector.shape_cast %111 : vector<16x8xf32> to vector<2x8x8xf32>
    %127 = vector.shape_cast %118 : vector<16x8xf32> to vector<2x8x8xf32>
    %128 = vector.shape_cast %125 : vector<16x8xf32> to vector<2x8x8xf32>
    %129 = tpu.concatenate %54, %78, %102, %126 in 0 : vector<2x8x8xf32>, vector<2x8x8xf32>, vector<2x8x8xf32>, vector<2x8x8xf32> -> vector<8x8x8xf32>
    %130 = arith.truncf %129 : vector<8x8x8xf32> to vector<8x8x8xbf16>
    %131 = tpu.concatenate %55, %79, %103, %127 in 0 : vector<2x8x8xf32>, vector<2x8x8xf32>, vector<2x8x8xf32>, vector<2x8x8xf32> -> vector<8x8x8xf32>
    %132 = arith.truncf %131 : vector<8x8x8xf32> to vector<8x8x8xbf16>
    %133 = tpu.concatenate %56, %80, %104, %128 in 0 : vector<2x8x8xf32>, vector<2x8x8xf32>, vector<2x8x8xf32>, vector<2x8x8xf32> -> vector<8x8x8xf32>
    %134 = arith.truncf %133 : vector<8x8x8xf32> to vector<8x8x8xbf16>
    "tpu.trace_start"() <{level = 10 : i32, message = "ztd,zsd->zts"}> : () -> ()
    %cst_118 = arith.constant dense<0.000000e+00> : vector<8x8x8xf32>
    %135 = tpu.matmul %130, %132, %cst_118 {dimension_numbers = #tpu.dot_dimension_numbers<[2], [2], [1], [1], [0, 0, 0, 1, 1, 1], [0], [0]>} : vector<8x8x8xbf16>, vector<8x8x8xbf16>, vector<8x8x8xf32> -> vector<8x8x8xf32>
    "tpu.trace_stop"() : () -> ()
    %136 = vector.broadcast %7 : vector<1x8x8xf32> to vector<8x8x8xf32>
    %137 = arith.addf %135, %136 : vector<8x8x8xf32>
    %cst_119 = arith.constant dense<0xFF800000> : vector<8x8xf32>
    %138 = vector.multi_reduction <maximumf>, %137, %cst_119 [2] : vector<8x8x8xf32> to vector<8x8xf32>
    %139 = vector.shape_cast %138 : vector<8x8xf32> to vector<8x8x1xf32>
    %140 = vector.broadcast %139 : vector<8x8x1xf32> to vector<8x8x8xf32>
    %141 = arith.subf %137, %140 : vector<8x8x8xf32>
    %142 = math.exp %141 : vector<8x8x8xf32>
    %cst_120 = arith.constant dense<0.000000e+00> : vector<8x8xf32>
    %143 = vector.multi_reduction <add>, %142, %cst_120 [2] : vector<8x8x8xf32> to vector<8x8xf32>
    %144 = vector.shape_cast %143 : vector<8x8xf32> to vector<8x8x1xf32>
    %145 = tpu.reciprocal %144 {approx = true} : vector<8x8x1xf32> -> vector<8x8x1xf32>
    %146 = vector.broadcast %145 : vector<8x8x1xf32> to vector<8x8x8xf32>
    %147 = arith.mulf %142, %146 : vector<8x8x8xf32>
    %148 = arith.truncf %147 : vector<8x8x8xf32> to vector<8x8x8xbf16>
    "tpu.trace_start"() <{level = 10 : i32, message = "zts,zsd->ztd"}> : () -> ()
    %cst_121 = arith.constant dense<0.000000e+00> : vector<8x8x8xf32>
    %149 = tpu.matmul %148, %134, %cst_121 {dimension_numbers = #tpu.dot_dimension_numbers<[2], [1], [1], [2], [0, 0, 0, 1, 1, 2], [0], [0]>} : vector<8x8x8xbf16>, vector<8x8x8xbf16>, vector<8x8x8xf32> -> vector<8x8x8xf32>
    "tpu.trace_stop"() : () -> ()
    %150 = vector.extract_strided_slice %149 {offsets = [0, 0, 0], sizes = [2, 8, 8], strides = [1, 1, 1]} : vector<8x8x8xf32> to vector<2x8x8xf32>
    %151 = vector.shape_cast %150 : vector<2x8x8xf32> to vector<16x8xf32>
    %152 = arith.truncf %151 : vector<16x8xf32> to vector<16x8xbf16>
    %c0_122 = arith.constant 0 : index
    %c0_123 = arith.constant 0 : index
    %c0_124 = arith.constant 0 : index
    %c0_125 = arith.constant 0 : index
    %153 = vector.load %arg9[%c0_122, %c0_123, %c0_124, %c0_125] : memref<2x4x32x8xbf16, #tpu.memory_space<vmem>>, vector<1x1x32x8xbf16>
    %154 = vector.shape_cast %153 : vector<1x1x32x8xbf16> to vector<32x8xbf16>
    %cst_126 = arith.constant dense<0.000000e+00> : vector<16x32xf32>
    %155 = tpu.matmul %152, %154, %cst_126 {dimension_numbers = #tpu.dot_dimension_numbers<[1], [1], [0], [0], [0, 0, 1, 0], [], []>} : vector<16x8xbf16>, vector<32x8xbf16>, vector<16x32xf32> -> vector<16x32xf32>
    %156 = vector.extract_strided_slice %149 {offsets = [2, 0, 0], sizes = [2, 8, 8], strides = [1, 1, 1]} : vector<8x8x8xf32> to vector<2x8x8xf32>
    %157 = vector.shape_cast %156 : vector<2x8x8xf32> to vector<16x8xf32>
    %158 = arith.truncf %157 : vector<16x8xf32> to vector<16x8xbf16>
    %c0_127 = arith.constant 0 : index
    %c1_128 = arith.constant 1 : index
    %c0_129 = arith.constant 0 : index
    %c0_130 = arith.constant 0 : index
    %159 = vector.load %arg9[%c0_127, %c1_128, %c0_129, %c0_130] : memref<2x4x32x8xbf16, #tpu.memory_space<vmem>>, vector<1x1x32x8xbf16>
    %160 = vector.shape_cast %159 : vector<1x1x32x8xbf16> to vector<32x8xbf16>
    %cst_131 = arith.constant dense<0.000000e+00> : vector<16x32xf32>
    %161 = tpu.matmul %158, %160, %cst_131 {dimension_numbers = #tpu.dot_dimension_numbers<[1], [1], [0], [0], [0, 0, 1, 0], [], []>} : vector<16x8xbf16>, vector<32x8xbf16>, vector<16x32xf32> -> vector<16x32xf32>
    %162 = arith.addf %155, %161 : vector<16x32xf32>
    %163 = vector.extract_strided_slice %149 {offsets = [4, 0, 0], sizes = [2, 8, 8], strides = [1, 1, 1]} : vector<8x8x8xf32> to vector<2x8x8xf32>
    %164 = vector.shape_cast %163 : vector<2x8x8xf32> to vector<16x8xf32>
    %165 = arith.truncf %164 : vector<16x8xf32> to vector<16x8xbf16>
    %c0_132 = arith.constant 0 : index
    %c2_133 = arith.constant 2 : index
    %c0_134 = arith.constant 0 : index
    %c0_135 = arith.constant 0 : index
    %166 = vector.load %arg9[%c0_132, %c2_133, %c0_134, %c0_135] : memref<2x4x32x8xbf16, #tpu.memory_space<vmem>>, vector<1x1x32x8xbf16>
    %167 = vector.shape_cast %166 : vector<1x1x32x8xbf16> to vector<32x8xbf16>
    %cst_136 = arith.constant dense<0.000000e+00> : vector<16x32xf32>
    %168 = tpu.matmul %165, %167, %cst_136 {dimension_numbers = #tpu.dot_dimension_numbers<[1], [1], [0], [0], [0, 0, 1, 0], [], []>} : vector<16x8xbf16>, vector<32x8xbf16>, vector<16x32xf32> -> vector<16x32xf32>
    %169 = arith.addf %162, %168 : vector<16x32xf32>
    %170 = vector.extract_strided_slice %149 {offsets = [6, 0, 0], sizes = [2, 8, 8], strides = [1, 1, 1]} : vector<8x8x8xf32> to vector<2x8x8xf32>
    %171 = vector.shape_cast %170 : vector<2x8x8xf32> to vector<16x8xf32>
    %172 = arith.truncf %171 : vector<16x8xf32> to vector<16x8xbf16>
    %c0_137 = arith.constant 0 : index
    %c3_138 = arith.constant 3 : index
    %c0_139 = arith.constant 0 : index
    %c0_140 = arith.constant 0 : index
    %173 = vector.load %arg9[%c0_137, %c3_138, %c0_139, %c0_140] : memref<2x4x32x8xbf16, #tpu.memory_space<vmem>>, vector<1x1x32x8xbf16>
    %174 = vector.shape_cast %173 : vector<1x1x32x8xbf16> to vector<32x8xbf16>
    %cst_141 = arith.constant dense<0.000000e+00> : vector<16x32xf32>
    %175 = tpu.matmul %172, %174, %cst_141 {dimension_numbers = #tpu.dot_dimension_numbers<[1], [1], [0], [0], [0, 0, 1, 0], [], []>} : vector<16x8xbf16>, vector<32x8xbf16>, vector<16x32xf32> -> vector<16x32xf32>
    %176 = arith.addf %169, %175 : vector<16x32xf32>
    %177 = arith.addf %0, %176 : vector<16x32xf32>
    %c0_142 = arith.constant 0 : index
    %c0_143 = arith.constant 0 : index
    %c0_144 = arith.constant 0 : index
    %178 = vector.load %arg10[%c0_142, %c0_143, %c0_144] : memref<2x1x32xf32, #tpu.memory_space<vmem>>, vector<1x1x32xf32>
    %179 = vector.shape_cast %178 : vector<1x1x32xf32> to vector<1x32xf32>
    %180 = vector.broadcast %179 : vector<1x32xf32> to vector<16x32xf32>
    %181 = arith.addf %177, %180 : vector<16x32xf32>
    %c0_145 = arith.constant 0 : index
    %c0_146 = arith.constant 0 : index
    %c0_147 = arith.constant 0 : index
    %182 = vector.load %arg11[%c0_145, %c0_146, %c0_147] : memref<2x1x32xf32, #tpu.memory_space<vmem>>, vector<1x1x32xf32>
    %183 = vector.shape_cast %182 : vector<1x1x32xf32> to vector<1x32xf32>
    %c0_148 = arith.constant 0 : index
    %c0_149 = arith.constant 0 : index
    %c0_150 = arith.constant 0 : index
    %184 = vector.load %arg12[%c0_148, %c0_149, %c0_150] : memref<2x1x32xf32, #tpu.memory_space<vmem>>, vector<1x1x32xf32>
    %185 = vector.shape_cast %184 : vector<1x1x32xf32> to vector<1x32xf32>
    %cst_151 = arith.constant dense<0.000000e+00> : vector<16xf32>
    %186 = vector.multi_reduction <add>, %181, %cst_151 [1] : vector<16x32xf32> to vector<16xf32>
    %187 = vector.shape_cast %186 : vector<16xf32> to vector<16x1xf32>
    %cst_152 = arith.constant 3.200000e+01 : f32
    %188 = vector.broadcast %cst_152 : f32 to vector<16x1xf32>
    %189 = arith.divf %187, %188 : vector<16x1xf32>
    %190 = vector.broadcast %189 : vector<16x1xf32> to vector<16x32xf32>
    %191 = arith.subf %181, %190 : vector<16x32xf32>
    %192 = arith.mulf %191, %191 : vector<16x32xf32>
    %cst_153 = arith.constant dense<0.000000e+00> : vector<16xf32>
    %193 = vector.multi_reduction <add>, %192, %cst_153 [1] : vector<16x32xf32> to vector<16xf32>
    %194 = vector.shape_cast %193 : vector<16xf32> to vector<16x1xf32>
    %cst_154 = arith.constant 3.200000e+01 : f32
    %195 = vector.broadcast %cst_154 : f32 to vector<16x1xf32>
    %196 = arith.divf %194, %195 : vector<16x1xf32>
    %cst_155 = arith.constant 9.99999974E-6 : f32
    %197 = vector.broadcast %cst_155 : f32 to vector<16x1xf32>
    %198 = arith.addf %196, %197 : vector<16x1xf32>
    %199 = math.rsqrt %198 : vector<16x1xf32>
    %200 = vector.broadcast %199 : vector<16x1xf32> to vector<16x32xf32>
    %201 = arith.mulf %191, %200 : vector<16x32xf32>
    %202 = vector.broadcast %183 : vector<1x32xf32> to vector<16x32xf32>
    %203 = arith.mulf %201, %202 : vector<16x32xf32>
    %204 = vector.broadcast %185 : vector<1x32xf32> to vector<16x32xf32>
    %205 = arith.addf %203, %204 : vector<16x32xf32>
    %206 = arith.truncf %205 : vector<16x32xf32> to vector<16x32xbf16>
    %c0_156 = arith.constant 0 : index
    %c0_157 = arith.constant 0 : index
    %c0_158 = arith.constant 0 : index
    %207 = vector.load %arg13[%c0_156, %c0_157, %c0_158] : memref<2x128x32xbf16, #tpu.memory_space<vmem>>, vector<1x128x32xbf16>
    %208 = vector.shape_cast %207 : vector<1x128x32xbf16> to vector<128x32xbf16>
    %c0_159 = arith.constant 0 : index
    %c0_160 = arith.constant 0 : index
    %c0_161 = arith.constant 0 : index
    %209 = vector.load %arg14[%c0_159, %c0_160, %c0_161] : memref<2x1x128xf32, #tpu.memory_space<vmem>>, vector<1x1x128xf32>
    %210 = vector.shape_cast %209 : vector<1x1x128xf32> to vector<1x128xf32>
    %cst_162 = arith.constant dense<0.000000e+00> : vector<16x128xf32>
    %211 = tpu.matmul %206, %208, %cst_162 {dimension_numbers = #tpu.dot_dimension_numbers<[1], [1], [0], [0], [0, 0, 1, 0], [], []>} : vector<16x32xbf16>, vector<128x32xbf16>, vector<16x128xf32> -> vector<16x128xf32>
    %212 = vector.broadcast %210 : vector<1x128xf32> to vector<16x128xf32>
    %213 = arith.addf %211, %212 : vector<16x128xf32>
    %cst_163 = arith.constant 5.000000e-01 : f32
    %214 = vector.broadcast %cst_163 : f32 to vector<16x128xf32>
    %215 = arith.mulf %214, %213 : vector<16x128xf32>
    %cst_164 = arith.constant 4.471500e-02 : f32
    %216 = vector.broadcast %cst_164 : f32 to vector<16x128xf32>
    %217 = arith.mulf %216, %213 : vector<16x128xf32>
    %218 = arith.mulf %217, %213 : vector<16x128xf32>
    %219 = arith.mulf %218, %213 : vector<16x128xf32>
    %220 = arith.addf %213, %219 : vector<16x128xf32>
    %cst_165 = arith.constant 0.797884583 : f32
    %221 = vector.broadcast %cst_165 : f32 to vector<16x128xf32>
    %222 = arith.mulf %221, %220 : vector<16x128xf32>
    %223 = math.tanh %222 : vector<16x128xf32>
    %cst_166 = arith.constant 1.000000e+00 : f32
    %224 = vector.broadcast %cst_166 : f32 to vector<16x128xf32>
    %225 = arith.addf %224, %223 : vector<16x128xf32>
    %226 = arith.mulf %215, %225 : vector<16x128xf32>
    %227 = arith.truncf %226 : vector<16x128xf32> to vector<16x128xbf16>
    %c0_167 = arith.constant 0 : index
    %c0_168 = arith.constant 0 : index
    %c0_169 = arith.constant 0 : index
    %228 = vector.load %arg15[%c0_167, %c0_168, %c0_169] : memref<2x32x128xbf16, #tpu.memory_space<vmem>>, vector<1x32x128xbf16>
    %229 = vector.shape_cast %228 : vector<1x32x128xbf16> to vector<32x128xbf16>
    %c0_170 = arith.constant 0 : index
    %c0_171 = arith.constant 0 : index
    %c0_172 = arith.constant 0 : index
    %230 = vector.load %arg16[%c0_170, %c0_171, %c0_172] : memref<2x1x32xf32, #tpu.memory_space<vmem>>, vector<1x1x32xf32>
    %231 = vector.shape_cast %230 : vector<1x1x32xf32> to vector<1x32xf32>
    %cst_173 = arith.constant dense<0.000000e+00> : vector<16x32xf32>
    %232 = tpu.matmul %227, %229, %cst_173 {dimension_numbers = #tpu.dot_dimension_numbers<[1], [1], [0], [0], [0, 0, 1, 0], [], []>} : vector<16x128xbf16>, vector<32x128xbf16>, vector<16x32xf32> -> vector<16x32xf32>
    %233 = vector.broadcast %231 : vector<1x32xf32> to vector<16x32xf32>
    %234 = arith.addf %232, %233 : vector<16x32xf32>
    %235 = arith.addf %181, %234 : vector<16x32xf32>
    %c1_174 = arith.constant 1 : index
    %c0_175 = arith.constant 0 : index
    %c0_176 = arith.constant 0 : index
    %236 = vector.load %arg1[%c1_174, %c0_175, %c0_176] : memref<2x1x32xf32, #tpu.memory_space<vmem>>, vector<1x1x32xf32>
    %237 = vector.shape_cast %236 : vector<1x1x32xf32> to vector<1x32xf32>
    %c1_177 = arith.constant 1 : index
    %c0_178 = arith.constant 0 : index
    %c0_179 = arith.constant 0 : index
    %238 = vector.load %arg2[%c1_177, %c0_178, %c0_179] : memref<2x1x32xf32, #tpu.memory_space<vmem>>, vector<1x1x32xf32>
    %239 = vector.shape_cast %238 : vector<1x1x32xf32> to vector<1x32xf32>
    %cst_180 = arith.constant dense<0.000000e+00> : vector<16xf32>
    %240 = vector.multi_reduction <add>, %235, %cst_180 [1] : vector<16x32xf32> to vector<16xf32>
    %241 = vector.shape_cast %240 : vector<16xf32> to vector<16x1xf32>
    %cst_181 = arith.constant 3.200000e+01 : f32
    %242 = vector.broadcast %cst_181 : f32 to vector<16x1xf32>
    %243 = arith.divf %241, %242 : vector<16x1xf32>
    %244 = vector.broadcast %243 : vector<16x1xf32> to vector<16x32xf32>
    %245 = arith.subf %235, %244 : vector<16x32xf32>
    %246 = arith.mulf %245, %245 : vector<16x32xf32>
    %cst_182 = arith.constant dense<0.000000e+00> : vector<16xf32>
    %247 = vector.multi_reduction <add>, %246, %cst_182 [1] : vector<16x32xf32> to vector<16xf32>
    %248 = vector.shape_cast %247 : vector<16xf32> to vector<16x1xf32>
    %cst_183 = arith.constant 3.200000e+01 : f32
    %249 = vector.broadcast %cst_183 : f32 to vector<16x1xf32>
    %250 = arith.divf %248, %249 : vector<16x1xf32>
    %cst_184 = arith.constant 9.99999974E-6 : f32
    %251 = vector.broadcast %cst_184 : f32 to vector<16x1xf32>
    %252 = arith.addf %250, %251 : vector<16x1xf32>
    %253 = math.rsqrt %252 : vector<16x1xf32>
    %254 = vector.broadcast %253 : vector<16x1xf32> to vector<16x32xf32>
    %255 = arith.mulf %245, %254 : vector<16x32xf32>
    %256 = vector.broadcast %237 : vector<1x32xf32> to vector<16x32xf32>
    %257 = arith.mulf %255, %256 : vector<16x32xf32>
    %258 = vector.broadcast %239 : vector<1x32xf32> to vector<16x32xf32>
    %259 = arith.addf %257, %258 : vector<16x32xf32>
    %260 = arith.truncf %259 : vector<16x32xf32> to vector<16x32xbf16>
    %c1_185 = arith.constant 1 : index
    %c0_186 = arith.constant 0 : index
    %c0_187 = arith.constant 0 : index
    %c0_188 = arith.constant 0 : index
    %261 = vector.load %arg3[%c1_185, %c0_186, %c0_187, %c0_188] : memref<2x4x8x32xbf16, #tpu.memory_space<vmem>>, vector<1x1x8x32xbf16>
    %262 = vector.shape_cast %261 : vector<1x1x8x32xbf16> to vector<8x32xbf16>
    %c1_189 = arith.constant 1 : index
    %c0_190 = arith.constant 0 : index
    %c0_191 = arith.constant 0 : index
    %c0_192 = arith.constant 0 : index
    %263 = vector.load %arg4[%c1_189, %c0_190, %c0_191, %c0_192] : memref<2x4x1x8xf32, #tpu.memory_space<vmem>>, vector<1x1x1x8xf32>
    %264 = vector.shape_cast %263 : vector<1x1x1x8xf32> to vector<1x8xf32>
    %cst_193 = arith.constant dense<0.000000e+00> : vector<16x8xf32>
    %265 = tpu.matmul %260, %262, %cst_193 {dimension_numbers = #tpu.dot_dimension_numbers<[1], [1], [0], [0], [0, 0, 1, 0], [], []>} : vector<16x32xbf16>, vector<8x32xbf16>, vector<16x8xf32> -> vector<16x8xf32>
    %266 = vector.broadcast %264 : vector<1x8xf32> to vector<16x8xf32>
    %267 = arith.addf %265, %266 : vector<16x8xf32>
    %c1_194 = arith.constant 1 : index
    %c0_195 = arith.constant 0 : index
    %c0_196 = arith.constant 0 : index
    %c0_197 = arith.constant 0 : index
    %268 = vector.load %arg5[%c1_194, %c0_195, %c0_196, %c0_197] : memref<2x4x8x32xbf16, #tpu.memory_space<vmem>>, vector<1x1x8x32xbf16>
    %269 = vector.shape_cast %268 : vector<1x1x8x32xbf16> to vector<8x32xbf16>
    %c1_198 = arith.constant 1 : index
    %c0_199 = arith.constant 0 : index
    %c0_200 = arith.constant 0 : index
    %c0_201 = arith.constant 0 : index
    %270 = vector.load %arg6[%c1_198, %c0_199, %c0_200, %c0_201] : memref<2x4x1x8xf32, #tpu.memory_space<vmem>>, vector<1x1x1x8xf32>
    %271 = vector.shape_cast %270 : vector<1x1x1x8xf32> to vector<1x8xf32>
    %cst_202 = arith.constant dense<0.000000e+00> : vector<16x8xf32>
    %272 = tpu.matmul %260, %269, %cst_202 {dimension_numbers = #tpu.dot_dimension_numbers<[1], [1], [0], [0], [0, 0, 1, 0], [], []>} : vector<16x32xbf16>, vector<8x32xbf16>, vector<16x8xf32> -> vector<16x8xf32>
    %273 = vector.broadcast %271 : vector<1x8xf32> to vector<16x8xf32>
    %274 = arith.addf %272, %273 : vector<16x8xf32>
    %c1_203 = arith.constant 1 : index
    %c0_204 = arith.constant 0 : index
    %c0_205 = arith.constant 0 : index
    %c0_206 = arith.constant 0 : index
    %275 = vector.load %arg7[%c1_203, %c0_204, %c0_205, %c0_206] : memref<2x4x8x32xbf16, #tpu.memory_space<vmem>>, vector<1x1x8x32xbf16>
    %276 = vector.shape_cast %275 : vector<1x1x8x32xbf16> to vector<8x32xbf16>
    %c1_207 = arith.constant 1 : index
    %c0_208 = arith.constant 0 : index
    %c0_209 = arith.constant 0 : index
    %c0_210 = arith.constant 0 : index
    %277 = vector.load %arg8[%c1_207, %c0_208, %c0_209, %c0_210] : memref<2x4x1x8xf32, #tpu.memory_space<vmem>>, vector<1x1x1x8xf32>
    %278 = vector.shape_cast %277 : vector<1x1x1x8xf32> to vector<1x8xf32>
    %cst_211 = arith.constant dense<0.000000e+00> : vector<16x8xf32>
    %279 = tpu.matmul %260, %276, %cst_211 {dimension_numbers = #tpu.dot_dimension_numbers<[1], [1], [0], [0], [0, 0, 1, 0], [], []>} : vector<16x32xbf16>, vector<8x32xbf16>, vector<16x8xf32> -> vector<16x8xf32>
    %280 = vector.broadcast %278 : vector<1x8xf32> to vector<16x8xf32>
    %281 = arith.addf %279, %280 : vector<16x8xf32>
    %282 = vector.shape_cast %267 : vector<16x8xf32> to vector<2x8x8xf32>
    %283 = vector.shape_cast %274 : vector<16x8xf32> to vector<2x8x8xf32>
    %284 = vector.shape_cast %281 : vector<16x8xf32> to vector<2x8x8xf32>
    %c1_212 = arith.constant 1 : index
    %c1_213 = arith.constant 1 : index
    %c0_214 = arith.constant 0 : index
    %c0_215 = arith.constant 0 : index
    %285 = vector.load %arg3[%c1_212, %c1_213, %c0_214, %c0_215] : memref<2x4x8x32xbf16, #tpu.memory_space<vmem>>, vector<1x1x8x32xbf16>
    %286 = vector.shape_cast %285 : vector<1x1x8x32xbf16> to vector<8x32xbf16>
    %c1_216 = arith.constant 1 : index
    %c1_217 = arith.constant 1 : index
    %c0_218 = arith.constant 0 : index
    %c0_219 = arith.constant 0 : index
    %287 = vector.load %arg4[%c1_216, %c1_217, %c0_218, %c0_219] : memref<2x4x1x8xf32, #tpu.memory_space<vmem>>, vector<1x1x1x8xf32>
    %288 = vector.shape_cast %287 : vector<1x1x1x8xf32> to vector<1x8xf32>
    %cst_220 = arith.constant dense<0.000000e+00> : vector<16x8xf32>
    %289 = tpu.matmul %260, %286, %cst_220 {dimension_numbers = #tpu.dot_dimension_numbers<[1], [1], [0], [0], [0, 0, 1, 0], [], []>} : vector<16x32xbf16>, vector<8x32xbf16>, vector<16x8xf32> -> vector<16x8xf32>
    %290 = vector.broadcast %288 : vector<1x8xf32> to vector<16x8xf32>
    %291 = arith.addf %289, %290 : vector<16x8xf32>
    %c1_221 = arith.constant 1 : index
    %c1_222 = arith.constant 1 : index
    %c0_223 = arith.constant 0 : index
    %c0_224 = arith.constant 0 : index
    %292 = vector.load %arg5[%c1_221, %c1_222, %c0_223, %c0_224] : memref<2x4x8x32xbf16, #tpu.memory_space<vmem>>, vector<1x1x8x32xbf16>
    %293 = vector.shape_cast %292 : vector<1x1x8x32xbf16> to vector<8x32xbf16>
    %c1_225 = arith.constant 1 : index
    %c1_226 = arith.constant 1 : index
    %c0_227 = arith.constant 0 : index
    %c0_228 = arith.constant 0 : index
    %294 = vector.load %arg6[%c1_225, %c1_226, %c0_227, %c0_228] : memref<2x4x1x8xf32, #tpu.memory_space<vmem>>, vector<1x1x1x8xf32>
    %295 = vector.shape_cast %294 : vector<1x1x1x8xf32> to vector<1x8xf32>
    %cst_229 = arith.constant dense<0.000000e+00> : vector<16x8xf32>
    %296 = tpu.matmul %260, %293, %cst_229 {dimension_numbers = #tpu.dot_dimension_numbers<[1], [1], [0], [0], [0, 0, 1, 0], [], []>} : vector<16x32xbf16>, vector<8x32xbf16>, vector<16x8xf32> -> vector<16x8xf32>
    %297 = vector.broadcast %295 : vector<1x8xf32> to vector<16x8xf32>
    %298 = arith.addf %296, %297 : vector<16x8xf32>
    %c1_230 = arith.constant 1 : index
    %c1_231 = arith.constant 1 : index
    %c0_232 = arith.constant 0 : index
    %c0_233 = arith.constant 0 : index
    %299 = vector.load %arg7[%c1_230, %c1_231, %c0_232, %c0_233] : memref<2x4x8x32xbf16, #tpu.memory_space<vmem>>, vector<1x1x8x32xbf16>
    %300 = vector.shape_cast %299 : vector<1x1x8x32xbf16> to vector<8x32xbf16>
    %c1_234 = arith.constant 1 : index
    %c1_235 = arith.constant 1 : index
    %c0_236 = arith.constant 0 : index
    %c0_237 = arith.constant 0 : index
    %301 = vector.load %arg8[%c1_234, %c1_235, %c0_236, %c0_237] : memref<2x4x1x8xf32, #tpu.memory_space<vmem>>, vector<1x1x1x8xf32>
    %302 = vector.shape_cast %301 : vector<1x1x1x8xf32> to vector<1x8xf32>
    %cst_238 = arith.constant dense<0.000000e+00> : vector<16x8xf32>
    %303 = tpu.matmul %260, %300, %cst_238 {dimension_numbers = #tpu.dot_dimension_numbers<[1], [1], [0], [0], [0, 0, 1, 0], [], []>} : vector<16x32xbf16>, vector<8x32xbf16>, vector<16x8xf32> -> vector<16x8xf32>
    %304 = vector.broadcast %302 : vector<1x8xf32> to vector<16x8xf32>
    %305 = arith.addf %303, %304 : vector<16x8xf32>
    %306 = vector.shape_cast %291 : vector<16x8xf32> to vector<2x8x8xf32>
    %307 = vector.shape_cast %298 : vector<16x8xf32> to vector<2x8x8xf32>
    %308 = vector.shape_cast %305 : vector<16x8xf32> to vector<2x8x8xf32>
    %c1_239 = arith.constant 1 : index
    %c2_240 = arith.constant 2 : index
    %c0_241 = arith.constant 0 : index
    %c0_242 = arith.constant 0 : index
    %309 = vector.load %arg3[%c1_239, %c2_240, %c0_241, %c0_242] : memref<2x4x8x32xbf16, #tpu.memory_space<vmem>>, vector<1x1x8x32xbf16>
    %310 = vector.shape_cast %309 : vector<1x1x8x32xbf16> to vector<8x32xbf16>
    %c1_243 = arith.constant 1 : index
    %c2_244 = arith.constant 2 : index
    %c0_245 = arith.constant 0 : index
    %c0_246 = arith.constant 0 : index
    %311 = vector.load %arg4[%c1_243, %c2_244, %c0_245, %c0_246] : memref<2x4x1x8xf32, #tpu.memory_space<vmem>>, vector<1x1x1x8xf32>
    %312 = vector.shape_cast %311 : vector<1x1x1x8xf32> to vector<1x8xf32>
    %cst_247 = arith.constant dense<0.000000e+00> : vector<16x8xf32>
    %313 = tpu.matmul %260, %310, %cst_247 {dimension_numbers = #tpu.dot_dimension_numbers<[1], [1], [0], [0], [0, 0, 1, 0], [], []>} : vector<16x32xbf16>, vector<8x32xbf16>, vector<16x8xf32> -> vector<16x8xf32>
    %314 = vector.broadcast %312 : vector<1x8xf32> to vector<16x8xf32>
    %315 = arith.addf %313, %314 : vector<16x8xf32>
    %c1_248 = arith.constant 1 : index
    %c2_249 = arith.constant 2 : index
    %c0_250 = arith.constant 0 : index
    %c0_251 = arith.constant 0 : index
    %316 = vector.load %arg5[%c1_248, %c2_249, %c0_250, %c0_251] : memref<2x4x8x32xbf16, #tpu.memory_space<vmem>>, vector<1x1x8x32xbf16>
    %317 = vector.shape_cast %316 : vector<1x1x8x32xbf16> to vector<8x32xbf16>
    %c1_252 = arith.constant 1 : index
    %c2_253 = arith.constant 2 : index
    %c0_254 = arith.constant 0 : index
    %c0_255 = arith.constant 0 : index
    %318 = vector.load %arg6[%c1_252, %c2_253, %c0_254, %c0_255] : memref<2x4x1x8xf32, #tpu.memory_space<vmem>>, vector<1x1x1x8xf32>
    %319 = vector.shape_cast %318 : vector<1x1x1x8xf32> to vector<1x8xf32>
    %cst_256 = arith.constant dense<0.000000e+00> : vector<16x8xf32>
    %320 = tpu.matmul %260, %317, %cst_256 {dimension_numbers = #tpu.dot_dimension_numbers<[1], [1], [0], [0], [0, 0, 1, 0], [], []>} : vector<16x32xbf16>, vector<8x32xbf16>, vector<16x8xf32> -> vector<16x8xf32>
    %321 = vector.broadcast %319 : vector<1x8xf32> to vector<16x8xf32>
    %322 = arith.addf %320, %321 : vector<16x8xf32>
    %c1_257 = arith.constant 1 : index
    %c2_258 = arith.constant 2 : index
    %c0_259 = arith.constant 0 : index
    %c0_260 = arith.constant 0 : index
    %323 = vector.load %arg7[%c1_257, %c2_258, %c0_259, %c0_260] : memref<2x4x8x32xbf16, #tpu.memory_space<vmem>>, vector<1x1x8x32xbf16>
    %324 = vector.shape_cast %323 : vector<1x1x8x32xbf16> to vector<8x32xbf16>
    %c1_261 = arith.constant 1 : index
    %c2_262 = arith.constant 2 : index
    %c0_263 = arith.constant 0 : index
    %c0_264 = arith.constant 0 : index
    %325 = vector.load %arg8[%c1_261, %c2_262, %c0_263, %c0_264] : memref<2x4x1x8xf32, #tpu.memory_space<vmem>>, vector<1x1x1x8xf32>
    %326 = vector.shape_cast %325 : vector<1x1x1x8xf32> to vector<1x8xf32>
    %cst_265 = arith.constant dense<0.000000e+00> : vector<16x8xf32>
    %327 = tpu.matmul %260, %324, %cst_265 {dimension_numbers = #tpu.dot_dimension_numbers<[1], [1], [0], [0], [0, 0, 1, 0], [], []>} : vector<16x32xbf16>, vector<8x32xbf16>, vector<16x8xf32> -> vector<16x8xf32>
    %328 = vector.broadcast %326 : vector<1x8xf32> to vector<16x8xf32>
    %329 = arith.addf %327, %328 : vector<16x8xf32>
    %330 = vector.shape_cast %315 : vector<16x8xf32> to vector<2x8x8xf32>
    %331 = vector.shape_cast %322 : vector<16x8xf32> to vector<2x8x8xf32>
    %332 = vector.shape_cast %329 : vector<16x8xf32> to vector<2x8x8xf32>
    %c1_266 = arith.constant 1 : index
    %c3_267 = arith.constant 3 : index
    %c0_268 = arith.constant 0 : index
    %c0_269 = arith.constant 0 : index
    %333 = vector.load %arg3[%c1_266, %c3_267, %c0_268, %c0_269] : memref<2x4x8x32xbf16, #tpu.memory_space<vmem>>, vector<1x1x8x32xbf16>
    %334 = vector.shape_cast %333 : vector<1x1x8x32xbf16> to vector<8x32xbf16>
    %c1_270 = arith.constant 1 : index
    %c3_271 = arith.constant 3 : index
    %c0_272 = arith.constant 0 : index
    %c0_273 = arith.constant 0 : index
    %335 = vector.load %arg4[%c1_270, %c3_271, %c0_272, %c0_273] : memref<2x4x1x8xf32, #tpu.memory_space<vmem>>, vector<1x1x1x8xf32>
    %336 = vector.shape_cast %335 : vector<1x1x1x8xf32> to vector<1x8xf32>
    %cst_274 = arith.constant dense<0.000000e+00> : vector<16x8xf32>
    %337 = tpu.matmul %260, %334, %cst_274 {dimension_numbers = #tpu.dot_dimension_numbers<[1], [1], [0], [0], [0, 0, 1, 0], [], []>} : vector<16x32xbf16>, vector<8x32xbf16>, vector<16x8xf32> -> vector<16x8xf32>
    %338 = vector.broadcast %336 : vector<1x8xf32> to vector<16x8xf32>
    %339 = arith.addf %337, %338 : vector<16x8xf32>
    %c1_275 = arith.constant 1 : index
    %c3_276 = arith.constant 3 : index
    %c0_277 = arith.constant 0 : index
    %c0_278 = arith.constant 0 : index
    %340 = vector.load %arg5[%c1_275, %c3_276, %c0_277, %c0_278] : memref<2x4x8x32xbf16, #tpu.memory_space<vmem>>, vector<1x1x8x32xbf16>
    %341 = vector.shape_cast %340 : vector<1x1x8x32xbf16> to vector<8x32xbf16>
    %c1_279 = arith.constant 1 : index
    %c3_280 = arith.constant 3 : index
    %c0_281 = arith.constant 0 : index
    %c0_282 = arith.constant 0 : index
    %342 = vector.load %arg6[%c1_279, %c3_280, %c0_281, %c0_282] : memref<2x4x1x8xf32, #tpu.memory_space<vmem>>, vector<1x1x1x8xf32>
    %343 = vector.shape_cast %342 : vector<1x1x1x8xf32> to vector<1x8xf32>
    %cst_283 = arith.constant dense<0.000000e+00> : vector<16x8xf32>
    %344 = tpu.matmul %260, %341, %cst_283 {dimension_numbers = #tpu.dot_dimension_numbers<[1], [1], [0], [0], [0, 0, 1, 0], [], []>} : vector<16x32xbf16>, vector<8x32xbf16>, vector<16x8xf32> -> vector<16x8xf32>
    %345 = vector.broadcast %343 : vector<1x8xf32> to vector<16x8xf32>
    %346 = arith.addf %344, %345 : vector<16x8xf32>
    %c1_284 = arith.constant 1 : index
    %c3_285 = arith.constant 3 : index
    %c0_286 = arith.constant 0 : index
    %c0_287 = arith.constant 0 : index
    %347 = vector.load %arg7[%c1_284, %c3_285, %c0_286, %c0_287] : memref<2x4x8x32xbf16, #tpu.memory_space<vmem>>, vector<1x1x8x32xbf16>
    %348 = vector.shape_cast %347 : vector<1x1x8x32xbf16> to vector<8x32xbf16>
    %c1_288 = arith.constant 1 : index
    %c3_289 = arith.constant 3 : index
    %c0_290 = arith.constant 0 : index
    %c0_291 = arith.constant 0 : index
    %349 = vector.load %arg8[%c1_288, %c3_289, %c0_290, %c0_291] : memref<2x4x1x8xf32, #tpu.memory_space<vmem>>, vector<1x1x1x8xf32>
    %350 = vector.shape_cast %349 : vector<1x1x1x8xf32> to vector<1x8xf32>
    %cst_292 = arith.constant dense<0.000000e+00> : vector<16x8xf32>
    %351 = tpu.matmul %260, %348, %cst_292 {dimension_numbers = #tpu.dot_dimension_numbers<[1], [1], [0], [0], [0, 0, 1, 0], [], []>} : vector<16x32xbf16>, vector<8x32xbf16>, vector<16x8xf32> -> vector<16x8xf32>
    %352 = vector.broadcast %350 : vector<1x8xf32> to vector<16x8xf32>
    %353 = arith.addf %351, %352 : vector<16x8xf32>
    %354 = vector.shape_cast %339 : vector<16x8xf32> to vector<2x8x8xf32>
    %355 = vector.shape_cast %346 : vector<16x8xf32> to vector<2x8x8xf32>
    %356 = vector.shape_cast %353 : vector<16x8xf32> to vector<2x8x8xf32>
    %357 = tpu.concatenate %282, %306, %330, %354 in 0 : vector<2x8x8xf32>, vector<2x8x8xf32>, vector<2x8x8xf32>, vector<2x8x8xf32> -> vector<8x8x8xf32>
    %358 = arith.truncf %357 : vector<8x8x8xf32> to vector<8x8x8xbf16>
    %359 = tpu.concatenate %283, %307, %331, %355 in 0 : vector<2x8x8xf32>, vector<2x8x8xf32>, vector<2x8x8xf32>, vector<2x8x8xf32> -> vector<8x8x8xf32>
    %360 = arith.truncf %359 : vector<8x8x8xf32> to vector<8x8x8xbf16>
    %361 = tpu.concatenate %284, %308, %332, %356 in 0 : vector<2x8x8xf32>, vector<2x8x8xf32>, vector<2x8x8xf32>, vector<2x8x8xf32> -> vector<8x8x8xf32>
    %362 = arith.truncf %361 : vector<8x8x8xf32> to vector<8x8x8xbf16>
    "tpu.trace_start"() <{level = 10 : i32, message = "ztd,zsd->zts"}> : () -> ()
    %cst_293 = arith.constant dense<0.000000e+00> : vector<8x8x8xf32>
    %363 = tpu.matmul %358, %360, %cst_293 {dimension_numbers = #tpu.dot_dimension_numbers<[2], [2], [1], [1], [0, 0, 0, 1, 1, 1], [0], [0]>} : vector<8x8x8xbf16>, vector<8x8x8xbf16>, vector<8x8x8xf32> -> vector<8x8x8xf32>
    "tpu.trace_stop"() : () -> ()
    %364 = vector.broadcast %7 : vector<1x8x8xf32> to vector<8x8x8xf32>
    %365 = arith.addf %363, %364 : vector<8x8x8xf32>
    %cst_294 = arith.constant dense<0xFF800000> : vector<8x8xf32>
    %366 = vector.multi_reduction <maximumf>, %365, %cst_294 [2] : vector<8x8x8xf32> to vector<8x8xf32>
    %367 = vector.shape_cast %366 : vector<8x8xf32> to vector<8x8x1xf32>
    %368 = vector.broadcast %367 : vector<8x8x1xf32> to vector<8x8x8xf32>
    %369 = arith.subf %365, %368 : vector<8x8x8xf32>
    %370 = math.exp %369 : vector<8x8x8xf32>
    %cst_295 = arith.constant dense<0.000000e+00> : vector<8x8xf32>
    %371 = vector.multi_reduction <add>, %370, %cst_295 [2] : vector<8x8x8xf32> to vector<8x8xf32>
    %372 = vector.shape_cast %371 : vector<8x8xf32> to vector<8x8x1xf32>
    %373 = tpu.reciprocal %372 {approx = true} : vector<8x8x1xf32> -> vector<8x8x1xf32>
    %374 = vector.broadcast %373 : vector<8x8x1xf32> to vector<8x8x8xf32>
    %375 = arith.mulf %370, %374 : vector<8x8x8xf32>
    %376 = arith.truncf %375 : vector<8x8x8xf32> to vector<8x8x8xbf16>
    "tpu.trace_start"() <{level = 10 : i32, message = "zts,zsd->ztd"}> : () -> ()
    %cst_296 = arith.constant dense<0.000000e+00> : vector<8x8x8xf32>
    %377 = tpu.matmul %376, %362, %cst_296 {dimension_numbers = #tpu.dot_dimension_numbers<[2], [1], [1], [2], [0, 0, 0, 1, 1, 2], [0], [0]>} : vector<8x8x8xbf16>, vector<8x8x8xbf16>, vector<8x8x8xf32> -> vector<8x8x8xf32>
    "tpu.trace_stop"() : () -> ()
    %378 = vector.extract_strided_slice %377 {offsets = [0, 0, 0], sizes = [2, 8, 8], strides = [1, 1, 1]} : vector<8x8x8xf32> to vector<2x8x8xf32>
    %379 = vector.shape_cast %378 : vector<2x8x8xf32> to vector<16x8xf32>
    %380 = arith.truncf %379 : vector<16x8xf32> to vector<16x8xbf16>
    %c1_297 = arith.constant 1 : index
    %c0_298 = arith.constant 0 : index
    %c0_299 = arith.constant 0 : index
    %c0_300 = arith.constant 0 : index
    %381 = vector.load %arg9[%c1_297, %c0_298, %c0_299, %c0_300] : memref<2x4x32x8xbf16, #tpu.memory_space<vmem>>, vector<1x1x32x8xbf16>
    %382 = vector.shape_cast %381 : vector<1x1x32x8xbf16> to vector<32x8xbf16>
    %cst_301 = arith.constant dense<0.000000e+00> : vector<16x32xf32>
    %383 = tpu.matmul %380, %382, %cst_301 {dimension_numbers = #tpu.dot_dimension_numbers<[1], [1], [0], [0], [0, 0, 1, 0], [], []>} : vector<16x8xbf16>, vector<32x8xbf16>, vector<16x32xf32> -> vector<16x32xf32>
    %384 = vector.extract_strided_slice %377 {offsets = [2, 0, 0], sizes = [2, 8, 8], strides = [1, 1, 1]} : vector<8x8x8xf32> to vector<2x8x8xf32>
    %385 = vector.shape_cast %384 : vector<2x8x8xf32> to vector<16x8xf32>
    %386 = arith.truncf %385 : vector<16x8xf32> to vector<16x8xbf16>
    %c1_302 = arith.constant 1 : index
    %c1_303 = arith.constant 1 : index
    %c0_304 = arith.constant 0 : index
    %c0_305 = arith.constant 0 : index
    %387 = vector.load %arg9[%c1_302, %c1_303, %c0_304, %c0_305] : memref<2x4x32x8xbf16, #tpu.memory_space<vmem>>, vector<1x1x32x8xbf16>
    %388 = vector.shape_cast %387 : vector<1x1x32x8xbf16> to vector<32x8xbf16>
    %cst_306 = arith.constant dense<0.000000e+00> : vector<16x32xf32>
    %389 = tpu.matmul %386, %388, %cst_306 {dimension_numbers = #tpu.dot_dimension_numbers<[1], [1], [0], [0], [0, 0, 1, 0], [], []>} : vector<16x8xbf16>, vector<32x8xbf16>, vector<16x32xf32> -> vector<16x32xf32>
    %390 = arith.addf %383, %389 : vector<16x32xf32>
    %391 = vector.extract_strided_slice %377 {offsets = [4, 0, 0], sizes = [2, 8, 8], strides = [1, 1, 1]} : vector<8x8x8xf32> to vector<2x8x8xf32>
    %392 = vector.shape_cast %391 : vector<2x8x8xf32> to vector<16x8xf32>
    %393 = arith.truncf %392 : vector<16x8xf32> to vector<16x8xbf16>
    %c1_307 = arith.constant 1 : index
    %c2_308 = arith.constant 2 : index
    %c0_309 = arith.constant 0 : index
    %c0_310 = arith.constant 0 : index
    %394 = vector.load %arg9[%c1_307, %c2_308, %c0_309, %c0_310] : memref<2x4x32x8xbf16, #tpu.memory_space<vmem>>, vector<1x1x32x8xbf16>
    %395 = vector.shape_cast %394 : vector<1x1x32x8xbf16> to vector<32x8xbf16>
    %cst_311 = arith.constant dense<0.000000e+00> : vector<16x32xf32>
    %396 = tpu.matmul %393, %395, %cst_311 {dimension_numbers = #tpu.dot_dimension_numbers<[1], [1], [0], [0], [0, 0, 1, 0], [], []>} : vector<16x8xbf16>, vector<32x8xbf16>, vector<16x32xf32> -> vector<16x32xf32>
    %397 = arith.addf %390, %396 : vector<16x32xf32>
    %398 = vector.extract_strided_slice %377 {offsets = [6, 0, 0], sizes = [2, 8, 8], strides = [1, 1, 1]} : vector<8x8x8xf32> to vector<2x8x8xf32>
    %399 = vector.shape_cast %398 : vector<2x8x8xf32> to vector<16x8xf32>
    %400 = arith.truncf %399 : vector<16x8xf32> to vector<16x8xbf16>
    %c1_312 = arith.constant 1 : index
    %c3_313 = arith.constant 3 : index
    %c0_314 = arith.constant 0 : index
    %c0_315 = arith.constant 0 : index
    %401 = vector.load %arg9[%c1_312, %c3_313, %c0_314, %c0_315] : memref<2x4x32x8xbf16, #tpu.memory_space<vmem>>, vector<1x1x32x8xbf16>
    %402 = vector.shape_cast %401 : vector<1x1x32x8xbf16> to vector<32x8xbf16>
    %cst_316 = arith.constant dense<0.000000e+00> : vector<16x32xf32>
    %403 = tpu.matmul %400, %402, %cst_316 {dimension_numbers = #tpu.dot_dimension_numbers<[1], [1], [0], [0], [0, 0, 1, 0], [], []>} : vector<16x8xbf16>, vector<32x8xbf16>, vector<16x32xf32> -> vector<16x32xf32>
    %404 = arith.addf %397, %403 : vector<16x32xf32>
    %405 = arith.addf %235, %404 : vector<16x32xf32>
    %c1_317 = arith.constant 1 : index
    %c0_318 = arith.constant 0 : index
    %c0_319 = arith.constant 0 : index
    %406 = vector.load %arg10[%c1_317, %c0_318, %c0_319] : memref<2x1x32xf32, #tpu.memory_space<vmem>>, vector<1x1x32xf32>
    %407 = vector.shape_cast %406 : vector<1x1x32xf32> to vector<1x32xf32>
    %408 = vector.broadcast %407 : vector<1x32xf32> to vector<16x32xf32>
    %409 = arith.addf %405, %408 : vector<16x32xf32>
    %c1_320 = arith.constant 1 : index
    %c0_321 = arith.constant 0 : index
    %c0_322 = arith.constant 0 : index
    %410 = vector.load %arg11[%c1_320, %c0_321, %c0_322] : memref<2x1x32xf32, #tpu.memory_space<vmem>>, vector<1x1x32xf32>
    %411 = vector.shape_cast %410 : vector<1x1x32xf32> to vector<1x32xf32>
    %c1_323 = arith.constant 1 : index
    %c0_324 = arith.constant 0 : index
    %c0_325 = arith.constant 0 : index
    %412 = vector.load %arg12[%c1_323, %c0_324, %c0_325] : memref<2x1x32xf32, #tpu.memory_space<vmem>>, vector<1x1x32xf32>
    %413 = vector.shape_cast %412 : vector<1x1x32xf32> to vector<1x32xf32>
    %cst_326 = arith.constant dense<0.000000e+00> : vector<16xf32>
    %414 = vector.multi_reduction <add>, %409, %cst_326 [1] : vector<16x32xf32> to vector<16xf32>
    %415 = vector.shape_cast %414 : vector<16xf32> to vector<16x1xf32>
    %cst_327 = arith.constant 3.200000e+01 : f32
    %416 = vector.broadcast %cst_327 : f32 to vector<16x1xf32>
    %417 = arith.divf %415, %416 : vector<16x1xf32>
    %418 = vector.broadcast %417 : vector<16x1xf32> to vector<16x32xf32>
    %419 = arith.subf %409, %418 : vector<16x32xf32>
    %420 = arith.mulf %419, %419 : vector<16x32xf32>
    %cst_328 = arith.constant dense<0.000000e+00> : vector<16xf32>
    %421 = vector.multi_reduction <add>, %420, %cst_328 [1] : vector<16x32xf32> to vector<16xf32>
    %422 = vector.shape_cast %421 : vector<16xf32> to vector<16x1xf32>
    %cst_329 = arith.constant 3.200000e+01 : f32
    %423 = vector.broadcast %cst_329 : f32 to vector<16x1xf32>
    %424 = arith.divf %422, %423 : vector<16x1xf32>
    %cst_330 = arith.constant 9.99999974E-6 : f32
    %425 = vector.broadcast %cst_330 : f32 to vector<16x1xf32>
    %426 = arith.addf %424, %425 : vector<16x1xf32>
    %427 = math.rsqrt %426 : vector<16x1xf32>
    %428 = vector.broadcast %427 : vector<16x1xf32> to vector<16x32xf32>
    %429 = arith.mulf %419, %428 : vector<16x32xf32>
    %430 = vector.broadcast %411 : vector<1x32xf32> to vector<16x32xf32>
    %431 = arith.mulf %429, %430 : vector<16x32xf32>
    %432 = vector.broadcast %413 : vector<1x32xf32> to vector<16x32xf32>
    %433 = arith.addf %431, %432 : vector<16x32xf32>
    %434 = arith.truncf %433 : vector<16x32xf32> to vector<16x32xbf16>
    %c1_331 = arith.constant 1 : index
    %c0_332 = arith.constant 0 : index
    %c0_333 = arith.constant 0 : index
    %435 = vector.load %arg13[%c1_331, %c0_332, %c0_333] : memref<2x128x32xbf16, #tpu.memory_space<vmem>>, vector<1x128x32xbf16>
    %436 = vector.shape_cast %435 : vector<1x128x32xbf16> to vector<128x32xbf16>
    %c1_334 = arith.constant 1 : index
    %c0_335 = arith.constant 0 : index
    %c0_336 = arith.constant 0 : index
    %437 = vector.load %arg14[%c1_334, %c0_335, %c0_336] : memref<2x1x128xf32, #tpu.memory_space<vmem>>, vector<1x1x128xf32>
    %438 = vector.shape_cast %437 : vector<1x1x128xf32> to vector<1x128xf32>
    %cst_337 = arith.constant dense<0.000000e+00> : vector<16x128xf32>
    %439 = tpu.matmul %434, %436, %cst_337 {dimension_numbers = #tpu.dot_dimension_numbers<[1], [1], [0], [0], [0, 0, 1, 0], [], []>} : vector<16x32xbf16>, vector<128x32xbf16>, vector<16x128xf32> -> vector<16x128xf32>
    %440 = vector.broadcast %438 : vector<1x128xf32> to vector<16x128xf32>
    %441 = arith.addf %439, %440 : vector<16x128xf32>
    %cst_338 = arith.constant 5.000000e-01 : f32
    %442 = vector.broadcast %cst_338 : f32 to vector<16x128xf32>
    %443 = arith.mulf %442, %441 : vector<16x128xf32>
    %cst_339 = arith.constant 4.471500e-02 : f32
    %444 = vector.broadcast %cst_339 : f32 to vector<16x128xf32>
    %445 = arith.mulf %444, %441 : vector<16x128xf32>
    %446 = arith.mulf %445, %441 : vector<16x128xf32>
    %447 = arith.mulf %446, %441 : vector<16x128xf32>
    %448 = arith.addf %441, %447 : vector<16x128xf32>
    %cst_340 = arith.constant 0.797884583 : f32
    %449 = vector.broadcast %cst_340 : f32 to vector<16x128xf32>
    %450 = arith.mulf %449, %448 : vector<16x128xf32>
    %451 = math.tanh %450 : vector<16x128xf32>
    %cst_341 = arith.constant 1.000000e+00 : f32
    %452 = vector.broadcast %cst_341 : f32 to vector<16x128xf32>
    %453 = arith.addf %452, %451 : vector<16x128xf32>
    %454 = arith.mulf %443, %453 : vector<16x128xf32>
    %455 = arith.truncf %454 : vector<16x128xf32> to vector<16x128xbf16>
    %c1_342 = arith.constant 1 : index
    %c0_343 = arith.constant 0 : index
    %c0_344 = arith.constant 0 : index
    %456 = vector.load %arg15[%c1_342, %c0_343, %c0_344] : memref<2x32x128xbf16, #tpu.memory_space<vmem>>, vector<1x32x128xbf16>
    %457 = vector.shape_cast %456 : vector<1x32x128xbf16> to vector<32x128xbf16>
    %c1_345 = arith.constant 1 : index
    %c0_346 = arith.constant 0 : index
    %c0_347 = arith.constant 0 : index
    %458 = vector.load %arg16[%c1_345, %c0_346, %c0_347] : memref<2x1x32xf32, #tpu.memory_space<vmem>>, vector<1x1x32xf32>
    %459 = vector.shape_cast %458 : vector<1x1x32xf32> to vector<1x32xf32>
    %cst_348 = arith.constant dense<0.000000e+00> : vector<16x32xf32>
    %460 = tpu.matmul %455, %457, %cst_348 {dimension_numbers = #tpu.dot_dimension_numbers<[1], [1], [0], [0], [0, 0, 1, 0], [], []>} : vector<16x128xbf16>, vector<32x128xbf16>, vector<16x32xf32> -> vector<16x32xf32>
    %461 = vector.broadcast %459 : vector<1x32xf32> to vector<16x32xf32>
    %462 = arith.addf %460, %461 : vector<16x32xf32>
    %463 = arith.addf %409, %462 : vector<16x32xf32>
    %c0_349 = arith.constant 0 : index
    %c0_350 = arith.constant 0 : index
    %464 = vector.load %arg17[%c0_349, %c0_350] : memref<1x32xf32, #tpu.memory_space<vmem>>, vector<1x32xf32>
    %c0_351 = arith.constant 0 : index
    %c0_352 = arith.constant 0 : index
    %465 = vector.load %arg18[%c0_351, %c0_352] : memref<1x32xf32, #tpu.memory_space<vmem>>, vector<1x32xf32>
    %cst_353 = arith.constant dense<0.000000e+00> : vector<16xf32>
    %466 = vector.multi_reduction <add>, %463, %cst_353 [1] : vector<16x32xf32> to vector<16xf32>
    %467 = vector.shape_cast %466 : vector<16xf32> to vector<16x1xf32>
    %cst_354 = arith.constant 3.200000e+01 : f32
    %468 = vector.broadcast %cst_354 : f32 to vector<16x1xf32>
    %469 = arith.divf %467, %468 : vector<16x1xf32>
    %470 = vector.broadcast %469 : vector<16x1xf32> to vector<16x32xf32>
    %471 = arith.subf %463, %470 : vector<16x32xf32>
    %472 = arith.mulf %471, %471 : vector<16x32xf32>
    %cst_355 = arith.constant dense<0.000000e+00> : vector<16xf32>
    %473 = vector.multi_reduction <add>, %472, %cst_355 [1] : vector<16x32xf32> to vector<16xf32>
    %474 = vector.shape_cast %473 : vector<16xf32> to vector<16x1xf32>
    %cst_356 = arith.constant 3.200000e+01 : f32
    %475 = vector.broadcast %cst_356 : f32 to vector<16x1xf32>
    %476 = arith.divf %474, %475 : vector<16x1xf32>
    %cst_357 = arith.constant 9.99999974E-6 : f32
    %477 = vector.broadcast %cst_357 : f32 to vector<16x1xf32>
    %478 = arith.addf %476, %477 : vector<16x1xf32>
    %479 = math.rsqrt %478 : vector<16x1xf32>
    %480 = vector.broadcast %479 : vector<16x1xf32> to vector<16x32xf32>
    %481 = arith.mulf %471, %480 : vector<16x32xf32>
    %482 = vector.broadcast %464 : vector<1x32xf32> to vector<16x32xf32>
    %483 = arith.mulf %481, %482 : vector<16x32xf32>
    %484 = vector.broadcast %465 : vector<1x32xf32> to vector<16x32xf32>
    %485 = arith.addf %483, %484 : vector<16x32xf32>
    %486 = arith.truncf %485 : vector<16x32xf32> to vector<16x32xbf16>
    %c0_358 = arith.constant 0 : index
    %c0_359 = arith.constant 0 : index
    %487 = vector.load %arg19[%c0_358, %c0_359] : memref<128x32xbf16, #tpu.memory_space<vmem>>, vector<128x32xbf16>
    %cst_360 = arith.constant dense<0.000000e+00> : vector<16x128xf32>
    %488 = tpu.matmul %486, %487, %cst_360 {dimension_numbers = #tpu.dot_dimension_numbers<[1], [1], [0], [0], [0, 0, 1, 0], [], []>} : vector<16x32xbf16>, vector<128x32xbf16>, vector<16x128xf32> -> vector<16x128xf32>
    %c0_361 = arith.constant 0 : index
    %c0_362 = arith.constant 0 : index
    %489 = vector.load %arg20[%c0_361, %c0_362] : memref<16x128xf32, #tpu.memory_space<vmem>>, vector<16x128xf32>
    tpu.vector_store %arg20[%c0_361, %c0_362], %488 {strides = array<i32>} : memref<16x128xf32, #tpu.memory_space<vmem>>, vector<16x128xf32>,
    return
  }
}

</mosaic_0001>

<bundles_post_ra>
// kernel: _lambda_.1
= control target key start
LH: loop header
LB: loop body
LE: loop exit
PB: predicated region body
PF: predicated region fallthrough
CT: control target
= control target key end

     0   :  { %s6745_s0 = inlined_call_operand.vmem [shape: f32[16,32], index: 0, kind: input, shape index: {}]   ;;  %s6746_s1 = inlined_call_operand.vmem [shape: f32[2,1,32], index: 1, kind: input, shape index: {}, may-alias: {1,11}]   ;;  %s6747_s2 = inlined_call_operand.vmem [shape: f32[2,1,32], index: 2, kind: input, shape index: {}, may-alias: {2,12}]   ;;  %s6748_s3 = inlined_call_operand.hbm [shape: bf16[2,4,8,32], index: 3, kind: input, shape index: {}]   ;;  %s6749_s4 = inlined_call_operand.vmem [shape: f32[2,4,1,8], index: 4, kind: input, shape index: {}]   ;;  %s6750_s5 = inlined_call_operand.hbm [shape: bf16[2,4,8,32], index: 5, kind: input, shape index: {}]   ;;  %s6751_s6 = inlined_call_operand.vmem [shape: f32[2,4,1,8], index: 6, kind: input, shape index: {}]   ;;  %s6752_s7 = inlined_call_operand.hbm [shape: bf16[2,4,8,32], index: 7, kind: input, shape index: {}]   ;;  %s6753_s8 = inlined_call_operand.vmem [shape: f32[2,4,1,8], index: 8, kind: input, shape index: {}]   ;;  %s6754_s9 = inlined_call_operand.hbm [shape: bf16[2,4,32,8], index: 9, kind: input, shape index: {}]   ;;  %s6755_s10 = inlined_call_operand.hbm [shape: f32[2,1,32], index: 10, kind: input, shape index: {}]   ;;  %s6756_s11 = inlined_call_operand.vmem [shape: f32[2,1,32], index: 11, kind: input, shape index: {}, may-alias: {1,11}]   ;;  %s6757_s12 = inlined_call_operand.vmem [shape: f32[2,1,32], index: 12, kind: input, shape index: {}, may-alias: {2,12}]   ;;  %s6758_s13 = inlined_call_operand.vmem [shape: bf16[2,128,32], index: 13, kind: input, shape index: {}]   ;;  %s6759_s14 = inlined_call_operand.hbm [shape: f32[2,1,128], index: 14, kind: input, shape index: {}]   ;;  %s6760_s15 = inlined_call_operand.hbm [shape: bf16[2,32,128], index: 15, kind: input, shape index: {}]   ;;  %s6761_s16 = inlined_call_operand.vmem [shape: f32[2,1,32], index: 16, kind: input, shape index: {}]   ;;  %s6762_s17 = inlined_call_operand.vmem [shape: f32[1,32], index: 17, kind: input, shape index: {}]   ;;  %s6763_s18 = inlined_call_operand.vmem [shape: f32[1,32], index: 18, kind: input, shape index: {}]   ;;  %s6764_s19 = inlined_call_operand.vmem [shape: bf16[128,32], index: 19, kind: input, shape index: {}]   ;;  %s6765_s20 = inlined_call_operand.vmem [shape: f32[16,128], index: 20, kind: output, shape index: {}]  }
   0x1   :  { %6772 = sst [smem:[#allocation17_spill]] %s6745_s0 }
   0x2   :  { %6773 = sst [smem:[#allocation18_spill]] %s6746_s1 }
   0x3   :  { %6774 = sst [smem:[#allocation19_spill]] %s6747_s2 }
   0x4   :  { %6775 = sst [smem:[#allocation20_spill]] %s6748_s3 }
   0x5   :  { %6776 = sst [smem:[#allocation21_spill]] %s6749_s4 }
   0x6   :  { %25 = vsyncpa [#allocation3], 0 }
   0x7   :  { %26 = vsyncpa [#allocation5], 0 }
   0x8   :  { %27 = vsyncpa [#allocation8], 0 }
   0x9   :  { %28 = vsyncpa [#allocation11], 0  ;;  %s5690_s1 = smov [#allocation4]   ;;  %s5691_s23 = smov [#allocation7]  }
   0xa   :  { %s54_s22 = sshll.u32 %s5690_s1, 4  ;;  %s82_s24 = sshll.u32 %s5691_s23, 4  ;;  %s55_s22 = int_to_ptr.vmem [resolvable:$true] %s54_s22  ;;  %s5809_s24 = int_to_ptr.vmem [resolvable:$true] %s82_s24 }
   0xb   :  { %s5528_s3 = scalar_lea.hbm %s6750_s5, 512 }
   0xc   :  { %p5529_p0 = scmp.ne.s32.totalorder %s6750_s5, %s5528_s3  ;;  %p5532_p1 = scmp.lt.u32.totalorder %s5528_s3, %s6750_s5 }
   0xe   :  { %p5534_p2 = pnand %p5532_p1, %p5529_p0 }
  0x10   :  { %5537 = shalt.err (!%p5534_p2)
}
  0x11   :  { %s5538_s29 = scalar_lea.vmem %s55_s22, 512  ;;  %p5543_p4 = scmp.lt.s32.totalorder %s55_s22, %s55_s22 }
  0x12   :  { %p5539_p3 = scmp.ne.s32.totalorder %s55_s22, %s5538_s29  ;;  %p5544_p5 = scmp.lt.s32.totalorder %s5538_s29, %s5538_s29 }
  0x14   :  { %p5545_p6 = por %p5544_p5, %p5543_p4 }
  0x16   :  { %p5546_p7 = pnand %p5545_p6, %p5539_p3 }
  0x18   :  { %5549 = shalt.err (!%p5546_p7)
}
  0x19   :  { %s5692_s30 = smov 64   ;;  %s5693_s0 = smov 4  }
  0x1a   :  { %60 = dma.hbm_to_vmem [thread:$0]  %s6750_s5, 512, %s55_s22, [#allocation5], %s5692_s30, %s5692_s30, %s5693_s0  }
  0x1b   :  { %s5550_s25 = scalar_lea.hbm %s6754_s9, 2048 }
  0x1c   :  { %p5551_p8 = scmp.ne.s32.totalorder %s6754_s9, %s5550_s25  ;;  %p5554_p9 = scmp.lt.u32.totalorder %s5550_s25, %s6754_s9 }
  0x1e   :  { %p5556_p10 = pnand %p5554_p9, %p5551_p8 }
  0x20   :  { %5559 = shalt.err (!%p5556_p10)
}
  0x21   :  { %s5560_s4 = scalar_lea.vmem %s5809_s24, 2048  ;;  %p5565_p12 = scmp.lt.s32.totalorder %s5809_s24, %s5809_s24 }
  0x22   :  { %p5561_p11 = scmp.ne.s32.totalorder %s5809_s24, %s5560_s4  ;;  %p5566_p13 = scmp.lt.s32.totalorder %s5560_s4, %s5560_s4 }
  0x24   :  { %p5567_p0 = por %p5566_p13, %p5565_p12 }
  0x26   :  { %p5568_p1 = pnand %p5567_p0, %p5561_p11 }
  0x28   :  { %5571 = shalt.err (!%p5568_p1)
}
  0x29   :  { %88 = dma.hbm_to_vmem [thread:$0]  %s6754_s9, 2048, %s5809_s24, [#allocation8], %s5692_s30, %s5692_s30, %s5693_s0  }
  0x2a   :  { %s5694_s29 = smov [#allocation10]   ;;  %s5695_s1 = smov [#allocation2]  }
  0x2b   :  { %s112_s21 = sshll.u32 %s5694_s29, 4  ;;  %s40_s23 = sshll.u32 %s5695_s1, 4  ;;  %s113_s21 = int_to_ptr.vmem [resolvable:$true] %s112_s21  ;;  %s5846_s23 = int_to_ptr.vmem [resolvable:$true] %s40_s23 }
  0x2c   :  { %s5572_s3 = scalar_lea.hbm %s6759_s14, 32 }
  0x2d   :  { %p5573_p2 = scmp.ne.s32.totalorder %s6759_s14, %s5572_s3  ;;  %p5576_p3 = scmp.lt.u32.totalorder %s5572_s3, %s6759_s14 }
  0x2f   :  { %p5578_p4 = pnand %p5576_p3, %p5573_p2 }
  0x31   :  { %5581 = shalt.err (!%p5578_p4)
}
  0x32   :  { %s5582_s9 = scalar_lea.vmem %s113_s21, 32  ;;  %p5587_p6 = scmp.lt.s32.totalorder %s113_s21, %s113_s21 }
  0x33   :  { %p5583_p5 = scmp.ne.s32.totalorder %s113_s21, %s5582_s9  ;;  %p5588_p7 = scmp.lt.s32.totalorder %s5582_s9, %s5582_s9 }
  0x35   :  { %p5589_p8 = por %p5588_p7, %p5587_p6 }
  0x37   :  { %p5590_p9 = pnand %p5589_p8, %p5583_p5 }
  0x39   :  { %5593 = shalt.err (!%p5590_p9)
}
  0x3a   :  { %s6771_s24 = smov 16   ;;  %s5697_s5 = smov 1  }
  0x3b   :  { %118 = dma.hbm_to_vmem [thread:$0]  %s6759_s14, 32, %s113_s21, [#allocation11], %s6771_s24, %s6771_s24, %s5697_s5  }
  0x3c   :  { %s6777_s25 = sld [smem:[#allocation20_spill]] }
  0x42   :  { %s5594_s3 = scalar_lea.hbm %s6777_s25, 512 }
  0x43   :  { %p5595_p10 = scmp.ne.s32.totalorder %s6777_s25, %s5594_s3  ;;  %p5598_p11 = scmp.lt.u32.totalorder %s5594_s3, %s6777_s25 }
  0x45   :  { %p5600_p12 = pnand %p5598_p11, %p5595_p10 }
  0x47   :  { %5603 = shalt.err (!%p5600_p12)
}
  0x48   :  { %s5604_s9 = scalar_lea.vmem %s5846_s23, 512  ;;  %p5609_p0 = scmp.lt.s32.totalorder %s5846_s23, %s5846_s23 }
  0x49   :  { %p5605_p13 = scmp.ne.s32.totalorder %s5846_s23, %s5604_s9  ;;  %p5610_p1 = scmp.lt.s32.totalorder %s5604_s9, %s5604_s9 }
  0x4b   :  { %p5611_p2 = por %p5610_p1, %p5609_p0 }
  0x4d   :  { %p5612_p3 = pnand %p5611_p2, %p5605_p13 }
  0x4f   :  { %5615 = shalt.err (!%p5612_p3)
}
  0x50   :  { %46 = dma.hbm_to_vmem [thread:$0]  %s6777_s25, 512, %s5846_s23, [#allocation3], %s5692_s30, %s5692_s30, %s5693_s0  }
  0x51   :  { %s5698_s22 = smov [#allocation6]   ;;  %s5699_s1 = smov [#allocation9]  }
  0x52   :  { %s68_s29 = sshll.u32 %s5698_s22, 4  ;;  %s94_s2 = sshll.u32 %s5699_s1, 4  ;;  %s69_s29 = int_to_ptr.vmem [resolvable:$true] %s68_s29  ;;  %s5883_s2 = int_to_ptr.vmem [resolvable:$true] %s94_s2 }
  0x53   :  { %s5616_s27 = scalar_lea.hbm %s6752_s7, 512 }
  0x54   :  { %p5617_p4 = scmp.ne.s32.totalorder %s6752_s7, %s5616_s27  ;;  %p5620_p5 = scmp.lt.u32.totalorder %s5616_s27, %s6752_s7 }
  0x56   :  { %p5622_p6 = pnand %p5620_p5, %p5617_p4 }
  0x58   :  { %5625 = shalt.err (!%p5622_p6)
}
  0x59   :  { %s5626_s23 = scalar_lea.vmem %s69_s29, 512  ;;  %p5631_p8 = scmp.lt.s32.totalorder %s69_s29, %s69_s29 }
  0x5a   :  { %p5627_p7 = scmp.ne.s32.totalorder %s69_s29, %s5626_s23  ;;  %p5632_p9 = scmp.lt.s32.totalorder %s5626_s23, %s5626_s23 }
  0x5c   :  { %p5633_p10 = por %p5632_p9, %p5631_p8 }
  0x5e   :  { %p5634_p11 = pnand %p5633_p10, %p5627_p7 }
  0x60   :  { %5637 = shalt.err (!%p5634_p11)
}
  0x61   :  { %74 = dma.hbm_to_vmem [thread:$0]  %s6752_s7, 512, %s69_s29, [#allocation5], %s5692_s30, %s5692_s30, %s5693_s0  }
  0x62   :  { %s5638_s24 = scalar_lea.hbm %s6755_s10, 32 }
  0x63   :  { %p5639_p12 = scmp.ne.s32.totalorder %s6755_s10, %s5638_s24  ;;  %p5642_p13 = scmp.lt.u32.totalorder %s5638_s24, %s6755_s10 }
  0x65   :  { %p5644_p0 = pnand %p5642_p13, %p5639_p12 }
  0x67   :  { %5647 = shalt.err (!%p5644_p0)
}
  0x68   :  { %s5648_s28 = scalar_lea.vmem %s5883_s2, 32  ;;  %p5653_p2 = scmp.lt.s32.totalorder %s5883_s2, %s5883_s2 }
  0x69   :  { %p5649_p1 = scmp.ne.s32.totalorder %s5883_s2, %s5648_s28  ;;  %p5654_p3 = scmp.lt.s32.totalorder %s5648_s28, %s5648_s28 }
  0x6b   :  { %p5655_p4 = por %p5654_p3, %p5653_p2 }
  0x6d   :  { %p5656_p5 = pnand %p5655_p4, %p5649_p1 }
  0x6f   :  { %5659 = shalt.err (!%p5656_p5)
}
  0x70   :  { %s6778_s7 = smov 16   ;;  %s5700_s9 = smov [#allocation12]  }
  0x71   :  { %100 = dma.hbm_to_vmem [thread:$0]  %s6755_s10, 32, %s5883_s2, [#allocation8], %s6778_s7, %s6778_s7, %s5697_s5  }
  0x72   :  { %s124_s23 = sshll.u32 %s5700_s9, 4  ;;  %s5660_s21 = scalar_lea.hbm %s6760_s15, 512  ;;  %s125_s23 = int_to_ptr.vmem [resolvable:$true] %s124_s23 }
  0x73   :  { %p5661_p6 = scmp.ne.s32.totalorder %s6760_s15, %s5660_s21  ;;  %p5664_p7 = scmp.lt.u32.totalorder %s5660_s21, %s6760_s15 }
  0x75   :  { %p5666_p8 = pnand %p5664_p7, %p5661_p6 }
  0x77   :  { %5669 = shalt.err (!%p5666_p8)
}
  0x78   :  { %s5670_s26 = scalar_lea.vmem %s125_s23, 512  ;;  %p5675_p10 = scmp.lt.s32.totalorder %s125_s23, %s125_s23 }
  0x79   :  { %p5671_p9 = scmp.ne.s32.totalorder %s125_s23, %s5670_s26  ;;  %p5676_p11 = scmp.lt.s32.totalorder %s5670_s26, %s5670_s26 }
  0x7b   :  { %p5677_p12 = por %p5676_p11, %p5675_p10 }
  0x7d   :  { %p5678_p13 = pnand %p5677_p12, %p5671_p9 }
  0x7f   :  { %5681 = shalt.err (!%p5678_p13)
}
  0x80   :  { %130 = dma.hbm_to_vmem [thread:$0]  %s6760_s15, 512, %s125_s23, [#allocation11], %s5692_s30, %s5692_s30, %s5693_s0  }
  0x81   :  { %5682 = dma.done.wait [#allocation3], 512  }
  0x82   :  { %5683 = vsyncadd [#allocation3], 4294966784 }
  0x83   :  { %5684 = dma.done.wait [#allocation5], 1024  }
  0x84   :  { %5685 = vsyncadd [#allocation5], 4294966272 }
  0x85   :  { %5686 = dma.done.wait [#allocation8], 2080  }
  0x86   :  { %5687 = vsyncadd [#allocation8], 4294965216 }
  0x87   :  { %5688 = dma.done.wait [#allocation11], 544  }
  0x88   :  { %5689 = vsyncadd [#allocation11], 4294966752  ;;  %vm171_vm0 = vcmask 261120   ;;  %s6779_s28 = sld [smem:[#allocation17_spill]]  ;;  %v216_v14 = vld [vmem:[#allocation2] sm:$0xf] }
  0x89   :  { %v376_v15 = vld [vmem:[#allocation2 + $0x4] sm:$0xf]  ;;  %v5701_v16 = vmov 0.0   ;;  %v228_v17 = vsel %vm171_vm0, %v216_v14, 0  ;;  %vm5702_vm1 = vmmov 0   ;;  %s6780_s0 = sld [smem:[#allocation18_spill]] }
  0x8a   :  { %4900 = vmatprep.subr.bf16.mxu0 %v5701_v16  ;;  %4918 = vmatprep.subr.bf16.mxu1 %v5701_v16  ;;  %v386_v18 = vsel %vm171_vm0, %v376_v15, 0  ;;  %s6781_s23 = sld [smem:[#allocation19_spill]]  ;;  %v271_v33 = vld [vmem:[#allocation4] sm:$0xf]  ;;  %v484_v34 = vld [vmem:[#allocation6 + $0x4] sm:$0xf] }
  0x8b   :  { %4901 = vmatpush3.bf16.xpose.msra.mxu0 %v228_v17  ;;  %4919 = vmatpush3.bf16.xpose.msra.mxu1 %v386_v18  ;;  %v280_v38 = vsel %vm171_vm0, %v271_v33, 0  ;;  %v494_v39 = vsel %vm171_vm0, %v484_v34, 0  ;;  %v323_v40 = vld [vmem:[#allocation6] sm:$0xf]  ;;  %v592_v41 = vld [vmem:[#allocation4 + $0x8] sm:$0xf] }
  0x8c   :  { %4906 = vmatprep.subr.bf16.mxu0 %v5701_v16  ;;  %4930 = vmatprep.subr.bf16.mxu1 %v5701_v16  ;;  %v332_v42 = vsel %vm171_vm0, %v323_v40, 0  ;;  %v602_v43 = vsel %vm171_vm0, %v592_v41, 0  ;;  %v430_v44 = vld [vmem:[#allocation4 + $0x4] sm:$0xf]  ;;  %v700_v45 = vld [vmem:[#allocation2 + $0xc] sm:$0xf] }
  0x8d   :  { %4902 = vmatprep.mubr.msk.bf16.mxu0 %vm5702_vm1, %v5701_v16  ;;  %4920 = vmatprep.mubr.msk.bf16.mxu1 %vm5702_vm1, %v5701_v16  ;;  %v440_v46 = vsel %vm171_vm0, %v430_v44, 0  ;;  %v710_v47 = vsel %vm171_vm0, %v700_v45, 0  ;;  %v538_v48 = vld [vmem:[#allocation2 + $0x8] sm:$0xf]  ;;  %v808_v49 = vld [vmem:[#allocation6 + $0xc] sm:$0xf] }
  0x8e   :  { %v161_v0 = vld [vmem:[%s6779_s28] sm:$0xff]  ;;  %v162_v1 = vld [vmem:[%s6779_s28 + $0x8] sm:$0xff]  ;;  %v548_v50 = vsel %vm171_vm0, %v538_v48, 0  ;;  %v818_v51 = vsel %vm171_vm0, %v808_v49, 0  ;;  %vm885_vm2 = vcmask 64512   ;;  %s6782_s24 = sld [smem:[#allocation21_spill]] }
  0x8f   :  { %v172_v2 = vsel %vm171_vm0, %v161_v0, 0.0  ;;  %v175_v3 = vsel %vm171_vm0, %v162_v1, 0.0  ;;  %v4538_v27 = vld [vmem:[%s6780_s0] ss:$0 sm:$0xff]  ;;  %v646_v52 = vld [vmem:[#allocation6 + $0x8] sm:$0xf] }
  0x90   :  { %173 = vadd.xlane.f32.xlu0 %v172_v2  ;;  %v4539_v31 = vld [vmem:[%s6781_s23] ss:$0 sm:$0xff]  ;;  %v656_v53 = vsel %vm171_vm0, %v646_v52, 0  ;;  %v754_v54 = vld [vmem:[#allocation4 + $0xc] sm:$0xf]  ;;  %vm1353_vm3 = vcmask 1043456  }
  0x91   :  { %v764_v55 = vsel %vm171_vm0, %v754_v54, 0 }
  0x94   :  { %176 = vadd.xlane.f32.xlu0 %v175_v3 }
 0x11d   :  { %v174_v4 = vpop.xlane.xlu0 %173 }
 0x11e   :  { %v179_v5 = vmul.f32 0.03125, %v174_v4 }
 0x120   :  { %v181_v6 = vsub.f32 %v161_v0, %v179_v5  ;;  %v4542_v0 = vld [vmem:[%s6751_s6] ss:$0 sm:$0xff] }
 0x121   :  { %v177_v7 = vpop.xlane.xlu0 %176 }
 0x122   :  { %v180_v8 = vmul.f32 0.03125, %v177_v7  ;;  %v183_v9 = vmul.f32 %v181_v6, %v181_v6 }
 0x124   :  { %v182_v10 = vsub.f32 %v162_v1, %v180_v8  ;;  %v185_v11 = vsel %vm171_vm0, %v183_v9, 0.0 }
 0x125   :  { %186 = vadd.xlane.f32.xlu1 %v185_v11 }
 0x126   :  { %v184_v12 = vmul.f32 %v182_v10, %v182_v10 }
 0x128   :  { %v188_v13 = vsel %vm171_vm0, %v184_v12, 0.0  ;;  %v4540_v12 = vld [vmem:[%s6782_s24] ss:$0 sm:$0xff] }
 0x129   :  { %189 = vadd.xlane.f32.xlu1 %v188_v13 }
 0x1b2   :  { %v187_v19 = vpop.xlane.xlu1 %186 }
 0x1b3   :  { %v191_v20 = vmul.f32 0.03125, %v187_v19 }
 0x1b5   :  { %v193_v21 = vadd.f32 1e-05, %v191_v20 }
 0x1b6   :  { %v190_v22 = vpop.xlane.xlu1 %189 }
 0x1b7   :  { %5434 = vrsqrt.f32 %v193_v21  ;;  %v192_v23 = vmul.f32 0.03125, %v190_v22 }
 0x1b9   :  { %v194_v24 = vadd.f32 1e-05, %v192_v23 }
 0x1bb   :  { %5436 = vrsqrt.f32 %v194_v24 }
 0x1c1   :  { %v5435_v25 = vpop.eup %5434 }
 0x1c2   :  { %v197_v26 = vmul.f32 %v5435_v25, %v181_v6 }
 0x1c4   :  { %v205_v29 = vmul.f32 %v4538_v27, %v197_v26 }
 0x1c5   :  { %v5437_v28 = vpop.eup %5436 }
 0x1c6   :  { %v198_v30 = vmul.f32 %v5437_v28, %v182_v10  ;;  %v213_v35 = vadd.f32 %v4539_v31, %v205_v29  ;;  %v4550_v29 = vld [vmem:[%s6751_s6 + $0x1] ss:$0 sm:$0xff] }
 0x1c8   :  { %v206_v32 = vmul.f32 %v4538_v27, %v198_v30 }
 0x1ca   :  { %v214_v36 = vadd.f32 %v4539_v31, %v206_v32 }
 0x1cc   :  { %v215_v37 = vpack.c.bf16 %v214_v36, %v213_v35  ;;  %v4559_v35 = vld [vmem:[%s6751_s6 + $0x2] ss:$0 sm:$0xff] }
 0x1ce   :  { %4903 = vmatmul.mubr.msk.bf16.vlgmr.msra.gmra.mrb[0].mxu0 %vm171_vm0, %v215_v37  ;;  %4921 = vmatmul.mubr.msk.bf16.vlgmr.msra.gmra.mrb[0].mxu1 %vm171_vm0, %v215_v37 }
 0x1cf   :  { %4907 = vmatpush3.bf16.xpose.msra.mxu0 %v280_v38  ;;  %4931 = vmatpush3.bf16.xpose.msra.mxu1 %v494_v39 }
 0x1d0   :  { %4908 = vmatprep.mubr.msk.bf16.mxu0 %vm5702_vm1, %v5701_v16  ;;  %4932 = vmatprep.mubr.msk.bf16.mxu1 %vm5702_vm1, %v5701_v16 }
 0x1d1   :  { %4912 = vmatprep.subr.bf16.mxu0 %v5701_v16  ;;  %4942 = vmatprep.subr.bf16.mxu1 %v5701_v16 }
 0x1d6   :  { %4909 = vmatmul.mubr.msk.bf16.vlgmr.msra.gmra.mrb[4].mxu0 %vm171_vm0, %v215_v37  ;;  %4933 = vmatmul.mubr.msk.bf16.vlgmr.msra.gmra.mrb[4].mxu1 %vm171_vm0, %v215_v37 }
 0x1d7   :  { %4913 = vmatpush3.bf16.xpose.msra.mxu0 %v332_v42  ;;  %4943 = vmatpush3.bf16.xpose.msra.mxu1 %v602_v43  ;;  %v4547_v42 = vld [vmem:[%s6782_s24 + $0x1] ss:$0 sm:$0xff] }
 0x1d8   :  { %4914 = vmatprep.mubr.msk.bf16.mxu0 %vm5702_vm1, %v5701_v16  ;;  %4944 = vmatprep.mubr.msk.bf16.mxu1 %vm5702_vm1, %v5701_v16 }
 0x1d9   :  { %4924 = vmatprep.subr.bf16.mxu0 %v5701_v16  ;;  %4954 = vmatprep.subr.bf16.mxu1 %v5701_v16 }
 0x1de   :  { %4915 = vmatmul.mubr.msk.bf16.vlgmr.msra.gmra.mrb[8].mxu0 %vm171_vm0, %v215_v37  ;;  %4945 = vmatmul.mubr.msk.bf16.vlgmr.msra.gmra.mrb[8].mxu1 %vm171_vm0, %v215_v37 }
 0x1df   :  { %4925 = vmatpush3.bf16.xpose.msra.mxu0 %v440_v46  ;;  %4955 = vmatpush3.bf16.xpose.msra.mxu1 %v710_v47 }
 0x1e0   :  { %4926 = vmatprep.mubr.msk.bf16.mxu0 %vm5702_vm1, %v5701_v16  ;;  %4956 = vmatprep.mubr.msk.bf16.mxu1 %vm5702_vm1, %v5701_v16 }
 0x1e1   :  { %4936 = vmatprep.subr.bf16.mxu0 %v5701_v16  ;;  %4966 = vmatprep.subr.bf16.mxu1 %v5701_v16 }
 0x1e6   :  { %4927 = vmatmul.mubr.msk.bf16.vlgmr.msra.gmra.mrb[12].mxu0 %vm171_vm0, %v215_v37  ;;  %4957 = vmatmul.mubr.msk.bf16.vlgmr.msra.gmra.mrb[12].mxu1 %vm171_vm0, %v215_v37 }
 0x1e7   :  { %4937 = vmatpush3.bf16.xpose.msra.mxu0 %v548_v50  ;;  %4967 = vmatpush3.bf16.xpose.msra.mxu1 %v818_v51 }
 0x1e8   :  { %4938 = vmatprep.mubr.msk.bf16.mxu0 %vm5702_vm1, %v5701_v16  ;;  %4968 = vmatprep.mubr.msk.bf16.mxu1 %vm5702_vm1, %v5701_v16 }
 0x1e9   :  { %4948 = vmatprep.subr.bf16.mxu0 %v5701_v16  ;;  %4978 = vmatprep.subr.bf16.mxu1 %v5701_v16 }
 0x1ee   :  { %4939 = vmatmul.mubr.msk.bf16.vlgmr.msra.gmra.mrb[16].mxu0 %vm171_vm0, %v215_v37  ;;  %4969 = vmatmul.mubr.msk.bf16.vlgmr.msra.gmra.mrb[16].mxu1 %vm171_vm0, %v215_v37 }
 0x1ef   :  { %4949 = vmatpush3.bf16.xpose.msra.mxu0 %v656_v53  ;;  %4950 = vmatprep.mubr.msk.bf16.mxu0 %vm5702_vm1, %v5701_v16 }
 0x1f0   :  { %4960 = vmatprep.subr.bf16.mxu0 %v5701_v16  ;;  %4980 = vmatprep.mubr.msk.bf16.mxu1 %vm5702_vm1, %v5701_v16 }
 0x1f6   :  { %4951 = vmatmul.mubr.msk.bf16.vlgmr.msra.gmra.mrb[20].mxu0 %vm171_vm0, %v215_v37 }
 0x1f7   :  { %4961 = vmatpush3.bf16.xpose.msra.mxu0 %v764_v55  ;;  %4962 = vmatprep.mubr.msk.bf16.mxu0 %vm5702_vm1, %v5701_v16 }
 0x1f8   :  { %4972 = vmatprep.subr.bf16.mxu0 %v5701_v16 }
 0x1fe   :  { %4963 = vmatmul.mubr.msk.bf16.vlgmr.msra.gmra.mrb[24].mxu0 %vm171_vm0, %v215_v37 }
 0x1ff   :  { %4974 = vmatprep.mubr.msk.bf16.mxu0 %vm5702_vm1, %v5701_v16 }
 0x2a1   :  { %v264_v56 = vpop.f32.mrb[0].mxu0  ;;  %v422_v57 = vpop.f32.mrb[0].mxu1 }
 0x2a2   :  { %v4904_v58 = vpop.f32.mrb[1].mxu0  ;;  %v4922_v59 = vpop.f32.mrb[1].mxu1  ;;  %v265_v15 = vadd.f32 %v4540_v12, %v264_v56  ;;  %v423_v46 = vadd.f32 %v4547_v42, %v422_v57 }
 0x2a3   :  { %v267_v60 = vpop.f32.mrb[2].mxu0  ;;  %v6017_v61 = vpop.f32.mrb[2].mxu1 }
 0x2a4   :  { %v4905_v62 = vpop.f32.mrb[3].mxu0  ;;  %v4923_v63 = vpop.f32.mrb[3].mxu1  ;;  %v268_v20 = vadd.f32 %v4540_v12, %v267_v60  ;;  %v861_v25 = vpack.c.bf16 %v265_v15, %v265_v15  ;;  %v426_v51 = vadd.f32 %v4547_v42, %v6017_v61  ;;  %v863_v57 = vpack.c.bf16 %v423_v46, %v423_v46  ;;  %v4544_v15 = vld [vmem:[%s6753_s8] ss:$0 sm:$0xff] }
 0x2a5   :  { %v4556_v62 = vld [vmem:[%s6782_s24 + $0x2] ss:$0 sm:$0xff] }
 0x2a6   :  { %v862_v28 = vpack.c.bf16 %v268_v20, %v268_v20  ;;  %v864_v63 = vpack.c.bf16 %v426_v51, %v426_v51 }
 0x2a9   :  { %v316_v1 = vpop.f32.mrb[4].mxu0  ;;  %v6022_v2 = vpop.f32.mrb[4].mxu1 }
 0x2aa   :  { %v317_v3 = vadd.f32 %v4542_v0, %v316_v1  ;;  %v4910_v4 = vpop.f32.mrb[5].mxu0  ;;  %v4934_v5 = vpop.f32.mrb[5].mxu1 }
 0x2ab   :  { %v319_v6 = vpop.f32.mrb[6].mxu0  ;;  %v6024_v7 = vpop.f32.mrb[6].mxu1 }
 0x2ac   :  { %v869_v8 = vpack.c.bf16 %v317_v3, %v317_v3  ;;  %v320_v9 = vadd.f32 %v4542_v0, %v319_v6  ;;  %v4911_v10 = vpop.f32.mrb[7].mxu0  ;;  %v4935_v11 = vpop.f32.mrb[7].mxu1 }
 0x2ad   :  { %v4568_v11 = vld [vmem:[%s6751_s6 + $0x3] ss:$0 sm:$0xff] }
 0x2ae   :  { %v890_v13 = vsel %vm885_vm2, %v869_v8, 0  ;;  %v870_v14 = vpack.c.bf16 %v320_v9, %v320_v9 }
 0x2af   :  { %4973 = vmatpush3.bf16.xpose.msra.mxu0 %v890_v13 }
 0x2b0   :  { %v936_v17 = vsel %vm885_vm2, %v870_v14, 0  ;;  %4984 = vmatprep.subr.bf16.mxu0 %v5701_v16 }
 0x2b1   :  { %v6032_v18 = vpop.f32.mrb[8].mxu0  ;;  %v638_v19 = vpop.f32.mrb[8].mxu1  ;;  %4979 = vmatpush3.bf16.xpose.msra.mxu1 %v936_v17 }
 0x2b2   :  { %v4916_v21 = vpop.f32.mrb[9].mxu0  ;;  %v4946_v22 = vpop.f32.mrb[9].mxu1  ;;  %4990 = vmatprep.subr.bf16.mxu1 %v5701_v16  ;;  %v639_v43 = vadd.f32 %v4559_v35, %v638_v19 }
 0x2b3   :  { %v6035_v23 = vpop.f32.mrb[10].mxu0  ;;  %v641_v24 = vpop.f32.mrb[10].mxu1  ;;  %v4565_v22 = vld [vmem:[%s6782_s24 + $0x3] ss:$0 sm:$0xff] }
 0x2b4   :  { %v4917_v26 = vpop.f32.mrb[11].mxu0  ;;  %v4947_v27 = vpop.f32.mrb[11].mxu1  ;;  %v642_v47 = vadd.f32 %v4559_v35, %v641_v24  ;;  %v873_v52 = vpack.c.bf16 %v639_v43, %v639_v43  ;;  %v369_v24 = vadd.f32 %v4544_v15, %v6032_v18 }
 0x2b5   :  { %v372_v27 = vadd.f32 %v4544_v15, %v6035_v23 }
 0x2b6   :  { %4975 = vmatmul.mubr.msk.bf16.vlgmr.msra.gmra.mrb[28].mxu0 %vm885_vm2, %v861_v25  ;;  %v874_v58 = vpack.c.bf16 %v642_v47, %v642_v47  ;;  %v1074_v0 = vsel %vm885_vm2, %v873_v52, 0 }
 0x2b7   :  { %4986 = vmatprep.mubr.msk.bf16.mxu0 %vm5702_vm1, %v5701_v16 }
 0x2b8   :  { %4981 = vmatmul.mubr.msk.bf16.vlgmr.msra.gmra.mrb[20].mxu1 %vm885_vm2, %v862_v28  ;;  %v1120_v61 = vsel %vm885_vm2, %v874_v58, 0 }
 0x2b9   :  { %v476_v30 = vpop.f32.mrb[12].mxu0  ;;  %v6044_v31 = vpop.f32.mrb[12].mxu1  ;;  %4992 = vmatprep.mubr.msk.bf16.mxu1 %vm5702_vm1, %v5701_v16 }
 0x2ba   :  { %v477_v32 = vadd.f32 %v4550_v29, %v476_v30  ;;  %v4928_v33 = vpop.f32.mrb[13].mxu0  ;;  %v4958_v34 = vpop.f32.mrb[13].mxu1  ;;  %v747_v28 = vadd.f32 %v4565_v22, %v6044_v31  ;;  %v877_v30 = vpack.c.bf16 %v369_v24, %v369_v24  ;;  %v163_v31 = vlaneseq }
 0x2bb   :  { %v479_v36 = vpop.f32.mrb[14].mxu0  ;;  %v6051_v37 = vpop.f32.mrb[14].mxu1  ;;  %v878_v33 = vpack.c.bf16 %v372_v27, %v372_v27 }
 0x2bc   :  { %v871_v38 = vpack.c.bf16 %v477_v32, %v477_v32  ;;  %v480_v39 = vadd.f32 %v4550_v29, %v479_v36  ;;  %v4929_v40 = vpop.f32.mrb[15].mxu0  ;;  %v4959_v41 = vpop.f32.mrb[15].mxu1  ;;  %v750_v32 = vadd.f32 %v4565_v22, %v6051_v37  ;;  %v867_v18 = vpack.c.bf16 %v747_v28, %v747_v28 }
 0x2bd   :  { %v1355_v34 = vsel %vm1353_vm3, %v877_v30, 0  ;;  %v1401_v23 = vsel %vm1353_vm3, %v878_v33, 0  ;;  %v164_v36 = vshrl.u32 %v163_v31, 7  ;;  %v166_v37 = vand.u32 127, %v163_v31 }
 0x2be   :  { %v982_v44 = vsel %vm885_vm2, %v871_v38, 0  ;;  %v872_v45 = vpack.c.bf16 %v480_v39, %v480_v39  ;;  %v868_v35 = vpack.c.bf16 %v750_v32, %v750_v32  ;;  %v5703_v38 = vmov -1e+30  }
 0x2bf   :  { %4985 = vmatpush3.bf16.xpose.msra.mxu0 %v982_v44  ;;  %vm167_vm4 = vcmp.le.s32.totalorder %v166_v37, %v164_v36 }
 0x2c0   :  { %v1028_v48 = vsel %vm885_vm2, %v872_v45, 0  ;;  %4996 = vmatprep.subr.bf16.mxu0 %v5701_v16  ;;  %v6115_v39 = vsel %vm167_vm4, 0.0, %v5703_v38 }
 0x2c1   :  { %v584_v49 = vpop.f32.mrb[16].mxu0  ;;  %v6059_v50 = vpop.f32.mrb[16].mxu1  ;;  %4991 = vmatpush3.bf16.xpose.msra.mxu1 %v1028_v48 }
 0x2c2   :  { %v4940_v53 = vpop.f32.mrb[17].mxu0  ;;  %v4970_v54 = vpop.f32.mrb[17].mxu1  ;;  %5002 = vmatprep.subr.bf16.mxu1 %v5701_v16  ;;  %v585_v1 = vadd.f32 %v4556_v62, %v584_v49 }
 0x2c3   :  { %v587_v55 = vpop.f32.mrb[18].mxu0  ;;  %v6063_v56 = vpop.f32.mrb[18].mxu1 }
 0x2c4   :  { %v4941_v59 = vpop.f32.mrb[19].mxu0  ;;  %v4971_v60 = vpop.f32.mrb[19].mxu1  ;;  %v588_v4 = vadd.f32 %v4556_v62, %v587_v55  ;;  %v865_v8 = vpack.c.bf16 %v585_v1, %v585_v1 }
 0x2c6   :  { %4987 = vmatmul.mubr.msk.bf16.vlgmr.msra.gmra.mrb[32].mxu0 %vm885_vm2, %v863_v57  ;;  %v866_v10 = vpack.c.bf16 %v588_v4, %v588_v4 }
 0x2c7   :  { %4997 = vmatpush3.bf16.xpose.msra.mxu0 %v1074_v0  ;;  %4998 = vmatprep.mubr.msk.bf16.mxu0 %vm5702_vm1, %v5701_v16 }
 0x2c8   :  { %4993 = vmatmul.mubr.msk.bf16.vlgmr.msra.gmra.mrb[24].mxu1 %vm885_vm2, %v864_v63  ;;  %5008 = vmatprep.subr.bf16.mxu0 %v5701_v16 }
 0x2c9   :  { %v6075_v3 = vpop.f32.mrb[20].mxu0  ;;  %5003 = vmatpush3.bf16.xpose.msra.mxu1 %v1120_v61  ;;  %5004 = vmatprep.mubr.msk.bf16.mxu1 %vm5702_vm1, %v5701_v16 }
 0x2ca   :  { %v4952_v5 = vpop.f32.mrb[21].mxu0  ;;  %5014 = vmatprep.subr.bf16.mxu1 %v5701_v16 }
 0x2cb   :  { %v6080_v6 = vpop.f32.mrb[22].mxu0 }
 0x2cc   :  { %v4953_v9 = vpop.f32.mrb[23].mxu0 }
 0x2ce   :  { %4999 = vmatmul.mubr.msk.bf16.vlgmr.msra.gmra.mrb[36].mxu0 %vm885_vm2, %v865_v8 }
 0x2cf   :  { %5010 = vmatprep.mubr.msk.bf16.mxu0 %vm5702_vm1, %v5701_v16 }
 0x2d0   :  { %5005 = vmatmul.mubr.msk.bf16.vlgmr.msra.gmra.mrb[28].mxu1 %vm885_vm2, %v866_v10 }
 0x2d1   :  { %v800_v12 = vpop.f32.mrb[24].mxu0  ;;  %5016 = vmatprep.mubr.msk.bf16.mxu1 %vm5702_vm1, %v5701_v16 }
 0x2d2   :  { %v801_v13 = vadd.f32 %v4568_v11, %v800_v12  ;;  %v4964_v14 = vpop.f32.mrb[25].mxu0 }
 0x2d3   :  { %v803_v17 = vpop.f32.mrb[26].mxu0 }
 0x2d4   :  { %v875_v19 = vpack.c.bf16 %v801_v13, %v801_v13  ;;  %v804_v20 = vadd.f32 %v4568_v11, %v803_v17  ;;  %v4965_v21 = vpop.f32.mrb[27].mxu0 }
 0x2d6   :  { %v1166_v25 = vsel %vm885_vm2, %v875_v19, 0  ;;  %v876_v26 = vpack.c.bf16 %v804_v20, %v804_v20 }
 0x2d7   :  { %5009 = vmatpush3.bf16.xpose.msra.mxu0 %v1166_v25 }
 0x2d8   :  { %v1212_v29 = vsel %vm885_vm2, %v876_v26, 0  ;;  %5020 = vmatprep.subr.bf16.mxu0 %v5701_v16 }
 0x2d9   :  { %5015 = vmatpush3.bf16.xpose.msra.mxu1 %v1212_v29 }
 0x2da   :  { %5026 = vmatprep.subr.bf16.mxu1 %v5701_v16 }
 0x2de   :  { %5011 = vmatmul.mubr.msk.bf16.vlgmr.msra.gmra.mrb[40].mxu0 %vm885_vm2, %v867_v18 }
 0x2df   :  { %5021 = vmatpush3.bf16.msra.mxu0 %v1355_v34  ;;  %5022 = vmatprep.mubr.msk.bf16.mxu0 %vm5702_vm1, %v5701_v16 }
 0x2e0   :  { %5017 = vmatmul.mubr.msk.bf16.vlgmr.msra.gmra.mrb[32].mxu1 %vm885_vm2, %v868_v35  ;;  %5032 = vmatprep.subr.bf16.mxu0 %v5701_v16 }
 0x2e1   :  { %5027 = vmatpush3.bf16.msra.mxu1 %v1401_v23  ;;  %5028 = vmatprep.mubr.msk.bf16.mxu1 %vm5702_vm1, %v5701_v16 }
 0x2e2   :  { %5038 = vmatprep.subr.bf16.mxu1 %v5701_v16 }
 0x389   :  { %v926_v40 = vpop.f32.mrb[28].mxu0 }
 0x38a   :  { %v927_v41 = vadd.f32 %v926_v40, %v6115_v39  ;;  %v4976_v42 = vpop.f32.mrb[29].mxu0 }
 0x38b   :  { %v929_v43 = vpop.f32.mrb[30].mxu0  ;;  %v972_v44 = vpop.f32.mrb[20].mxu1 }
 0x38c   :  { %v973_v45 = vadd.f32 %v972_v44, %v6115_v39  ;;  %v4977_v46 = vpop.f32.mrb[31].mxu0  ;;  %v4982_v47 = vpop.f32.mrb[21].mxu1  ;;  %v1254_v48 = vsel %vm885_vm2, %v927_v41, -inf }
 0x38d   :  { %v975_v49 = vpop.f32.mrb[22].mxu1  ;;  %1255 = vmax.xlane.f32.xlu0 %v1254_v48 }
 0x38e   :  { %v4983_v51 = vpop.f32.mrb[23].mxu1  ;;  %v1257_v52 = vsel %vm885_vm2, %v973_v45, -inf }
 0x38f   :  { %1258 = vmax.xlane.f32.xlu1 %v1257_v52 }
 0x399   :  { %v1018_v53 = vpop.f32.mrb[32].mxu0 }
 0x39a   :  { %v1019_v54 = vadd.f32 %v1018_v53, %v6115_v39  ;;  %v4988_v55 = vpop.f32.mrb[33].mxu0 }
 0x39b   :  { %v1021_v57 = vpop.f32.mrb[34].mxu0  ;;  %v1064_v58 = vpop.f32.mrb[24].mxu1 }
 0x39c   :  { %v1065_v59 = vadd.f32 %v1064_v58, %v6115_v39  ;;  %v4989_v60 = vpop.f32.mrb[35].mxu0  ;;  %v4994_v62 = vpop.f32.mrb[25].mxu1  ;;  %v1260_v63 = vsel %vm885_vm2, %v1019_v54, -inf }
 0x39d   :  { %v1067_v0 = vpop.f32.mrb[26].mxu1  ;;  %1261 = vmax.xlane.f32.xlu0 %v1260_v63 }
 0x39e   :  { %v4995_v61 = vpop.f32.mrb[27].mxu1  ;;  %v1263_v1 = vsel %vm885_vm2, %v1065_v59, -inf }
 0x39f   :  { %1264 = vmax.xlane.f32.xlu1 %v1263_v1 }
 0x3a1   :  { %v1110_v4 = vpop.f32.mrb[36].mxu0 }
 0x3a2   :  { %v1111_v5 = vadd.f32 %v1110_v4, %v6115_v39  ;;  %v5000_v8 = vpop.f32.mrb[37].mxu0 }
 0x3a3   :  { %v1113_v9 = vpop.f32.mrb[38].mxu0  ;;  %v1156_v10 = vpop.f32.mrb[28].mxu1 }
 0x3a4   :  { %v1157_v11 = vadd.f32 %v1156_v10, %v6115_v39  ;;  %v5001_v12 = vpop.f32.mrb[39].mxu0  ;;  %v5006_v13 = vpop.f32.mrb[29].mxu1  ;;  %v1266_v14 = vsel %vm885_vm2, %v1111_v5, -inf }
 0x3a5   :  { %v1159_v15 = vpop.f32.mrb[30].mxu1  ;;  %1267 = vmax.xlane.f32.xlu0 %v1266_v14 }
 0x3a6   :  { %v5007_v17 = vpop.f32.mrb[31].mxu1  ;;  %v1269_v19 = vsel %vm885_vm2, %v1157_v11, -inf }
 0x3a7   :  { %1270 = vmax.xlane.f32.xlu1 %v1269_v19  ;;  %v4553_v17 = vld [vmem:[%s6753_s8 + $0x1] ss:$0 sm:$0xff] }
 0x3a8   :  { %v531_v19 = vadd.f32 %v4553_v17, %v6022_v2 }
 0x3b1   :  { %v1202_v20 = vpop.f32.mrb[40].mxu0 }
 0x3b2   :  { %v1203_v21 = vadd.f32 %v1202_v20, %v6115_v39  ;;  %v5012_v22 = vpop.f32.mrb[41].mxu0  ;;  %v534_v20 = vadd.f32 %v4553_v17, %v6024_v7 }
 0x3b3   :  { %v1205_v24 = vpop.f32.mrb[42].mxu0  ;;  %v1248_v25 = vpop.f32.mrb[32].mxu1  ;;  %v879_v22 = vpack.c.bf16 %v531_v19, %v531_v19 }
 0x3b4   :  { %v1249_v26 = vadd.f32 %v1248_v25, %v6115_v39  ;;  %v5013_v27 = vpop.f32.mrb[43].mxu0  ;;  %v5018_v28 = vpop.f32.mrb[33].mxu1  ;;  %v1272_v29 = vsel %vm885_vm2, %v1203_v21, -inf }
 0x3b5   :  { %v1251_v30 = vpop.f32.mrb[34].mxu1  ;;  %1273 = vmax.xlane.f32.xlu0 %v1272_v29  ;;  %v1447_v29 = vsel %vm1353_vm3, %v879_v22, 0 }
 0x3b6   :  { %v5019_v32 = vpop.f32.mrb[35].mxu1  ;;  %v1275_v33 = vsel %vm885_vm2, %v1249_v26, -inf }
 0x3b7   :  { %1276 = vmax.xlane.f32.xlu1 %v1275_v33  ;;  %v4562_v33 = vld [vmem:[%s6753_s8 + $0x2] ss:$0 sm:$0xff] }
 0x41a   :  { %v1256_v18 = vpop.xlane.xlu0 %1255 }
 0x41b   :  { %v1278_v34 = vsub.f32 %v927_v41, %v1256_v18  ;;  %v693_v18 = vadd.f32 %v4562_v33, %v6075_v3 }
 0x41c   :  { %v1259_v35 = vpop.xlane.xlu1 %1258 }
 0x41d   :  { %v1286_v23 = vmul.f32 1.442695, %v1278_v34  ;;  %v1279_v31 = vsub.f32 %v973_v45, %v1259_v35  ;;  %v696_v35 = vadd.f32 %v4562_v33, %v6080_v6 }
 0x41f   :  { %5438 = vpow2.f32 %v1286_v23  ;;  %v1288_v36 = vmul.f32 1.442695, %v1279_v31 }
 0x421   :  { %5440 = vpow2.f32 %v1288_v36  ;;  %v881_v36 = vpack.c.bf16 %v693_v18, %v693_v18 }
 0x429   :  { %v5439_v37 = vpop.eup %5438 }
 0x42a   :  { %v1262_v38 = vpop.xlane.xlu0 %1261  ;;  %v1302_v40 = vsel %vm885_vm2, %v5439_v37, 0.0 }
 0x42b   :  { %v5441_v42 = vpop.eup %5440  ;;  %v1280_v43 = vsub.f32 %v1019_v54, %v1262_v38  ;;  %1303 = vadd.xlane.f32.xlu0 %v1302_v40  ;;  %v4571_v40 = vld [vmem:[%s6753_s8 + $0x3] ss:$0 sm:$0xff] }
 0x42c   :  { %v1265_v44 = vpop.xlane.xlu1 %1264  ;;  %v1305_v46 = vsel %vm885_vm2, %v5441_v42, 0.0  ;;  %v855_v3 = vadd.f32 %v4571_v40, %v6059_v50 }
 0x42d   :  { %v1290_v47 = vmul.f32 1.442695, %v1280_v43  ;;  %v1281_v48 = vsub.f32 %v1065_v59, %v1265_v44  ;;  %1306 = vadd.xlane.f32.xlu1 %v1305_v46  ;;  %v1539_v46 = vsel %vm1353_vm3, %v881_v36, 0  ;;  %v5395_v36 = vld [vmem:[#allocation7 + $0x28] sm:$0xff]  }
 0x42e   :  { %v883_v50 = vpack.c.bf16 %v855_v3, %v855_v3 }
 0x42f   :  { %5442 = vpow2.f32 %v1290_v47  ;;  %v1292_v41 = vmul.f32 1.442695, %v1281_v48  ;;  %v858_v47 = vadd.f32 %v4571_v40, %v6063_v56 }
 0x431   :  { %5444 = vpow2.f32 %v1292_v41 }
 0x432   :  { %v1268_v45 = vpop.xlane.xlu0 %1267 }
 0x433   :  { %v1282_v49 = vsub.f32 %v1111_v5, %v1268_v45 }
 0x434   :  { %v1271_v51 = vpop.xlane.xlu1 %1270 }
 0x435   :  { %v1294_v52 = vmul.f32 1.442695, %v1282_v49  ;;  %v1283_v53 = vsub.f32 %v1157_v11, %v1271_v51  ;;  %v884_v51 = vpack.c.bf16 %v858_v47, %v858_v47 }
 0x437   :  { %5446 = vpow2.f32 %v1294_v52  ;;  %v1296_v55 = vmul.f32 1.442695, %v1283_v53  ;;  %v1631_v53 = vsel %vm1353_vm3, %v883_v50, 0 }
 0x439   :  { %v6135_v57 = vpop.eup %5442  ;;  %5448 = vpow2.f32 %v1296_v55 }
 0x43a   :  { %v1308_v54 = vsel %vm885_vm2, %v6135_v57, 0.0 }
 0x43b   :  { %v6139_v58 = vpop.eup %5444  ;;  %1309 = vadd.xlane.f32.xlu0 %v1308_v54  ;;  %v1677_v54 = vsel %vm1353_vm3, %v884_v51, 0 }
 0x43c   :  { %v1311_v59 = vsel %vm885_vm2, %v6139_v58, 0.0 }
 0x43d   :  { %1312 = vadd.xlane.f32.xlu1 %v1311_v59 }
 0x441   :  { %v6143_v60 = vpop.eup %5446 }
 0x442   :  { %v1274_v62 = vpop.xlane.xlu0 %1273  ;;  %v1314_v63 = vsel %vm885_vm2, %v6143_v60, 0.0 }
 0x443   :  { %v6147_v0 = vpop.eup %5448  ;;  %v1284_v61 = vsub.f32 %v1203_v21, %v1274_v62  ;;  %1315 = vadd.xlane.f32.xlu0 %v1314_v63  ;;  %v5390_v62 = vld [vmem:[#allocation7] sm:$0xff]  }
 0x444   :  { %v1277_v1 = vpop.xlane.xlu1 %1276  ;;  %v1317_v4 = vsel %vm885_vm2, %v6147_v0, 0.0 }
 0x445   :  { %v1298_v5 = vmul.f32 1.442695, %v1284_v61  ;;  %v1285_v8 = vsub.f32 %v1249_v26, %v1277_v1  ;;  %1318 = vadd.xlane.f32.xlu1 %v1317_v4  ;;  %v880_v26 = vpack.c.bf16 %v534_v20, %v534_v20  ;;  %v1804_v4 = vsel %vm885_vm2, %v5390_v62, 0 }
 0x447   :  { %5450 = vpow2.f32 %v1298_v5  ;;  %v1300_v9 = vmul.f32 1.442695, %v1285_v8  ;;  %v1493_v2 = vsel %vm1353_vm3, %v880_v26, 0  ;;  %v5391_v5 = vld [vmem:[#allocation7 + $0x8] sm:$0xff]  }
 0x448   :  { %v1807_v8 = vsel %vm885_vm2, %v5391_v5, 0 }
 0x449   :  { %5452 = vpow2.f32 %v1300_v9  ;;  %v5392_v9 = vld [vmem:[#allocation7 + $0x10] sm:$0xff]  }
 0x451   :  { %v6151_v10 = vpop.eup %5450 }
 0x452   :  { %v1320_v11 = vsel %vm885_vm2, %v6151_v10, 0.0 }
 0x453   :  { %v6155_v12 = vpop.eup %5452  ;;  %1321 = vadd.xlane.f32.xlu0 %v1320_v11  ;;  %v5393_v11 = vld [vmem:[#allocation7 + $0x18] sm:$0xff]  }
 0x454   :  { %v1323_v13 = vsel %vm885_vm2, %v6155_v12, 0.0 }
 0x455   :  { %1324 = vadd.xlane.f32.xlu1 %v1323_v13  ;;  %v5396_v13 = vld [vmem:[#allocation7 + $0x30] sm:$0xff]  }
 0x4b8   :  { %v1304_v14 = vpop.xlane.xlu0 %1303 }
 0x4b9   :  { %5454 = vrcp.f32 %v1304_v14 }
 0x4ba   :  { %v1307_v15 = vpop.xlane.xlu1 %1306 }
 0x4bb   :  { %5456 = vrcp.f32 %v1307_v15 }
 0x4c3   :  { %v5455_v21 = vpop.eup %5454 }
 0x4c4   :  { %v1334_v24 = vmul.f32 %v5455_v21, %v5439_v37 }
 0x4c5   :  { %v5457_v25 = vpop.eup %5456 }
 0x4c6   :  { %v1335_v27 = vmul.f32 %v5457_v25, %v5441_v42  ;;  %v1342_v28 = vpack.c.bf16 %v1334_v24, %v1334_v24  ;;  %v882_v42 = vpack.c.bf16 %v696_v35, %v696_v35  ;;  %v1938_v24 = vsel %vm885_vm2, %v5396_v13, 0 }
 0x4c8   :  { %5023 = vmatmul.mubr.msk.bf16.vlgmr.msra.gmra.mrb[44].mxu0 %vm885_vm2, %v1342_v28  ;;  %v1310_v30 = vpop.xlane.xlu0 %1309  ;;  %v1343_v32 = vpack.c.bf16 %v1335_v27, %v1335_v27  ;;  %v1585_v48 = vsel %vm1353_vm3, %v882_v42, 0  ;;  %v5397_v27 = vld [vmem:[#allocation7 + $0x38] sm:$0xff]  }
 0x4c9   :  { %5033 = vmatpush3.bf16.msra.mxu0 %v1447_v29  ;;  %5458 = vrcp.f32 %v1310_v30  ;;  %5034 = vmatprep.mubr.msk.bf16.mxu0 %vm5702_vm1, %v5701_v16  ;;  %v1941_v28 = vsel %vm885_vm2, %v5397_v27, 0  ;;  %v5394_v29 = vld [vmem:[#allocation7 + $0x20] sm:$0xff]  }
 0x4ca   :  { %5029 = vmatmul.mubr.msk.bf16.vlgmr.msra.gmra.mrb[36].mxu1 %vm885_vm2, %v1343_v32  ;;  %v1313_v7 = vpop.xlane.xlu1 %1312  ;;  %5044 = vmatprep.subr.bf16.mxu0 %v5701_v16  ;;  %v1870_v35 = vsel %vm885_vm2, %v5394_v29, 0  ;;  %v5398_v29 = vld [vmem:[%s6758_s13] sm:$0xff]  }
 0x4cb   :  { %5039 = vmatpush3.bf16.msra.mxu1 %v1493_v2  ;;  %5460 = vrcp.f32 %v1313_v7  ;;  %5040 = vmatprep.mubr.msk.bf16.mxu1 %vm5702_vm1, %v5701_v16 }
 0x4cc   :  { %5050 = vmatprep.subr.bf16.mxu1 %v5701_v16 }
 0x4d0   :  { %v1316_v34 = vpop.xlane.xlu0 %1315 }
 0x4d1   :  { %5462 = vrcp.f32 %v1316_v34 }
 0x4d2   :  { %v1319_v23 = vpop.xlane.xlu1 %1318 }
 0x4d3   :  { %v5459_v31 = vpop.eup %5458  ;;  %5464 = vrcp.f32 %v1319_v23 }
 0x4d4   :  { %v1336_v37 = vmul.f32 %v5459_v31, %v6135_v57 }
 0x4d5   :  { %v5461_v38 = vpop.eup %5460 }
 0x4d6   :  { %v1337_v43 = vmul.f32 %v5461_v38, %v6139_v58  ;;  %v1344_v44 = vpack.c.bf16 %v1336_v37, %v1336_v37 }
 0x4d8   :  { %5035 = vmatmul.mubr.msk.bf16.vlgmr.msra.gmra.mrb[48].mxu0 %vm885_vm2, %v1344_v44  ;;  %v1345_v6 = vpack.c.bf16 %v1337_v43, %v1337_v43 }
 0x4d9   :  { %5045 = vmatpush3.bf16.msra.mxu0 %v1539_v46  ;;  %5046 = vmatprep.mubr.msk.bf16.mxu0 %vm5702_vm1, %v5701_v16  ;;  %v1873_v46 = vsel %vm885_vm2, %v5395_v36, 0 }
 0x4da   :  { %5041 = vmatmul.mubr.msk.bf16.vlgmr.msra.gmra.mrb[40].mxu1 %vm885_vm2, %v1345_v6  ;;  %5056 = vmatprep.subr.bf16.mxu0 %v5701_v16 }
 0x4db   :  { %v5463_v41 = vpop.eup %5462  ;;  %5051 = vmatpush3.bf16.msra.mxu1 %v1585_v48  ;;  %5052 = vmatprep.mubr.msk.bf16.mxu1 %vm5702_vm1, %v5701_v16 }
 0x4dc   :  { %v1338_v45 = vmul.f32 %v5463_v41, %v6143_v60  ;;  %5062 = vmatprep.subr.bf16.mxu1 %v5701_v16 }
 0x4dd   :  { %v5465_v49 = vpop.eup %5464 }
 0x4de   :  { %v1339_v56 = vmul.f32 %v5465_v49, %v6147_v0  ;;  %v1346_v52 = vpack.c.bf16 %v1338_v45, %v1338_v45 }
 0x4e0   :  { %5047 = vmatmul.mubr.msk.bf16.vlgmr.msra.gmra.mrb[52].mxu0 %vm885_vm2, %v1346_v52  ;;  %v1322_v55 = vpop.xlane.xlu0 %1321  ;;  %v1347_v57 = vpack.c.bf16 %v1339_v56, %v1339_v56 }
 0x4e1   :  { %5057 = vmatpush3.bf16.msra.mxu0 %v1631_v53  ;;  %5466 = vrcp.f32 %v1322_v55  ;;  %5058 = vmatprep.mubr.msk.bf16.mxu0 %vm5702_vm1, %v5701_v16 }
 0x4e2   :  { %5053 = vmatmul.mubr.msk.bf16.vlgmr.msra.gmra.mrb[44].mxu1 %vm885_vm2, %v1347_v57  ;;  %v1325_v58 = vpop.xlane.xlu1 %1324  ;;  %5068 = vmatprep.subr.bf16.mxu0 %v5701_v16 }
 0x4e3   :  { %5063 = vmatpush3.bf16.msra.mxu1 %v1677_v54  ;;  %5468 = vrcp.f32 %v1325_v58  ;;  %5064 = vmatprep.mubr.msk.bf16.mxu1 %vm5702_vm1, %v5701_v16 }
 0x4e4   :  { %5076 = vmatprep.subr.bf16.mxu1 %v5701_v16 }
 0x4eb   :  { %v5467_v59 = vpop.eup %5466 }
 0x4ec   :  { %v1340_v60 = vmul.f32 %v5467_v59, %v6151_v10  ;;  %v1744_v10 = vsel %vm885_vm2, %v5392_v9, 0 }
 0x4ed   :  { %v5469_v63 = vpop.eup %5468 }
 0x4ee   :  { %v1341_v0 = vmul.f32 %v5469_v63, %v6155_v12  ;;  %v1348_v61 = vpack.c.bf16 %v1340_v60, %v1340_v60  ;;  %v1747_v12 = vsel %vm885_vm2, %v5393_v11, 0 }
 0x4f0   :  { %5059 = vmatmul.mubr.msk.bf16.vlgmr.msra.gmra.mrb[56].mxu0 %vm885_vm2, %v1348_v61  ;;  %v1349_v1 = vpack.c.bf16 %v1341_v0, %v1341_v0 }
 0x4f1   :  { %5072 = vmatprep.mubr.msk.bf16.mxu0 %vm5702_vm1, %v5701_v16  ;;  %5069 = vmatpush3.bf16.xpose.msra.mxu0 %v1744_v10 }
 0x4f2   :  { %5065 = vmatmul.mubr.msk.bf16.vlgmr.msra.gmra.mrb[48].mxu1 %vm885_vm2, %v1349_v1  ;;  %5070 = vmatprep.subr.bf16.mxu0 %v5701_v16 }
 0x4f3   :  { %5077 = vmatpush3.bf16.xpose.msra.mxu1 %v1804_v4  ;;  %5080 = vmatprep.mubr.msk.bf16.mxu1 %vm5702_vm1, %v5701_v16 }
 0x4f4   :  { %5078 = vmatprep.subr.bf16.mxu1 %v5701_v16 }
 0x4f9   :  { %5071 = vmatpush3.bf16.xpose.msra.mxu0 %v1747_v12 }
 0x4fa   :  { %5084 = vmatprep.subr.bf16.mxu0 %v5701_v16 }
 0x4fb   :  { %5079 = vmatpush3.bf16.xpose.msra.mxu1 %v1807_v8 }
 0x4fc   :  { %5092 = vmatprep.subr.bf16.mxu1 %v5701_v16 }
 0x59b   :  { %v1391_v14 = vpop.f32.mrb[44].mxu0 }
 0x59c   :  { %v5024_v15 = vpop.f32.mrb[45].mxu0 }
 0x59d   :  { %v1394_v17 = vpop.f32.mrb[46].mxu0  ;;  %v1437_v19 = vpop.f32.mrb[36].mxu1 }
 0x59e   :  { %v1719_v20 = vpack.c.bf16 %v1437_v19, %v1391_v14  ;;  %v5025_v21 = vpop.f32.mrb[47].mxu0  ;;  %v5030_v22 = vpop.f32.mrb[37].mxu1  ;;  %v4601_v14 = vld [vmem:[#allocation9] ss:$0 sm:$0xff] }
 0x59f   :  { %v1440_v25 = vpop.f32.mrb[38].mxu1  ;;  %v5526_v17 = vld [vmem:[%s6779_s28] sm:$0xff] }
 0x5a0   :  { %v5031_v26 = vpop.f32.mrb[39].mxu1  ;;  %5081 = vmatmul.mubr.msk.bf16.vlgmr.msra.gmra.mrb[52].mxu1 %vm885_vm2, %v1719_v20 }
 0x5a1   :  { %5093 = vmatpush3.bf16.xpose.msra.mxu1 %v1938_v24  ;;  %5096 = vmatprep.mubr.msk.bf16.mxu1 %vm5702_vm1, %v5701_v16  ;;  %v5527_v24 = vld [vmem:[%s6779_s28 + $0x8] sm:$0xff] }
 0x5a2   :  { %5094 = vmatprep.subr.bf16.mxu1 %v5701_v16 }
 0x5a9   :  { %5095 = vmatpush3.bf16.xpose.msra.mxu1 %v1941_v28 }
 0x5aa   :  { %5120 = vmatprep.subr.bf16.mxu1 %v5701_v16 }
 0x5ab   :  { %v1483_v30 = vpop.f32.mrb[48].mxu0 }
 0x5ac   :  { %v5036_v32 = vpop.f32.mrb[49].mxu0 }
 0x5ad   :  { %v1486_v2 = vpop.f32.mrb[50].mxu0  ;;  %v1529_v7 = vpop.f32.mrb[40].mxu1  ;;  %v5399_v32 = vld [vmem:[%s6758_s13 + $0x8] sm:$0xff]  }
 0x5ae   :  { %v1724_v33 = vpack.c.bf16 %v1529_v7, %v1483_v30  ;;  %v5037_v18 = vpop.f32.mrb[51].mxu0  ;;  %v5042_v34 = vpop.f32.mrb[41].mxu1  ;;  %v2109_v30 = vsel %vm171_vm0, %v5398_v29, 0  ;;  %v2112_v2 = vsel %vm171_vm0, %v5399_v32, 0  ;;  %v5400_v7 = vld [vmem:[%s6758_s13 + $0x10] sm:$0xff]  }
 0x5af   :  { %v1532_v23 = vpop.f32.mrb[42].mxu1  ;;  %v5401_v18 = vld [vmem:[%s6758_s13 + $0x18] sm:$0xff]  }
 0x5b0   :  { %v5043_v31 = vpop.f32.mrb[43].mxu1  ;;  %5073 = vmatmul.mubr.msk.bf16.vlgmr.msra.gmra.mrb[60].mxu0 %vm885_vm2, %v1724_v33  ;;  %v2115_v33 = vsel %vm171_vm0, %v5400_v7, 0  ;;  %v2118_v34 = vsel %vm171_vm0, %v5401_v18, 0 }
 0x5b1   :  { %5085 = vmatpush3.bf16.xpose.msra.mxu0 %v1870_v35  ;;  %5088 = vmatprep.mubr.msk.bf16.mxu0 %vm5702_vm1, %v5701_v16  ;;  %v5402_v35 = vld [vmem:[%s6758_s13 + $0x20] sm:$0xff]  }
 0x5b2   :  { %5086 = vmatprep.subr.bf16.mxu0 %v5701_v16  ;;  %v2121_v23 = vsel %vm171_vm0, %v5402_v35, 0 }
 0x5b3   :  { %v1575_v37 = vpop.f32.mrb[52].mxu0 }
 0x5b4   :  { %v5048_v38 = vpop.f32.mrb[53].mxu0 }
 0x5b5   :  { %v1578_v40 = vpop.f32.mrb[54].mxu0  ;;  %v1621_v42 = vpop.f32.mrb[44].mxu1 }
 0x5b6   :  { %v1850_v43 = vpack.c.bf16 %v1621_v42, %v1575_v37  ;;  %v5049_v44 = vpop.f32.mrb[55].mxu0  ;;  %v5054_v3 = vpop.f32.mrb[45].mxu1 }
 0x5b7   :  { %v1624_v6 = vpop.f32.mrb[46].mxu1 }
 0x5b8   :  { %v5055_v47 = vpop.f32.mrb[47].mxu1  ;;  %v5403_v6 = vld [vmem:[%s6758_s13 + $0x28] sm:$0xff]  }
 0x5b9   :  { %5087 = vmatpush3.bf16.xpose.msra.mxu0 %v1873_v46  ;;  %v2124_v47 = vsel %vm171_vm0, %v5403_v6, 0 }
 0x5ba   :  { %5100 = vmatprep.subr.bf16.mxu0 %v5701_v16 }
 0x5c0   :  { %5089 = vmatmul.mubr.msk.bf16.vlgmr.msra.gmra.mrb[64].mxu0 %vm885_vm2, %v1850_v43 }
 0x5c1   :  { %5116 = vmatprep.mubr.msk.bf16.mxu0 %vm5702_vm1, %v5701_v16  ;;  %5101 = vmatpush3.bf16.xpose.msra.mxu0 %v2109_v30 }
 0x5c2   :  { %5102 = vmatprep.subr.bf16.mxu0 %v5701_v16 }
 0x5c3   :  { %v1667_v48 = vpop.f32.mrb[56].mxu0 }
 0x5c4   :  { %v5060_v41 = vpop.f32.mrb[57].mxu0 }
 0x5c5   :  { %v1670_v50 = vpop.f32.mrb[58].mxu0  ;;  %v1713_v45 = vpop.f32.mrb[48].mxu1 }
 0x5c6   :  { %v1918_v49 = vpack.c.bf16 %v1713_v45, %v1667_v48  ;;  %v5061_v51 = vpop.f32.mrb[59].mxu0  ;;  %v5066_v56 = vpop.f32.mrb[49].mxu1  ;;  %v5404_v48 = vld [vmem:[%s6758_s13 + $0x30] sm:$0xff]   ;;  %v5405_v50 = vld [vmem:[%s6758_s13 + $0x38] sm:$0xff]  }
 0x5c7   :  { %v1716_v52 = vpop.f32.mrb[50].mxu1  ;;  %v2127_v41 = vsel %vm171_vm0, %v5404_v48, 0  ;;  %v2130_v45 = vsel %vm171_vm0, %v5405_v50, 0 }
 0x5c8   :  { %v5067_v53 = vpop.f32.mrb[51].mxu1  ;;  %5097 = vmatmul.mubr.msk.bf16.vlgmr.msra.gmra.mrb[56].mxu1 %vm885_vm2, %v1918_v49 }
 0x5c9   :  { %5124 = vmatprep.mubr.msk.bf16.mxu1 %vm5702_vm1, %v5701_v16  ;;  %5103 = vmatpush3.bf16.xpose.msra.mxu0 %v2112_v2 }
 0x5ca   :  { %5104 = vmatprep.subr.bf16.mxu0 %v5701_v16 }
 0x5d1   :  { %5105 = vmatpush3.bf16.xpose.msra.mxu0 %v2115_v33 }
 0x5d2   :  { %5106 = vmatprep.subr.bf16.mxu0 %v5701_v16 }
 0x5d9   :  { %5107 = vmatpush3.bf16.xpose.msra.mxu0 %v2118_v34 }
 0x5da   :  { %5108 = vmatprep.subr.bf16.mxu0 %v5701_v16 }
 0x5e1   :  { %5109 = vmatpush3.bf16.xpose.msra.mxu0 %v2121_v23 }
 0x5e2   :  { %5110 = vmatprep.subr.bf16.mxu0 %v5701_v16 }
 0x5e9   :  { %5111 = vmatpush3.bf16.xpose.msra.mxu0 %v2124_v47 }
 0x5ea   :  { %5112 = vmatprep.subr.bf16.mxu0 %v5701_v16 }
 0x5f1   :  { %5113 = vmatpush3.bf16.xpose.msra.mxu0 %v2127_v41 }
 0x5f2   :  { %5114 = vmatprep.subr.bf16.mxu0 %v5701_v16 }
 0x5f9   :  { %5115 = vmatpush3.bf16.xpose.msra.mxu0 %v2130_v45 }
 0x5fa   :  { %5164 = vmatprep.subr.bf16.mxu0 %v5701_v16 }
 0x673   :  { %v1843_v55 = vpop.f32.mrb[52].mxu1 }
 0x674   :  { %v5082_v57 = vpop.f32.mrb[53].mxu1 }
 0x675   :  { %v1846_v54 = vpop.f32.mrb[54].mxu1 }
 0x676   :  { %v5083_v58 = vpop.f32.mrb[55].mxu1 }
 0x683   :  { %v1783_v59 = vpop.f32.mrb[60].mxu0 }
 0x684   :  { %v1844_v60 = vadd.f32 %v1843_v55, %v1783_v59  ;;  %v5074_v62 = vpop.f32.mrb[61].mxu0 }
 0x685   :  { %v1786_v63 = vpop.f32.mrb[62].mxu0 }
 0x686   :  { %v1847_v0 = vadd.f32 %v1846_v54, %v1786_v63  ;;  %v5075_v61 = vpop.f32.mrb[63].mxu0  ;;  %v4602_v54 = vld [vmem:[%s6756_s11] ss:$0 sm:$0xff] }
 0x687   :  { %v4603_v63 = vld [vmem:[%s6757_s12] ss:$0 sm:$0xff] }
 0x693   :  { %v1909_v1 = vpop.f32.mrb[64].mxu0 }
 0x694   :  { %v1916_v4 = vadd.f32 %v1909_v1, %v1844_v60  ;;  %v5090_v5 = vpop.f32.mrb[65].mxu0 }
 0x695   :  { %v1912_v8 = vpop.f32.mrb[66].mxu0  ;;  %v5406_v5 = vld [vmem:[#allocation12] sm:$0xff]  }
 0x696   :  { %v1917_v9 = vadd.f32 %v1912_v8, %v1847_v0  ;;  %v5091_v10 = vpop.f32.mrb[67].mxu0  ;;  %5121 = vmatpush3.bf16.xpose.msra.mxu1 %v5406_v5  ;;  %v5407_v8 = vld [vmem:[#allocation12 + $0x8] sm:$0xff]  }
 0x697   :  { %5122 = vmatprep.subr.bf16.mxu1 %v5701_v16 }
 0x69b   :  { %v1977_v11 = vpop.f32.mrb[56].mxu1 }
 0x69c   :  { %v1984_v12 = vadd.f32 %v1977_v11, %v1916_v4  ;;  %v5098_v13 = vpop.f32.mrb[57].mxu1 }
 0x69d   :  { %v1980_v15 = vpop.f32.mrb[58].mxu1 }
 0x69e   :  { %v1986_v19 = vadd.f32 %v5526_v17, %v1984_v12  ;;  %v1985_v20 = vadd.f32 %v1980_v15, %v1917_v9  ;;  %v5099_v21 = vpop.f32.mrb[59].mxu1  ;;  %5123 = vmatpush3.bf16.xpose.msra.mxu1 %v5407_v8  ;;  %v4604_v9 = vld [vmem:[#allocation10] ss:$0 sm:$0xff] }
 0x69f   :  { %5128 = vmatprep.subr.bf16.mxu1 %v5701_v16 }
 0x6a0   :  { %v6247_v22 = vadd.f32 %v4601_v14, %v1986_v19  ;;  %v1987_v25 = vadd.f32 %v5527_v24, %v1985_v20 }
 0x6a2   :  { %v6252_v26 = vadd.f32 %v4601_v14, %v1987_v25  ;;  %v1999_v27 = vsel %vm171_vm0, %v6247_v22, 0.0 }
 0x6a3   :  { %2000 = vadd.xlane.f32.xlu0 %v1999_v27 }
 0x6a4   :  { %v2002_v28 = vsel %vm171_vm0, %v6252_v26, 0.0 }
 0x6a5   :  { %2003 = vadd.xlane.f32.xlu1 %v2002_v28 }
 0x730   :  { %v2001_v31 = vpop.xlane.xlu0 %2000 }
 0x731   :  { %v2005_v36 = vmul.f32 0.03125, %v2001_v31 }
 0x732   :  { %v2004_v37 = vpop.xlane.xlu1 %2003 }
 0x733   :  { %v2007_v38 = vsub.f32 %v6247_v22, %v2005_v36  ;;  %v2006_v40 = vmul.f32 0.03125, %v2004_v37  ;;  %v4614_v36 = vld [vmem:[%s6761_s16] ss:$0 sm:$0xff] }
 0x735   :  { %v2008_v42 = vsub.f32 %v6252_v26, %v2006_v40  ;;  %v2009_v43 = vmul.f32 %v2007_v38, %v2007_v38 }
 0x737   :  { %v2011_v44 = vsel %vm171_vm0, %v2009_v43, 0.0  ;;  %v2010_v3 = vmul.f32 %v2008_v42, %v2008_v42 }
 0x738   :  { %2012 = vadd.xlane.f32.xlu0 %v2011_v44 }
 0x739   :  { %v2014_v46 = vsel %vm171_vm0, %v2010_v3, 0.0 }
 0x73a   :  { %2015 = vadd.xlane.f32.xlu1 %v2014_v46 }
 0x7c5   :  { %v2013_v49 = vpop.xlane.xlu0 %2012 }
 0x7c6   :  { %v2017_v51 = vmul.f32 0.03125, %v2013_v49 }
 0x7c7   :  { %v2016_v56 = vpop.xlane.xlu1 %2015 }
 0x7c8   :  { %v2019_v52 = vadd.f32 1e-05, %v2017_v51  ;;  %v2018_v53 = vmul.f32 0.03125, %v2016_v56 }
 0x7ca   :  { %5470 = vrsqrt.f32 %v2019_v52  ;;  %v2020_v55 = vadd.f32 1e-05, %v2018_v53  ;;  %v2306_v53 = vld [vmem:[#allocation2 + $0x10] sm:$0xf] }
 0x7cc   :  { %5472 = vrsqrt.f32 %v2020_v55  ;;  %v2633_v55 = vld [vmem:[#allocation2 + $0x18] sm:$0xf] }
 0x7d4   :  { %v5471_v57 = vpop.eup %5470 }
 0x7d5   :  { %v2023_v58 = vmul.f32 %v5471_v57, %v2007_v38  ;;  %v2319_v57 = vsel %vm171_vm0, %v2306_v53, 0 }
 0x7d6   :  { %v5473_v59 = vpop.eup %5472 }
 0x7d7   :  { %v2031_v60 = vmul.f32 %v4602_v54, %v2023_v58  ;;  %v2024_v62 = vmul.f32 %v5473_v59, %v2008_v42 }
 0x7d9   :  { %v2032_v0 = vmul.f32 %v4602_v54, %v2024_v62  ;;  %v2039_v61 = vadd.f32 %v4603_v63, %v2031_v60  ;;  %v2643_v54 = vsel %vm171_vm0, %v2633_v55, 0  ;;  %v4622_v55 = vld [vmem:[%s6782_s24 + $0x4] ss:$0 sm:$0xff] }
 0x7db   :  { %v2040_v1 = vadd.f32 %v4603_v63, %v2032_v0 }
 0x7dd   :  { %v2041_v4 = vpack.c.bf16 %v2040_v1, %v2039_v61  ;;  %v4619_v1 = vld [vmem:[%s6780_s0 + $0x1] ss:$0 sm:$0xff] }
 0x7df   :  { %5117 = vmatmul.mubr.msk.bf16.vlgmr.msra.gmra.mrb[68].mxu0 %vm171_vm0, %v2041_v4 }
 0x7e0   :  { %5166 = vmatprep.mubr.msk.bf16.mxu0 %vm5702_vm1, %v5701_v16  ;;  %5165 = vmatpush3.bf16.xpose.msra.mxu0 %v2643_v54 }
 0x7e1   :  { %5176 = vmatprep.subr.bf16.mxu0 %v5701_v16 }
 0x8b2   :  { %v2166_v10 = vpop.f32.mrb[68].mxu0 }
 0x8b3   :  { %v2167_v11 = vadd.f32 %v4604_v9, %v2166_v10  ;;  %v5118_v12 = vpop.f32.mrb[69].mxu0  ;;  %v4620_v10 = vld [vmem:[%s6781_s23 + $0x1] ss:$0 sm:$0xff] }
 0x8b4   :  { %v2169_v13 = vpop.f32.mrb[70].mxu0  ;;  %v2363_v12 = vld [vmem:[#allocation4 + $0x10] sm:$0xf] }
 0x8b5   :  { %v2175_v14 = vmul.f32 0.044715, %v2167_v11  ;;  %v2170_v15 = vadd.f32 %v4604_v9, %v2169_v13  ;;  %v5119_v17 = vpop.f32.mrb[71].mxu0  ;;  %v2173_v33 = vmul.f32 0.5, %v2167_v11  ;;  %v2741_v13 = vld [vmem:[#allocation6 + $0x18] sm:$0xf] }
 0x8b7   :  { %v2177_v19 = vmul.f32 %v2175_v14, %v2167_v11  ;;  %v2176_v20 = vmul.f32 0.044715, %v2170_v15  ;;  %v2174_v18 = vmul.f32 0.5, %v2170_v15 }
 0x8b9   :  { %v2179_v21 = vmul.f32 %v2177_v19, %v2167_v11  ;;  %v2178_v24 = vmul.f32 %v2176_v20, %v2170_v15  ;;  %v2373_v19 = vsel %vm171_vm0, %v2363_v12, 0  ;;  %v2751_v20 = vsel %vm171_vm0, %v2741_v13, 0 }
 0x8bb   :  { %v2181_v25 = vadd.f32 %v2179_v21, %v2167_v11  ;;  %v2180_v27 = vmul.f32 %v2178_v24, %v2170_v15  ;;  %v2417_v21 = vld [vmem:[#allocation6 + $0x10] sm:$0xf]  ;;  %v2849_v24 = vld [vmem:[#allocation4 + $0x1c] sm:$0xf] }
 0x8bd   :  { %v2183_v28 = vmul.f32 0.7978846, %v2181_v25  ;;  %v2182_v29 = vadd.f32 %v2180_v27, %v2170_v15  ;;  %v2427_v25 = vsel %vm171_vm0, %v2417_v21, 0  ;;  %v2859_v27 = vsel %vm171_vm0, %v2849_v24, 0 }
 0x8bf   :  { %5474 = vtanh.f32 %v2183_v28  ;;  %v2184_v30 = vmul.f32 0.7978846, %v2182_v29  ;;  %v2471_v28 = vld [vmem:[#allocation2 + $0x14] sm:$0xf] }
 0x8c0   :  { %v2481_v29 = vsel %vm171_vm0, %v2471_v28, 0  ;;  %v4631_v28 = vld [vmem:[%s6782_s24 + $0x5] ss:$0 sm:$0xff] }
 0x8c1   :  { %5476 = vtanh.f32 %v2184_v30  ;;  %v2525_v30 = vld [vmem:[#allocation4 + $0x14] sm:$0xf] }
 0x8c9   :  { %v5475_v32 = vpop.eup %5474 }
 0x8ca   :  { %v2187_v2 = vadd.f32 1.0, %v5475_v32  ;;  %v2535_v32 = vsel %vm171_vm0, %v2525_v30, 0 }
 0x8cb   :  { %v5477_v7 = vpop.eup %5476 }
 0x8cc   :  { %v2188_v34 = vadd.f32 1.0, %v5477_v7  ;;  %v2189_v35 = vmul.f32 %v2187_v2, %v2173_v33  ;;  %v2579_v2 = vld [vmem:[#allocation6 + $0x14] sm:$0xf]  ;;  %v2687_v33 = vld [vmem:[#allocation4 + $0x18] sm:$0xf] }
 0x8cd   :  { %v2589_v7 = vsel %vm171_vm0, %v2579_v2, 0 }
 0x8ce   :  { %v2190_v23 = vmul.f32 %v2188_v34, %v2174_v18  ;;  %v2697_v18 = vsel %vm171_vm0, %v2687_v33, 0  ;;  %v2795_v34 = vld [vmem:[#allocation2 + $0x1c] sm:$0xf] }
 0x8d0   :  { %v2191_v31 = vpack.c.bf16 %v2190_v23, %v2189_v35  ;;  %v2805_v35 = vsel %vm171_vm0, %v2795_v34, 0  ;;  %v2903_v23 = vld [vmem:[#allocation6 + $0x1c] sm:$0xf] }
 0x8d2   :  { %5125 = vmatmul.mubr.bf16.vlgmr.msra.gmra.mrb[60].mxu1 %v2191_v31  ;;  %v2913_v31 = vsel %vm171_vm0, %v2903_v23, 0 }
 0x8d3   :  { %5130 = vmatprep.mubr.msk.bf16.mxu1 %vm5702_vm1, %v5701_v16  ;;  %5129 = vmatpush3.bf16.xpose.msra.mxu1 %v2319_v57 }
 0x8d4   :  { %5134 = vmatprep.subr.bf16.mxu1 %v5701_v16 }
 0x9a5   :  { %v2249_v37 = vpop.f32.mrb[60].mxu1 }
 0x9a6   :  { %v2250_v38 = vadd.f32 %v4614_v36, %v2249_v37  ;;  %v5126_v40 = vpop.f32.mrb[61].mxu1 }
 0x9a7   :  { %v2252_v42 = vpop.f32.mrb[62].mxu1 }
 0x9a8   :  { %v6319_v43 = vadd.f32 %v2250_v38, %v6247_v22  ;;  %v2253_v44 = vadd.f32 %v4614_v36, %v2252_v42  ;;  %v5127_v3 = vpop.f32.mrb[63].mxu1 }
 0x9aa   :  { %v6322_v46 = vadd.f32 %v2253_v44, %v6252_v26  ;;  %v2262_v6 = vsel %vm171_vm0, %v6319_v43, 0.0 }
 0x9ab   :  { %2263 = vadd.xlane.f32.xlu0 %v2262_v6 }
 0x9ac   :  { %v2265_v47 = vsel %vm171_vm0, %v6322_v46, 0.0 }
 0x9ad   :  { %2266 = vadd.xlane.f32.xlu1 %v2265_v47  ;;  %v4625_v47 = vld [vmem:[%s6751_s6 + $0x4] ss:$0 sm:$0xff] }
 0xa38   :  { %v2264_v48 = vpop.xlane.xlu0 %2263 }
 0xa39   :  { %v2268_v41 = vmul.f32 0.03125, %v2264_v48 }
 0xa3a   :  { %v2267_v50 = vpop.xlane.xlu1 %2266 }
 0xa3b   :  { %v2270_v45 = vsub.f32 %v6319_v43, %v2268_v41  ;;  %v2269_v22 = vmul.f32 0.03125, %v2267_v50 }
 0xa3d   :  { %v2271_v49 = vsub.f32 %v6322_v46, %v2269_v22  ;;  %v2272_v51 = vmul.f32 %v2270_v45, %v2270_v45 }
 0xa3f   :  { %v2274_v26 = vsel %vm171_vm0, %v2272_v51, 0.0  ;;  %v2273_v56 = vmul.f32 %v2271_v49, %v2271_v49 }
 0xa40   :  { %2275 = vadd.xlane.f32.xlu0 %v2274_v26 }
 0xa41   :  { %v2277_v52 = vsel %vm171_vm0, %v2273_v56, 0.0 }
 0xa42   :  { %2278 = vadd.xlane.f32.xlu1 %v2277_v52 }
 0xacd   :  { %v2276_v58 = vpop.xlane.xlu0 %2275 }
 0xace   :  { %v2280_v59 = vmul.f32 0.03125, %v2276_v58 }
 0xacf   :  { %v2279_v60 = vpop.xlane.xlu1 %2278 }
 0xad0   :  { %v2282_v62 = vadd.f32 1e-05, %v2280_v59  ;;  %v2281_v63 = vmul.f32 0.03125, %v2279_v60 }
 0xad2   :  { %5478 = vrsqrt.f32 %v2282_v62  ;;  %v2283_v0 = vadd.f32 1e-05, %v2281_v63 }
 0xad4   :  { %5480 = vrsqrt.f32 %v2283_v0 }
 0xadc   :  { %v5479_v61 = vpop.eup %5478 }
 0xadd   :  { %v2286_v4 = vmul.f32 %v5479_v61, %v2270_v45 }
 0xade   :  { %v5481_v5 = vpop.eup %5480 }
 0xadf   :  { %v2294_v8 = vmul.f32 %v4619_v1, %v2286_v4  ;;  %v2287_v9 = vmul.f32 %v5481_v5, %v2271_v49 }
 0xae1   :  { %v2295_v11 = vmul.f32 %v4619_v1, %v2287_v9  ;;  %v2302_v14 = vadd.f32 %v4620_v10, %v2294_v8 }
 0xae3   :  { %v2303_v15 = vadd.f32 %v4620_v10, %v2295_v11 }
 0xae5   :  { %v2304_v17 = vpack.c.bf16 %v2303_v15, %v2302_v14  ;;  %v4634_v15 = vld [vmem:[%s6751_s6 + $0x5] ss:$0 sm:$0xff] }
 0xae7   :  { %5131 = vmatmul.mubr.msk.bf16.vlgmr.msra.gmra.mrb[64].mxu1 %vm171_vm0, %v2304_v17  ;;  %5167 = vmatmul.mubr.msk.bf16.vlgmr.msra.gmra.mrb[72].mxu0 %vm171_vm0, %v2304_v17 }
 0xae8   :  { %5135 = vmatpush3.bf16.xpose.msra.mxu1 %v2373_v19  ;;  %5177 = vmatpush3.bf16.xpose.msra.mxu0 %v2751_v20 }
 0xae9   :  { %5136 = vmatprep.mubr.msk.bf16.mxu1 %vm5702_vm1, %v5701_v16  ;;  %5178 = vmatprep.mubr.msk.bf16.mxu0 %vm5702_vm1, %v5701_v16 }
 0xaea   :  { %5140 = vmatprep.subr.bf16.mxu1 %v5701_v16  ;;  %5188 = vmatprep.subr.bf16.mxu0 %v5701_v16 }
 0xaef   :  { %5137 = vmatmul.mubr.msk.bf16.vlgmr.msra.gmra.mrb[68].mxu1 %vm171_vm0, %v2304_v17  ;;  %5179 = vmatmul.mubr.msk.bf16.vlgmr.msra.gmra.mrb[76].mxu0 %vm171_vm0, %v2304_v17 }
 0xaf0   :  { %5141 = vmatpush3.bf16.xpose.msra.mxu1 %v2427_v25  ;;  %5189 = vmatpush3.bf16.xpose.msra.mxu0 %v2859_v27 }
 0xaf1   :  { %5142 = vmatprep.mubr.msk.bf16.mxu1 %vm5702_vm1, %v5701_v16  ;;  %5190 = vmatprep.mubr.msk.bf16.mxu0 %vm5702_vm1, %v5701_v16 }
 0xaf2   :  { %5146 = vmatprep.subr.bf16.mxu1 %v5701_v16  ;;  %5200 = vmatprep.subr.bf16.mxu0 %v5701_v16 }
 0xaf7   :  { %5143 = vmatmul.mubr.msk.bf16.vlgmr.msra.gmra.mrb[72].mxu1 %vm171_vm0, %v2304_v17  ;;  %5191 = vmatmul.mubr.msk.bf16.vlgmr.msra.gmra.mrb[80].mxu0 %vm171_vm0, %v2304_v17 }
 0xaf8   :  { %5147 = vmatpush3.bf16.xpose.msra.mxu1 %v2481_v29  ;;  %5148 = vmatprep.mubr.msk.bf16.mxu1 %vm5702_vm1, %v5701_v16 }
 0xaf9   :  { %5152 = vmatprep.subr.bf16.mxu1 %v5701_v16  ;;  %5202 = vmatprep.mubr.msk.bf16.mxu0 %vm5702_vm1, %v5701_v16 }
 0xaff   :  { %5149 = vmatmul.mubr.msk.bf16.vlgmr.msra.gmra.mrb[76].mxu1 %vm171_vm0, %v2304_v17 }
 0xb00   :  { %5153 = vmatpush3.bf16.xpose.msra.mxu1 %v2535_v32  ;;  %5154 = vmatprep.mubr.msk.bf16.mxu1 %vm5702_vm1, %v5701_v16 }
 0xb01   :  { %5158 = vmatprep.subr.bf16.mxu1 %v5701_v16 }
 0xb07   :  { %5155 = vmatmul.mubr.msk.bf16.vlgmr.msra.gmra.mrb[80].mxu1 %vm171_vm0, %v2304_v17 }
 0xb08   :  { %5159 = vmatpush3.bf16.xpose.msra.mxu1 %v2589_v7  ;;  %5160 = vmatprep.mubr.msk.bf16.mxu1 %vm5702_vm1, %v5701_v16 }
 0xb09   :  { %5170 = vmatprep.subr.bf16.mxu1 %v5701_v16 }
 0xb0f   :  { %5161 = vmatmul.mubr.msk.bf16.vlgmr.msra.gmra.mrb[84].mxu1 %vm171_vm0, %v2304_v17 }
 0xb10   :  { %5171 = vmatpush3.bf16.xpose.msra.mxu1 %v2697_v18  ;;  %5172 = vmatprep.mubr.msk.bf16.mxu1 %vm5702_vm1, %v5701_v16 }
 0xb11   :  { %5182 = vmatprep.subr.bf16.mxu1 %v5701_v16 }
 0xb17   :  { %5173 = vmatmul.mubr.msk.bf16.vlgmr.msra.gmra.mrb[88].mxu1 %vm171_vm0, %v2304_v17 }
 0xb18   :  { %5183 = vmatpush3.bf16.xpose.msra.mxu1 %v2805_v35  ;;  %5184 = vmatprep.mubr.msk.bf16.mxu1 %vm5702_vm1, %v5701_v16 }
 0xb19   :  { %5194 = vmatprep.subr.bf16.mxu1 %v5701_v16 }
 0xb1f   :  { %5185 = vmatmul.mubr.msk.bf16.vlgmr.msra.gmra.mrb[92].mxu1 %vm171_vm0, %v2304_v17 }
 0xb20   :  { %5195 = vmatpush3.bf16.xpose.msra.mxu1 %v2913_v31  ;;  %5196 = vmatprep.mubr.msk.bf16.mxu1 %vm5702_vm1, %v5701_v16 }
 0xb21   :  { %5206 = vmatprep.subr.bf16.mxu1 %v5701_v16 }
 0xb27   :  { %5197 = vmatmul.mubr.msk.bf16.vlgmr.msra.gmra.mrb[96].mxu1 %vm171_vm0, %v2304_v17 }
 0xb28   :  { %5208 = vmatprep.mubr.msk.bf16.mxu1 %vm5702_vm1, %v5701_v16 }
 0xbba   :  { %v2355_v36 = vpop.f32.mrb[64].mxu1  ;;  %v6398_v37 = vpop.f32.mrb[72].mxu0 }
 0xbbb   :  { %v5132_v38 = vpop.f32.mrb[65].mxu1  ;;  %v5168_v40 = vpop.f32.mrb[73].mxu0  ;;  %v2356_v58 = vadd.f32 %v4622_v55, %v2355_v36  ;;  %v4643_v36 = vld [vmem:[%s6751_s6 + $0x6] ss:$0 sm:$0xff] }
 0xbbc   :  { %v2358_v42 = vpop.f32.mrb[66].mxu1  ;;  %v6400_v44 = vpop.f32.mrb[74].mxu0 }
 0xbbd   :  { %v5133_v3 = vpop.f32.mrb[67].mxu1  ;;  %v5169_v6 = vpop.f32.mrb[75].mxu0  ;;  %v2359_v63 = vadd.f32 %v4622_v55, %v2358_v42  ;;  %v2956_v5 = vpack.c.bf16 %v2356_v58, %v2356_v58 }
 0xbbe   :  { %v4652_v3 = vld [vmem:[%s6751_s6 + $0x7] ss:$0 sm:$0xff] }
 0xbbf   :  { %v2957_v10 = vpack.c.bf16 %v2359_v63, %v2359_v63 }
 0xbc2   :  { %v2409_v48 = vpop.f32.mrb[68].mxu1  ;;  %v6405_v41 = vpop.f32.mrb[76].mxu0 }
 0xbc3   :  { %v2410_v50 = vadd.f32 %v4625_v47, %v2409_v48  ;;  %v5138_v45 = vpop.f32.mrb[69].mxu1  ;;  %v5180_v22 = vpop.f32.mrb[77].mxu0 }
 0xbc4   :  { %v2412_v49 = vpop.f32.mrb[70].mxu1  ;;  %v6407_v51 = vpop.f32.mrb[78].mxu0  ;;  %v4640_v45 = vld [vmem:[%s6782_s24 + $0x6] ss:$0 sm:$0xff] }
 0xbc5   :  { %v2964_v26 = vpack.c.bf16 %v2410_v50, %v2410_v50  ;;  %v2413_v56 = vadd.f32 %v4625_v47, %v2412_v49  ;;  %v5139_v52 = vpop.f32.mrb[71].mxu1  ;;  %v5181_v53 = vpop.f32.mrb[79].mxu0 }
 0xbc7   :  { %v2984_v57 = vsel %vm885_vm2, %v2964_v26, 0  ;;  %v2965_v54 = vpack.c.bf16 %v2413_v56, %v2413_v56  ;;  %v2680_v56 = vadd.f32 %v4640_v45, %v6398_v37 }
 0xbc8   :  { %5201 = vmatpush3.bf16.xpose.msra.mxu0 %v2984_v57  ;;  %v2683_v57 = vadd.f32 %v4640_v45, %v6400_v44 }
 0xbc9   :  { %v3030_v59 = vsel %vm885_vm2, %v2965_v54, 0  ;;  %5212 = vmatprep.subr.bf16.mxu0 %v5701_v16  ;;  %v2960_v63 = vpack.c.bf16 %v2680_v56, %v2680_v56 }
 0xbca   :  { %v6415_v60 = vpop.f32.mrb[72].mxu1  ;;  %v2895_v62 = vpop.f32.mrb[80].mxu0  ;;  %5207 = vmatpush3.bf16.xpose.msra.mxu1 %v3030_v59  ;;  %v4628_v59 = vld [vmem:[%s6753_s8 + $0x4] ss:$0 sm:$0xff] }
 0xbcb   :  { %v5144_v0 = vpop.f32.mrb[73].mxu1  ;;  %v5192_v61 = vpop.f32.mrb[81].mxu0  ;;  %5218 = vmatprep.subr.bf16.mxu1 %v5701_v16  ;;  %v2896_v22 = vadd.f32 %v4652_v3, %v2895_v62 }
 0xbcc   :  { %v6418_v1 = vpop.f32.mrb[74].mxu1  ;;  %v2898_v4 = vpop.f32.mrb[82].mxu0  ;;  %v4649_v61 = vld [vmem:[%s6782_s24 + $0x7] ss:$0 sm:$0xff] }
 0xbcd   :  { %v5145_v8 = vpop.f32.mrb[75].mxu1  ;;  %v5193_v9 = vpop.f32.mrb[83].mxu0  ;;  %v2899_v52 = vadd.f32 %v4652_v3, %v2898_v4  ;;  %v2970_v54 = vpack.c.bf16 %v2896_v22, %v2896_v22  ;;  %v2961_v4 = vpack.c.bf16 %v2683_v57, %v2683_v57 }
 0xbce   :  { %v2467_v8 = vadd.f32 %v4628_v59, %v6418_v1 }
 0xbcf   :  { %5203 = vmatmul.mubr.msk.bf16.vlgmr.msra.gmra.mrb[84].mxu0 %vm885_vm2, %v2956_v5  ;;  %v2971_v37 = vpack.c.bf16 %v2899_v52, %v2899_v52  ;;  %v2464_v5 = vadd.f32 %v4628_v59, %v6415_v60  ;;  %v3260_v44 = vsel %vm885_vm2, %v2970_v54, 0 }
 0xbd0   :  { %5214 = vmatprep.mubr.msk.bf16.mxu0 %vm5702_vm1, %v5701_v16  ;;  %v2973_v1 = vpack.c.bf16 %v2467_v8, %v2467_v8 }
 0xbd1   :  { %5209 = vmatmul.mubr.msk.bf16.vlgmr.msra.gmra.mrb[100].mxu1 %vm885_vm2, %v2957_v10  ;;  %v3306_v9 = vsel %vm885_vm2, %v2971_v37, 0  ;;  %v2972_v60 = vpack.c.bf16 %v2464_v5, %v2464_v5 }
 0xbd2   :  { %v2517_v11 = vpop.f32.mrb[76].mxu1  ;;  %5220 = vmatprep.mubr.msk.bf16.mxu1 %vm5702_vm1, %v5701_v16 }
 0xbd3   :  { %v5150_v12 = vpop.f32.mrb[77].mxu1  ;;  %v2518_v32 = vadd.f32 %v4631_v28, %v2517_v11 }
 0xbd4   :  { %v2520_v13 = vpop.f32.mrb[78].mxu1 }
 0xbd5   :  { %v5151_v14 = vpop.f32.mrb[79].mxu1  ;;  %v2521_v33 = vadd.f32 %v4631_v28, %v2520_v13  ;;  %v2958_v35 = vpack.c.bf16 %v2518_v32, %v2518_v32 }
 0xbd7   :  { %v2959_v31 = vpack.c.bf16 %v2521_v33, %v2521_v33 }
 0xbda   :  { %v2571_v17 = vpop.f32.mrb[80].mxu1 }
 0xbdb   :  { %v2572_v19 = vadd.f32 %v4634_v15, %v2571_v17  ;;  %v5156_v20 = vpop.f32.mrb[81].mxu1 }
 0xbdc   :  { %v2574_v21 = vpop.f32.mrb[82].mxu1 }
 0xbdd   :  { %v2966_v24 = vpack.c.bf16 %v2572_v19, %v2572_v19  ;;  %v2575_v25 = vadd.f32 %v4634_v15, %v2574_v21  ;;  %v5157_v27 = vpop.f32.mrb[83].mxu1  ;;  %v3448_v19 = vsel %vm1353_vm3, %v2972_v60, 0  ;;  %v3494_v21 = vsel %vm1353_vm3, %v2973_v1, 0 }
 0xbdf   :  { %v3076_v29 = vsel %vm885_vm2, %v2966_v24, 0  ;;  %v2967_v30 = vpack.c.bf16 %v2575_v25, %v2575_v25 }
 0xbe0   :  { %5213 = vmatpush3.bf16.xpose.msra.mxu0 %v3076_v29 }
 0xbe1   :  { %v3122_v2 = vsel %vm885_vm2, %v2967_v30, 0  ;;  %5224 = vmatprep.subr.bf16.mxu0 %v5701_v16 }
 0xbe2   :  { %v6435_v7 = vpop.f32.mrb[84].mxu1  ;;  %5219 = vmatpush3.bf16.xpose.msra.mxu1 %v3122_v2 }
 0xbe3   :  { %v5162_v18 = vpop.f32.mrb[85].mxu1  ;;  %5230 = vmatprep.subr.bf16.mxu1 %v5701_v16 }
 0xbe4   :  { %v6438_v34 = vpop.f32.mrb[86].mxu1 }
 0xbe5   :  { %v5163_v23 = vpop.f32.mrb[87].mxu1 }
 0xbe7   :  { %5215 = vmatmul.mubr.msk.bf16.vlgmr.msra.gmra.mrb[88].mxu0 %vm885_vm2, %v2958_v35 }
 0xbe8   :  { %5226 = vmatprep.mubr.msk.bf16.mxu0 %vm5702_vm1, %v5701_v16 }
 0xbe9   :  { %5221 = vmatmul.mubr.msk.bf16.vlgmr.msra.gmra.mrb[104].mxu1 %vm885_vm2, %v2959_v31 }
 0xbea   :  { %v2733_v38 = vpop.f32.mrb[88].mxu1  ;;  %5232 = vmatprep.mubr.msk.bf16.mxu1 %vm5702_vm1, %v5701_v16 }
 0xbeb   :  { %v2734_v40 = vadd.f32 %v4643_v36, %v2733_v38  ;;  %v5174_v42 = vpop.f32.mrb[89].mxu1 }
 0xbec   :  { %v2736_v6 = vpop.f32.mrb[90].mxu1 }
 0xbed   :  { %v2968_v47 = vpack.c.bf16 %v2734_v40, %v2734_v40  ;;  %v2737_v48 = vadd.f32 %v4643_v36, %v2736_v6  ;;  %v5175_v50 = vpop.f32.mrb[91].mxu1 }
 0xbef   :  { %v3168_v49 = vsel %vm885_vm2, %v2968_v47, 0  ;;  %v2969_v26 = vpack.c.bf16 %v2737_v48, %v2737_v48 }
 0xbf0   :  { %5225 = vmatpush3.bf16.xpose.msra.mxu0 %v3168_v49 }
 0xbf1   :  { %v3214_v53 = vsel %vm885_vm2, %v2969_v26, 0  ;;  %5236 = vmatprep.subr.bf16.mxu0 %v5701_v16 }
 0xbf2   :  { %v2841_v55 = vpop.f32.mrb[92].mxu1  ;;  %5231 = vmatpush3.bf16.xpose.msra.mxu1 %v3214_v53 }
 0xbf3   :  { %v5186_v58 = vpop.f32.mrb[93].mxu1  ;;  %5242 = vmatprep.subr.bf16.mxu1 %v5701_v16  ;;  %v2842_v10 = vadd.f32 %v4649_v61, %v2841_v55 }
 0xbf4   :  { %v2844_v62 = vpop.f32.mrb[94].mxu1 }
 0xbf5   :  { %v5187_v0 = vpop.f32.mrb[95].mxu1  ;;  %v2845_v12 = vadd.f32 %v4649_v61, %v2844_v62  ;;  %v2962_v15 = vpack.c.bf16 %v2842_v10, %v2842_v10 }
 0xbf7   :  { %5227 = vmatmul.mubr.msk.bf16.vlgmr.msra.gmra.mrb[92].mxu0 %vm885_vm2, %v2960_v63  ;;  %v2963_v20 = vpack.c.bf16 %v2845_v12, %v2845_v12 }
 0xbf8   :  { %5237 = vmatpush3.bf16.xpose.msra.mxu0 %v3260_v44  ;;  %5238 = vmatprep.mubr.msk.bf16.mxu0 %vm5702_vm1, %v5701_v16 }
 0xbf9   :  { %5233 = vmatmul.mubr.msk.bf16.vlgmr.msra.gmra.mrb[108].mxu1 %vm885_vm2, %v2961_v4  ;;  %5248 = vmatprep.subr.bf16.mxu0 %v5701_v16 }
 0xbfa   :  { %v6476_v11 = vpop.f32.mrb[96].mxu1  ;;  %5243 = vmatpush3.bf16.xpose.msra.mxu1 %v3306_v9  ;;  %5244 = vmatprep.mubr.msk.bf16.mxu1 %vm5702_vm1, %v5701_v16 }
 0xbfb   :  { %v5198_v13 = vpop.f32.mrb[97].mxu1  ;;  %5254 = vmatprep.subr.bf16.mxu1 %v5701_v16 }
 0xbfc   :  { %v6481_v14 = vpop.f32.mrb[98].mxu1 }
 0xbfd   :  { %v5199_v17 = vpop.f32.mrb[99].mxu1 }
 0xbff   :  { %5239 = vmatmul.mubr.msk.bf16.vlgmr.msra.gmra.mrb[96].mxu0 %vm885_vm2, %v2962_v15 }
 0xc00   :  { %5249 = vmatpush3.bf16.msra.mxu0 %v3448_v19  ;;  %5250 = vmatprep.mubr.msk.bf16.mxu0 %vm5702_vm1, %v5701_v16 }
 0xc01   :  { %5245 = vmatmul.mubr.msk.bf16.vlgmr.msra.gmra.mrb[112].mxu1 %vm885_vm2, %v2963_v20  ;;  %5260 = vmatprep.subr.bf16.mxu0 %v5701_v16 }
 0xc02   :  { %5255 = vmatpush3.bf16.msra.mxu1 %v3494_v21  ;;  %5256 = vmatprep.mubr.msk.bf16.mxu1 %vm5702_vm1, %v5701_v16 }
 0xc03   :  { %5266 = vmatprep.subr.bf16.mxu1 %v5701_v16 }
 0xca2   :  { %v3020_v24 = vpop.f32.mrb[84].mxu0 }
 0xca3   :  { %v3021_v25 = vadd.f32 %v3020_v24, %v6115_v39  ;;  %v5204_v27 = vpop.f32.mrb[85].mxu0 }
 0xca4   :  { %v3023_v28 = vpop.f32.mrb[86].mxu0  ;;  %v3066_v29 = vpop.f32.mrb[100].mxu1 }
 0xca5   :  { %v3067_v30 = vadd.f32 %v3066_v29, %v6115_v39  ;;  %v5205_v32 = vpop.f32.mrb[87].mxu0  ;;  %v5210_v2 = vpop.f32.mrb[101].mxu1  ;;  %v3348_v33 = vsel %vm885_vm2, %v3021_v25, -inf }
 0xca6   :  { %v3069_v18 = vpop.f32.mrb[102].mxu1  ;;  %3349 = vmax.xlane.f32.xlu0 %v3348_v33 }
 0xca7   :  { %v5211_v35 = vpop.f32.mrb[103].mxu1  ;;  %v3351_v23 = vsel %vm885_vm2, %v3067_v30, -inf }
 0xca8   :  { %3352 = vmax.xlane.f32.xlu1 %v3351_v23 }
 0xcba   :  { %v3112_v31 = vpop.f32.mrb[88].mxu0 }
 0xcbb   :  { %v3113_v36 = vadd.f32 %v3112_v31, %v6115_v39  ;;  %v5216_v38 = vpop.f32.mrb[89].mxu0 }
 0xcbc   :  { %v3115_v40 = vpop.f32.mrb[90].mxu0  ;;  %v3158_v42 = vpop.f32.mrb[104].mxu1 }
 0xcbd   :  { %v3159_v3 = vadd.f32 %v3158_v42, %v6115_v39  ;;  %v5217_v6 = vpop.f32.mrb[91].mxu0  ;;  %v5222_v47 = vpop.f32.mrb[105].mxu1  ;;  %v3354_v48 = vsel %vm885_vm2, %v3113_v36, -inf }
 0xcbe   :  { %v3161_v50 = vpop.f32.mrb[106].mxu1  ;;  %3355 = vmax.xlane.f32.xlu0 %v3354_v48 }
 0xcbf   :  { %v5223_v45 = vpop.f32.mrb[107].mxu1  ;;  %v3357_v22 = vsel %vm885_vm2, %v3159_v3, -inf }
 0xcc0   :  { %3358 = vmax.xlane.f32.xlu1 %v3357_v22 }
 0xcca   :  { %v3204_v49 = vpop.f32.mrb[92].mxu0 }
 0xccb   :  { %v3205_v26 = vadd.f32 %v3204_v49, %v6115_v39  ;;  %v5228_v56 = vpop.f32.mrb[93].mxu0 }
 0xccc   :  { %v3207_v52 = vpop.f32.mrb[94].mxu0  ;;  %v3250_v53 = vpop.f32.mrb[108].mxu1 }
 0xccd   :  { %v3251_v55 = vadd.f32 %v3250_v53, %v6115_v39  ;;  %v5229_v57 = vpop.f32.mrb[95].mxu0  ;;  %v5234_v54 = vpop.f32.mrb[109].mxu1  ;;  %v3360_v58 = vsel %vm885_vm2, %v3205_v26, -inf }
 0xcce   :  { %v3253_v59 = vpop.f32.mrb[110].mxu1  ;;  %3361 = vmax.xlane.f32.xlu0 %v3360_v58 }
 0xccf   :  { %v5235_v62 = vpop.f32.mrb[111].mxu1  ;;  %v3363_v63 = vsel %vm885_vm2, %v3251_v55, -inf }
 0xcd0   :  { %3364 = vmax.xlane.f32.xlu1 %v3363_v63  ;;  %v4637_v63 = vld [vmem:[%s6753_s8 + $0x5] ss:$0 sm:$0xff] }
 0xcd2   :  { %v3296_v37 = vpop.f32.mrb[96].mxu0 }
 0xcd3   :  { %v3297_v0 = vadd.f32 %v3296_v37, %v6115_v39  ;;  %v5240_v61 = vpop.f32.mrb[97].mxu0  ;;  %v2626_v37 = vadd.f32 %v4637_v63, %v6435_v7 }
 0xcd4   :  { %v3299_v4 = vpop.f32.mrb[98].mxu0  ;;  %v3342_v5 = vpop.f32.mrb[112].mxu1 }
 0xcd5   :  { %v3343_v44 = vadd.f32 %v3342_v5, %v6115_v39  ;;  %v5241_v8 = vpop.f32.mrb[99].mxu0  ;;  %v5246_v9 = vpop.f32.mrb[113].mxu1  ;;  %v3366_v10 = vsel %vm885_vm2, %v3297_v0, -inf  ;;  %v2974_v4 = vpack.c.bf16 %v2626_v37, %v2626_v37 }
 0xcd6   :  { %v3345_v60 = vpop.f32.mrb[114].mxu1  ;;  %3367 = vmax.xlane.f32.xlu0 %v3366_v10 }
 0xcd7   :  { %v5247_v12 = vpop.f32.mrb[115].mxu1  ;;  %v3369_v13 = vsel %vm885_vm2, %v3343_v44, -inf  ;;  %v3540_v60 = vsel %vm1353_vm3, %v2974_v4, 0 }
 0xcd8   :  { %3370 = vmax.xlane.f32.xlu1 %v3369_v13 }
 0xd33   :  { %v3350_v1 = vpop.xlane.xlu0 %3349 }
 0xd34   :  { %v3372_v15 = vsub.f32 %v3021_v25, %v3350_v1  ;;  %v4646_v1 = vld [vmem:[%s6753_s8 + $0x6] ss:$0 sm:$0xff] }
 0xd35   :  { %v3353_v17 = vpop.xlane.xlu1 %3352 }
 0xd36   :  { %v3380_v19 = vmul.f32 1.442695, %v3372_v15  ;;  %v3373_v20 = vsub.f32 %v3067_v30, %v3353_v17  ;;  %v2788_v15 = vadd.f32 %v4646_v1, %v6405_v41  ;;  %v2791_v17 = vadd.f32 %v4646_v1, %v6407_v51 }
 0xd38   :  { %5482 = vpow2.f32 %v3380_v19  ;;  %v3382_v21 = vmul.f32 1.442695, %v3373_v20  ;;  %v2976_v20 = vpack.c.bf16 %v2788_v15, %v2788_v15 }
 0xd3a   :  { %5484 = vpow2.f32 %v3382_v21 }
 0xd42   :  { %v5483_v24 = vpop.eup %5482 }
 0xd43   :  { %v3396_v39 = vsel %vm885_vm2, %v5483_v24, 0.0 }
 0xd44   :  { %v5485_v27 = vpop.eup %5484  ;;  %3397 = vadd.xlane.f32.xlu0 %v3396_v39  ;;  %v2977_v39 = vpack.c.bf16 %v2791_v17, %v2791_v17 }
 0xd45   :  { %v3399_v28 = vsel %vm885_vm2, %v5485_v27, 0.0 }
 0xd46   :  { %3400 = vadd.xlane.f32.xlu1 %v3399_v28  ;;  %v3678_v41 = vsel %vm1353_vm3, %v2977_v39, 0  ;;  %v5413_v39 = vld [vmem:[#allocation7 + $0x68] sm:$0xff]  }
 0xd4b   :  { %v3356_v29 = vpop.xlane.xlu0 %3355 }
 0xd4c   :  { %v3374_v32 = vsub.f32 %v3113_v36, %v3356_v29  ;;  %v3632_v29 = vsel %vm1353_vm3, %v2976_v20, 0 }
 0xd4d   :  { %v3359_v2 = vpop.xlane.xlu1 %3358 }
 0xd4e   :  { %v3384_v33 = vmul.f32 1.442695, %v3374_v32  ;;  %v3375_v18 = vsub.f32 %v3159_v3, %v3359_v2 }
 0xd50   :  { %5486 = vpow2.f32 %v3384_v33  ;;  %v3386_v25 = vmul.f32 1.442695, %v3375_v18  ;;  %v4655_v33 = vld [vmem:[%s6753_s8 + $0x7] ss:$0 sm:$0xff] }
 0xd51   :  { %v2950_v18 = vadd.f32 %v4655_v33, %v6476_v11 }
 0xd52   :  { %5488 = vpow2.f32 %v3386_v25 }
 0xd5a   :  { %v6511_v30 = vpop.eup %5486 }
 0xd5b   :  { %v3362_v35 = vpop.xlane.xlu0 %3361  ;;  %v3402_v23 = vsel %vm885_vm2, %v6511_v30, 0.0 }
 0xd5c   :  { %v6515_v31 = vpop.eup %5488  ;;  %v3376_v38 = vsub.f32 %v3205_v26, %v3362_v35  ;;  %3403 = vadd.xlane.f32.xlu0 %v3402_v23 }
 0xd5d   :  { %v3365_v40 = vpop.xlane.xlu1 %3364  ;;  %v3405_v36 = vsel %vm885_vm2, %v6515_v31, 0.0 }
 0xd5e   :  { %v3388_v42 = vmul.f32 1.442695, %v3376_v38  ;;  %v3377_v6 = vsub.f32 %v3251_v55, %v3365_v40  ;;  %3406 = vadd.xlane.f32.xlu1 %v3405_v36 }
 0xd60   :  { %5490 = vpow2.f32 %v3388_v42  ;;  %v3390_v3 = vmul.f32 1.442695, %v3377_v6 }
 0xd62   :  { %5492 = vpow2.f32 %v3390_v3 }
 0xd63   :  { %v3368_v47 = vpop.xlane.xlu0 %3367 }
 0xd64   :  { %v3378_v48 = vsub.f32 %v3297_v0, %v3368_v47  ;;  %v2629_v0 = vadd.f32 %v4637_v63, %v6438_v34 }
 0xd65   :  { %v3371_v50 = vpop.xlane.xlu1 %3370 }
 0xd66   :  { %v3392_v45 = vmul.f32 1.442695, %v3378_v48  ;;  %v3379_v22 = vsub.f32 %v3343_v44, %v3371_v50  ;;  %v2975_v8 = vpack.c.bf16 %v2629_v0, %v2629_v0 }
 0xd68   :  { %5494 = vpow2.f32 %v3392_v45  ;;  %v3394_v49 = vmul.f32 1.442695, %v3379_v22  ;;  %v3586_v7 = vsel %vm1353_vm3, %v2975_v8, 0  ;;  %v5408_v45 = vld [vmem:[#allocation7 + $0x40] sm:$0xff]  }
 0xd6a   :  { %v6519_v56 = vpop.eup %5490  ;;  %5496 = vpow2.f32 %v3394_v49 }
 0xd6b   :  { %v3408_v26 = vsel %vm885_vm2, %v6519_v56, 0.0 }
 0xd6c   :  { %v6523_v52 = vpop.eup %5492  ;;  %3409 = vadd.xlane.f32.xlu0 %v3408_v26  ;;  %v3898_v26 = vsel %vm885_vm2, %v5408_v45, 0 }
 0xd6d   :  { %v3411_v53 = vsel %vm885_vm2, %v6523_v52, 0.0 }
 0xd6e   :  { %3412 = vadd.xlane.f32.xlu1 %v3411_v53 }
 0xd72   :  { %v6527_v55 = vpop.eup %5494 }
 0xd73   :  { %v3414_v57 = vsel %vm885_vm2, %v6527_v55, 0.0 }
 0xd74   :  { %v6531_v54 = vpop.eup %5496  ;;  %3415 = vadd.xlane.f32.xlu0 %v3414_v57 }
 0xd75   :  { %v3417_v58 = vsel %vm885_vm2, %v6531_v54, 0.0 }
 0xd76   :  { %3418 = vadd.xlane.f32.xlu1 %v3417_v58 }
 0xdd1   :  { %v3398_v59 = vpop.xlane.xlu0 %3397 }
 0xdd2   :  { %5498 = vrcp.f32 %v3398_v59  ;;  %v5414_v59 = vld [vmem:[#allocation7 + $0x70] sm:$0xff]  }
 0xdd3   :  { %v3401_v62 = vpop.xlane.xlu1 %3400 }
 0xdd4   :  { %5500 = vrcp.f32 %v3401_v62 }
 0xddc   :  { %v5499_v61 = vpop.eup %5498 }
 0xddd   :  { %v3428_v5 = vmul.f32 %v5499_v61, %v5483_v24 }
 0xdde   :  { %v5501_v44 = vpop.eup %5500 }
 0xddf   :  { %v3429_v9 = vmul.f32 %v5501_v44, %v5485_v27  ;;  %v3436_v10 = vpack.c.bf16 %v3428_v5, %v3428_v5  ;;  %v4032_v44 = vsel %vm885_vm2, %v5414_v59, 0 }
 0xde1   :  { %5251 = vmatmul.mubr.msk.bf16.vlgmr.msra.gmra.mrb[100].mxu0 %vm885_vm2, %v3436_v10  ;;  %v3437_v12 = vpack.c.bf16 %v3429_v9, %v3429_v9  ;;  %v5415_v10 = vld [vmem:[#allocation7 + $0x78] sm:$0xff]  }
 0xde2   :  { %5261 = vmatpush3.bf16.msra.mxu0 %v3540_v60  ;;  %5262 = vmatprep.mubr.msk.bf16.mxu0 %vm5702_vm1, %v5701_v16  ;;  %v4035_v60 = vsel %vm885_vm2, %v5415_v10, 0 }
 0xde3   :  { %5257 = vmatmul.mubr.msk.bf16.vlgmr.msra.gmra.mrb[116].mxu1 %vm885_vm2, %v3437_v12  ;;  %5272 = vmatprep.subr.bf16.mxu0 %v5701_v16  ;;  %v5412_v12 = vld [vmem:[#allocation7 + $0x60] sm:$0xff]  }
 0xde4   :  { %5267 = vmatpush3.bf16.msra.mxu1 %v3586_v7  ;;  %5268 = vmatprep.mubr.msk.bf16.mxu1 %vm5702_vm1, %v5701_v16  ;;  %v3964_v20 = vsel %vm885_vm2, %v5412_v12, 0 }
 0xde5   :  { %5278 = vmatprep.subr.bf16.mxu1 %v5701_v16 }
 0xde9   :  { %v3404_v34 = vpop.xlane.xlu0 %3403 }
 0xdea   :  { %5502 = vrcp.f32 %v3404_v34 }
 0xdeb   :  { %v3407_v13 = vpop.xlane.xlu1 %3406 }
 0xdec   :  { %5504 = vrcp.f32 %v3407_v13 }
 0xdf4   :  { %v5503_v19 = vpop.eup %5502 }
 0xdf5   :  { %v3430_v21 = vmul.f32 %v5503_v19, %v6511_v30  ;;  %v2953_v30 = vadd.f32 %v4655_v33, %v6481_v14 }
 0xdf6   :  { %v5505_v24 = vpop.eup %5504 }
 0xdf7   :  { %v3431_v27 = vmul.f32 %v5505_v24, %v6515_v31  ;;  %v3438_v28 = vpack.c.bf16 %v3430_v21, %v3430_v21  ;;  %v2978_v31 = vpack.c.bf16 %v2950_v18, %v2950_v18  ;;  %v2979_v36 = vpack.c.bf16 %v2953_v30, %v2953_v30 }
 0xdf9   :  { %5263 = vmatmul.mubr.msk.bf16.vlgmr.msra.gmra.mrb[104].mxu0 %vm885_vm2, %v3438_v28  ;;  %v3410_v32 = vpop.xlane.xlu0 %3409  ;;  %v3439_v2 = vpack.c.bf16 %v3431_v27, %v3431_v27  ;;  %v3724_v3 = vsel %vm1353_vm3, %v2978_v31, 0  ;;  %v3770_v14 = vsel %vm1353_vm3, %v2979_v36, 0  ;;  %v3967_v27 = vsel %vm885_vm2, %v5413_v39, 0 }
 0xdfa   :  { %5273 = vmatpush3.bf16.msra.mxu0 %v3632_v29  ;;  %5506 = vrcp.f32 %v3410_v32  ;;  %5274 = vmatprep.mubr.msk.bf16.mxu0 %vm5702_vm1, %v5701_v16 }
 0xdfb   :  { %5269 = vmatmul.mubr.msk.bf16.vlgmr.msra.gmra.mrb[120].mxu1 %vm885_vm2, %v3439_v2  ;;  %v3413_v51 = vpop.xlane.xlu1 %3412  ;;  %5284 = vmatprep.subr.bf16.mxu0 %v5701_v16 }
 0xdfc   :  { %5279 = vmatpush3.bf16.msra.mxu1 %v3678_v41  ;;  %5508 = vrcp.f32 %v3413_v51  ;;  %5280 = vmatprep.mubr.msk.bf16.mxu1 %vm5702_vm1, %v5701_v16 }
 0xdfd   :  { %5290 = vmatprep.subr.bf16.mxu1 %v5701_v16 }
 0xe01   :  { %v3416_v25 = vpop.xlane.xlu0 %3415 }
 0xe02   :  { %5510 = vrcp.f32 %v3416_v25 }
 0xe03   :  { %v3419_v35 = vpop.xlane.xlu1 %3418 }
 0xe04   :  { %v5507_v23 = vpop.eup %5506  ;;  %5512 = vrcp.f32 %v3419_v35 }
 0xe05   :  { %v3432_v38 = vmul.f32 %v5507_v23, %v6519_v56 }
 0xe06   :  { %v5509_v40 = vpop.eup %5508 }
 0xe07   :  { %v3433_v42 = vmul.f32 %v5509_v40, %v6523_v52  ;;  %v3440_v6 = vpack.c.bf16 %v3432_v38, %v3432_v38  ;;  %v5409_v52 = vld [vmem:[#allocation7 + $0x48] sm:$0xff]  }
 0xe08   :  { %v3901_v53 = vsel %vm885_vm2, %v5409_v52, 0 }
 0xe09   :  { %5275 = vmatmul.mubr.msk.bf16.vlgmr.msra.gmra.mrb[108].mxu0 %vm885_vm2, %v3440_v6  ;;  %v3441_v11 = vpack.c.bf16 %v3433_v42, %v3433_v42 }
 0xe0a   :  { %5285 = vmatpush3.bf16.msra.mxu0 %v3724_v3  ;;  %5286 = vmatprep.mubr.msk.bf16.mxu0 %vm5702_vm1, %v5701_v16 }
 0xe0b   :  { %5281 = vmatmul.mubr.msk.bf16.vlgmr.msra.gmra.mrb[124].mxu1 %vm885_vm2, %v3441_v11  ;;  %5296 = vmatprep.subr.bf16.mxu0 %v5701_v16 }
 0xe0c   :  { %v5511_v47 = vpop.eup %5510  ;;  %5291 = vmatpush3.bf16.msra.mxu1 %v3770_v14  ;;  %5292 = vmatprep.mubr.msk.bf16.mxu1 %vm5702_vm1, %v5701_v16 }
 0xe0d   :  { %v3434_v48 = vmul.f32 %v5511_v47, %v6527_v55  ;;  %5304 = vmatprep.subr.bf16.mxu1 %v5701_v16  ;;  %v5410_v55 = vld [vmem:[#allocation7 + $0x50] sm:$0xff]  }
 0xe0e   :  { %v5513_v50 = vpop.eup %5512  ;;  %v3838_v57 = vsel %vm885_vm2, %v5410_v55, 0 }
 0xe0f   :  { %v3435_v22 = vmul.f32 %v5513_v50, %v6531_v54  ;;  %v3442_v49 = vpack.c.bf16 %v3434_v48, %v3434_v48  ;;  %v5411_v54 = vld [vmem:[#allocation7 + $0x58] sm:$0xff]  }
 0xe10   :  { %v3841_v58 = vsel %vm885_vm2, %v5411_v54, 0 }
 0xe11   :  { %5287 = vmatmul.mubr.msk.bf16.vlgmr.msra.gmra.mrb[112].mxu0 %vm885_vm2, %v3442_v49  ;;  %v3443_v56 = vpack.c.bf16 %v3435_v22, %v3435_v22 }
 0xe12   :  { %5300 = vmatprep.mubr.msk.bf16.mxu0 %vm5702_vm1, %v5701_v16 }
 0xe13   :  { %5293 = vmatmul.mubr.msk.bf16.vlgmr.msra.gmra.mrb[128].mxu1 %vm885_vm2, %v3443_v56  ;;  %5297 = vmatpush3.bf16.xpose.msra.mxu0 %v3838_v57 }
 0xe14   :  { %5308 = vmatprep.mubr.msk.bf16.mxu1 %vm5702_vm1, %v5701_v16  ;;  %5298 = vmatprep.subr.bf16.mxu0 %v5701_v16 }
 0xe15   :  { %5305 = vmatpush3.bf16.xpose.msra.mxu1 %v3898_v26 }
 0xe16   :  { %5306 = vmatprep.subr.bf16.mxu1 %v5701_v16 }
 0xe1b   :  { %5299 = vmatpush3.bf16.xpose.msra.mxu0 %v3841_v58 }
 0xe1c   :  { %5312 = vmatprep.subr.bf16.mxu0 %v5701_v16 }
 0xe1d   :  { %5307 = vmatpush3.bf16.xpose.msra.mxu1 %v3901_v53 }
 0xe1e   :  { %5320 = vmatprep.subr.bf16.mxu1 %v5701_v16 }
 0xeb4   :  { %v3484_v62 = vpop.f32.mrb[100].mxu0 }
 0xeb5   :  { %v5252_v63 = vpop.f32.mrb[101].mxu0 }
 0xeb6   :  { %v3487_v37 = vpop.f32.mrb[102].mxu0  ;;  %v3530_v0 = vpop.f32.mrb[116].mxu1  ;;  %v4685_v63 = vld [vmem:[#allocation9 + $0x1] ss:$0 sm:$0xff] }
 0xeb7   :  { %v3812_v61 = vpack.c.bf16 %v3530_v0, %v3484_v62  ;;  %v5253_v4 = vpop.f32.mrb[103].mxu0  ;;  %v5258_v5 = vpop.f32.mrb[117].mxu1 }
 0xeb8   :  { %v3533_v8 = vpop.f32.mrb[118].mxu1 }
 0xeb9   :  { %v5259_v9 = vpop.f32.mrb[119].mxu1  ;;  %5309 = vmatmul.mubr.msk.bf16.vlgmr.msra.gmra.mrb[132].mxu1 %vm885_vm2, %v3812_v61 }
 0xeba   :  { %5321 = vmatpush3.bf16.xpose.msra.mxu1 %v4032_v44  ;;  %5324 = vmatprep.mubr.msk.bf16.mxu1 %vm5702_vm1, %v5701_v16 }
 0xebb   :  { %5322 = vmatprep.subr.bf16.mxu1 %v5701_v16 }
 0xec2   :  { %5323 = vmatpush3.bf16.xpose.msra.mxu1 %v4035_v60 }
 0xec3   :  { %5348 = vmatprep.subr.bf16.mxu1 %v5701_v16 }
 0xecc   :  { %v3576_v7 = vpop.f32.mrb[104].mxu0 }
 0xecd   :  { %v5264_v34 = vpop.f32.mrb[105].mxu0 }
 0xece   :  { %v3579_v13 = vpop.f32.mrb[106].mxu0  ;;  %v3622_v1 = vpop.f32.mrb[120].mxu1 }
 0xecf   :  { %v3818_v15 = vpack.c.bf16 %v3622_v1, %v3576_v7  ;;  %v5265_v17 = vpop.f32.mrb[107].mxu0  ;;  %v5270_v19 = vpop.f32.mrb[121].mxu1  ;;  %v5418_v7 = vld [vmem:[%s6758_s13 + $0x50] sm:$0xff]   ;;  %v5419_v13 = vld [vmem:[%s6758_s13 + $0x58] sm:$0xff]  }
 0xed0   :  { %v3625_v21 = vpop.f32.mrb[122].mxu1  ;;  %v4214_v34 = vsel %vm171_vm0, %v5418_v7, 0  ;;  %v4217_v1 = vsel %vm171_vm0, %v5419_v13, 0 }
 0xed1   :  { %v5271_v24 = vpop.f32.mrb[123].mxu1  ;;  %5301 = vmatmul.mubr.msk.bf16.vlgmr.msra.gmra.mrb[116].mxu0 %vm885_vm2, %v3818_v15  ;;  %v5420_v15 = vld [vmem:[%s6758_s13 + $0x60] sm:$0xff]  }
 0xed2   :  { %5313 = vmatpush3.bf16.xpose.msra.mxu0 %v3964_v20  ;;  %5316 = vmatprep.mubr.msk.bf16.mxu0 %vm5702_vm1, %v5701_v16  ;;  %v4220_v17 = vsel %vm171_vm0, %v5420_v15, 0 }
 0xed3   :  { %5314 = vmatprep.subr.bf16.mxu0 %v5701_v16 }
 0xeda   :  { %5315 = vmatpush3.bf16.xpose.msra.mxu0 %v3967_v27 }
 0xedb   :  { %5328 = vmatprep.subr.bf16.mxu0 %v5701_v16 }
 0xedc   :  { %v3668_v28 = vpop.f32.mrb[108].mxu0 }
 0xedd   :  { %v5276_v29 = vpop.f32.mrb[109].mxu0 }
 0xede   :  { %v3671_v32 = vpop.f32.mrb[110].mxu0  ;;  %v3714_v2 = vpop.f32.mrb[124].mxu1 }
 0xedf   :  { %v3944_v41 = vpack.c.bf16 %v3714_v2, %v3668_v28  ;;  %v5277_v51 = vpop.f32.mrb[111].mxu0  ;;  %v5282_v33 = vpop.f32.mrb[125].mxu1 }
 0xee0   :  { %v3717_v18 = vpop.f32.mrb[126].mxu1  ;;  %v5422_v33 = vld [vmem:[%s6758_s13 + $0x70] sm:$0xff]  }
 0xee1   :  { %v5283_v25 = vpop.f32.mrb[127].mxu1  ;;  %5317 = vmatmul.mubr.msk.bf16.vlgmr.msra.gmra.mrb[120].mxu0 %vm885_vm2, %v3944_v41  ;;  %v5421_v41 = vld [vmem:[%s6758_s13 + $0x68] sm:$0xff]   ;;  %v4226_v18 = vsel %vm171_vm0, %v5422_v33, 0 }
 0xee2   :  { %5344 = vmatprep.mubr.msk.bf16.mxu0 %vm5702_vm1, %v5701_v16  ;;  %v4223_v51 = vsel %vm171_vm0, %v5421_v41, 0  ;;  %v5423_v25 = vld [vmem:[%s6758_s13 + $0x78] sm:$0xff]  }
 0xee4   :  { %v3760_v30 = vpop.f32.mrb[112].mxu0 }
 0xee5   :  { %v5288_v35 = vpop.f32.mrb[113].mxu0 }
 0xee6   :  { %v3763_v23 = vpop.f32.mrb[114].mxu0  ;;  %v3806_v31 = vpop.f32.mrb[128].mxu1 }
 0xee7   :  { %v4012_v38 = vpack.c.bf16 %v3806_v31, %v3760_v30  ;;  %v5289_v40 = vpop.f32.mrb[115].mxu0  ;;  %v5294_v36 = vpop.f32.mrb[129].mxu1  ;;  %v4229_v30 = vsel %vm171_vm0, %v5423_v25, 0 }
 0xee8   :  { %v3809_v42 = vpop.f32.mrb[130].mxu1 }
 0xee9   :  { %v5295_v6 = vpop.f32.mrb[131].mxu1  ;;  %5325 = vmatmul.mubr.msk.bf16.vlgmr.msra.gmra.mrb[136].mxu1 %vm885_vm2, %v4012_v38 }
 0xeea   :  { %5352 = vmatprep.mubr.msk.bf16.mxu1 %vm5702_vm1, %v5701_v16  ;;  %v4688_v6 = vld [vmem:[%s6756_s11 + $0x1] ss:$0 sm:$0xff] }
 0xf8c   :  { %v3937_v3 = vpop.f32.mrb[132].mxu1 }
 0xf8d   :  { %v5310_v11 = vpop.f32.mrb[133].mxu1 }
 0xf8e   :  { %v3940_v14 = vpop.f32.mrb[134].mxu1 }
 0xf8f   :  { %v5311_v47 = vpop.f32.mrb[135].mxu1 }
 0xfa4   :  { %v3877_v48 = vpop.f32.mrb[116].mxu0 }
 0xfa5   :  { %v3938_v50 = vadd.f32 %v3937_v3, %v3877_v48  ;;  %v5302_v45 = vpop.f32.mrb[117].mxu0  ;;  %v4689_v48 = vld [vmem:[%s6757_s12 + $0x1] ss:$0 sm:$0xff] }
 0xfa6   :  { %v3880_v22 = vpop.f32.mrb[118].mxu0 }
 0xfa7   :  { %v3941_v49 = vadd.f32 %v3940_v14, %v3880_v22  ;;  %v5303_v56 = vpop.f32.mrb[119].mxu0 }
 0xfa8   :  { %v5424_v56 = vld [vmem:[#allocation12 + $0x10] sm:$0xff]  }
 0xfa9   :  { %5349 = vmatpush3.bf16.xpose.msra.mxu1 %v5424_v56  ;;  %v5433_v56 = vld [vmem:[%s6764_s19 + $0x38] sm:$0xff]  }
 0xfaa   :  { %5350 = vmatprep.subr.bf16.mxu1 %v5701_v16 }
 0xfb4   :  { %v4003_v26 = vpop.f32.mrb[120].mxu0 }
 0xfb5   :  { %v4010_v52 = vadd.f32 %v4003_v26, %v3938_v50  ;;  %v5318_v53 = vpop.f32.mrb[121].mxu0  ;;  %v5425_v26 = vld [vmem:[#allocation12 + $0x18] sm:$0xff]  }
 0xfb6   :  { %v4006_v55 = vpop.f32.mrb[122].mxu0  ;;  %5351 = vmatpush3.bf16.xpose.msra.mxu1 %v5425_v26  ;;  %v4485_v26 = vsel %vm171_vm0, %v5433_v56, 0 }
 0xfb7   :  { %v4011_v57 = vadd.f32 %v4006_v55, %v3941_v49  ;;  %v5319_v54 = vpop.f32.mrb[123].mxu0  ;;  %5356 = vmatprep.subr.bf16.mxu1 %v5701_v16 }
 0xfbc   :  { %v4071_v58 = vpop.f32.mrb[136].mxu1 }
 0xfbd   :  { %v4078_v59 = vadd.f32 %v4071_v58, %v4010_v52  ;;  %v5326_v62 = vpop.f32.mrb[137].mxu1  ;;  %v4706_v52 = vld [vmem:[#allocation10 + $0x1] ss:$0 sm:$0xff] }
 0xfbe   :  { %v4074_v37 = vpop.f32.mrb[138].mxu1 }
 0xfbf   :  { %v4080_v0 = vadd.f32 %v4078_v59, %v6319_v43  ;;  %v4079_v61 = vadd.f32 %v4074_v37, %v4011_v57  ;;  %v5327_v4 = vpop.f32.mrb[139].mxu1  ;;  %v5416_v43 = vld [vmem:[%s6758_s13 + $0x40] sm:$0xff]  }
 0xfc0   :  { %v4208_v60 = vsel %vm171_vm0, %v5416_v43, 0 }
 0xfc1   :  { %v6621_v5 = vadd.f32 %v4685_v63, %v4080_v0  ;;  %v4081_v44 = vadd.f32 %v4079_v61, %v6322_v46  ;;  %5329 = vmatpush3.bf16.xpose.msra.mxu0 %v4208_v60  ;;  %v5417_v46 = vld [vmem:[%s6758_s13 + $0x48] sm:$0xff]  }
 0xfc2   :  { %5330 = vmatprep.subr.bf16.mxu0 %v5701_v16  ;;  %v4211_v12 = vsel %vm171_vm0, %v5417_v46, 0 }
 0xfc3   :  { %v6624_v8 = vadd.f32 %v4685_v63, %v4081_v44  ;;  %v4096_v9 = vsel %vm171_vm0, %v6621_v5, 0.0 }
 0xfc4   :  { %4097 = vadd.xlane.f32.xlu0 %v4096_v9 }
 0xfc5   :  { %v4099_v10 = vsel %vm171_vm0, %v6624_v8, 0.0 }
 0xfc6   :  { %4100 = vadd.xlane.f32.xlu1 %v4099_v10 }
 0xfc9   :  { %5331 = vmatpush3.bf16.xpose.msra.mxu0 %v4211_v12 }
 0xfca   :  { %5332 = vmatprep.subr.bf16.mxu0 %v5701_v16 }
 0xfd1   :  { %5333 = vmatpush3.bf16.xpose.msra.mxu0 %v4214_v34 }
 0xfd2   :  { %5334 = vmatprep.subr.bf16.mxu0 %v5701_v16 }
 0xfd9   :  { %5335 = vmatpush3.bf16.xpose.msra.mxu0 %v4217_v1 }
 0xfda   :  { %5336 = vmatprep.subr.bf16.mxu0 %v5701_v16 }
 0xfe1   :  { %5337 = vmatpush3.bf16.xpose.msra.mxu0 %v4220_v17 }
 0xfe2   :  { %5338 = vmatprep.subr.bf16.mxu0 %v5701_v16 }
 0xfe9   :  { %5339 = vmatpush3.bf16.xpose.msra.mxu0 %v4223_v51  ;;  %v5426_v51 = vld [vmem:[%s6764_s19] sm:$0xff]  }
 0xfea   :  { %5340 = vmatprep.subr.bf16.mxu0 %v5701_v16  ;;  %v4464_v33 = vsel %vm171_vm0, %v5426_v51, 0 }
 0xff1   :  { %5341 = vmatpush3.bf16.xpose.msra.mxu0 %v4226_v18 }
 0xff2   :  { %5342 = vmatprep.subr.bf16.mxu0 %v5701_v16 }
 0xff9   :  { %5343 = vmatpush3.bf16.xpose.msra.mxu0 %v4229_v30  ;;  %v5429_v30 = vld [vmem:[%s6764_s19 + $0x18] sm:$0xff]  }
0x1051   :  { %v4098_v19 = vpop.xlane.xlu0 %4097 }
0x1052   :  { %v4102_v20 = vmul.f32 0.03125, %v4098_v19  ;;  %v4717_v19 = vld [vmem:[%s6761_s16 + $0x1] ss:$0 sm:$0xff] }
0x1053   :  { %v4101_v21 = vpop.xlane.xlu1 %4100 }
0x1054   :  { %v4104_v24 = vsub.f32 %v6621_v5, %v4102_v20  ;;  %v4103_v39 = vmul.f32 0.03125, %v4101_v21 }
0x1056   :  { %v4105_v27 = vsub.f32 %v6624_v8, %v4103_v39  ;;  %v4106_v28 = vmul.f32 %v4104_v24, %v4104_v24 }
0x1058   :  { %v4108_v29 = vsel %vm171_vm0, %v4106_v28, 0.0  ;;  %v4107_v32 = vmul.f32 %v4105_v27, %v4105_v27 }
0x1059   :  { %4109 = vadd.xlane.f32.xlu0 %v4108_v29 }
0x105a   :  { %v4111_v2 = vsel %vm171_vm0, %v4107_v32, 0.0 }
0x105b   :  { %4112 = vadd.xlane.f32.xlu1 %v4111_v2 }
0x10e6   :  { %v4110_v35 = vpop.xlane.xlu0 %4109 }
0x10e7   :  { %v4114_v23 = vmul.f32 0.03125, %v4110_v35  ;;  %v4473_v35 = vsel %vm171_vm0, %v5429_v30, 0 }
0x10e8   :  { %v4113_v31 = vpop.xlane.xlu1 %4112 }
0x10e9   :  { %v4116_v38 = vadd.f32 1e-05, %v4114_v23  ;;  %v4115_v40 = vmul.f32 0.03125, %v4113_v31  ;;  %v5430_v23 = vld [vmem:[%s6764_s19 + $0x20] sm:$0xff]  }
0x10ea   :  { %v4476_v31 = vsel %vm171_vm0, %v5430_v23, 0 }
0x10eb   :  { %5514 = vrsqrt.f32 %v4116_v38  ;;  %v4117_v36 = vadd.f32 1e-05, %v4115_v40 }
0x10ed   :  { %5516 = vrsqrt.f32 %v4117_v36 }
0x10f5   :  { %v5515_v42 = vpop.eup %5514 }
0x10f6   :  { %v4120_v3 = vmul.f32 %v5515_v42, %v4104_v24 }
0x10f7   :  { %v5517_v11 = vpop.eup %5516 }
0x10f8   :  { %v4128_v14 = vmul.f32 %v4688_v6, %v4120_v3  ;;  %v4121_v47 = vmul.f32 %v5517_v11, %v4105_v27 }
0x10fa   :  { %v4129_v50 = vmul.f32 %v4688_v6, %v4121_v47  ;;  %v4136_v45 = vadd.f32 %v4689_v48, %v4128_v14 }
0x10fc   :  { %v4137_v22 = vadd.f32 %v4689_v48, %v4129_v50  ;;  %v5431_v50 = vld [vmem:[%s6764_s19 + $0x28] sm:$0xff]  }
0x10fe   :  { %v4138_v49 = vpack.c.bf16 %v4137_v22, %v4136_v45  ;;  %v4479_v45 = vsel %vm171_vm0, %v5431_v50, 0  ;;  %v5432_v22 = vld [vmem:[%s6764_s19 + $0x30] sm:$0xff]  }
0x1100   :  { %5345 = vmatmul.mubr.msk.bf16.vlgmr.msra.gmra.mrb[124].mxu0 %vm171_vm0, %v4138_v49  ;;  %v4482_v49 = vsel %vm171_vm0, %v5432_v22, 0 }
0x11d3   :  { %v4265_v53 = vpop.f32.mrb[124].mxu0 }
0x11d4   :  { %v4266_v55 = vadd.f32 %v4706_v52, %v4265_v53  ;;  %v5346_v57 = vpop.f32.mrb[125].mxu0 }
0x11d5   :  { %v4268_v54 = vpop.f32.mrb[126].mxu0 }
0x11d6   :  { %v4274_v58 = vmul.f32 0.044715, %v4266_v55  ;;  %v4269_v59 = vadd.f32 %v4706_v52, %v4268_v54  ;;  %v5347_v62 = vpop.f32.mrb[127].mxu0  ;;  %v4272_v7 = vmul.f32 0.5, %v4266_v55 }
0x11d8   :  { %v4276_v63 = vmul.f32 %v4274_v58, %v4266_v55  ;;  %v4275_v37 = vmul.f32 0.044715, %v4269_v59  ;;  %v4273_v34 = vmul.f32 0.5, %v4269_v59 }
0x11da   :  { %v4278_v0 = vmul.f32 %v4276_v63, %v4266_v55  ;;  %v4277_v61 = vmul.f32 %v4275_v37, %v4269_v59 }
0x11dc   :  { %v4280_v4 = vadd.f32 %v4278_v0, %v4266_v55  ;;  %v4279_v44 = vmul.f32 %v4277_v61, %v4269_v59  ;;  %v4721_v61 = vld [vmem:[%s6763_s18] ss:$0 sm:$0xff] }
0x11de   :  { %v4282_v9 = vmul.f32 0.7978846, %v4280_v4  ;;  %v4281_v10 = vadd.f32 %v4279_v44, %v4269_v59 }
0x11e0   :  { %5518 = vtanh.f32 %v4282_v9  ;;  %v4283_v43 = vmul.f32 0.7978846, %v4281_v10 }
0x11e2   :  { %5520 = vtanh.f32 %v4283_v43 }
0x11ea   :  { %v5519_v60 = vpop.eup %5518 }
0x11eb   :  { %v4286_v46 = vadd.f32 1.0, %v5519_v60 }
0x11ec   :  { %v5521_v12 = vpop.eup %5520 }
0x11ed   :  { %v4287_v13 = vadd.f32 1.0, %v5521_v12  ;;  %v4288_v1 = vmul.f32 %v4286_v46, %v4272_v7 }
0x11ef   :  { %v4289_v15 = vmul.f32 %v4287_v13, %v4273_v34 }
0x11f1   :  { %v4290_v17 = vpack.c.bf16 %v4289_v15, %v4288_v1 }
0x11f3   :  { %5353 = vmatmul.mubr.bf16.vlgmr.msra.gmra.mrb[140].mxu1 %v4290_v17 }
0x11f4   :  { %5372 = vmatprep.mubr.msk.bf16.mxu1 %vm5702_vm1, %v5701_v16  ;;  %5357 = vmatpush3.bf16.xpose.msra.mxu1 %v4464_v33 }
0x11f5   :  { %5358 = vmatprep.subr.bf16.mxu1 %v5701_v16 }
0x12c6   :  { %v4350_v20 = vpop.f32.mrb[140].mxu1 }
0x12c7   :  { %v4351_v21 = vadd.f32 %v4717_v19, %v4350_v20  ;;  %v5354_v24 = vpop.f32.mrb[141].mxu1 }
0x12c8   :  { %v4353_v39 = vpop.f32.mrb[142].mxu1 }
0x12c9   :  { %v4354_v27 = vadd.f32 %v4717_v19, %v4353_v39  ;;  %v5355_v28 = vpop.f32.mrb[143].mxu1  ;;  %v4357_v29 = vadd.f32 %v4351_v21, %v6621_v5  ;;  %v5427_v5 = vld [vmem:[%s6764_s19 + $0x8] sm:$0xff]  }
0x12ca   :  { %v4467_v18 = vsel %vm171_vm0, %v5427_v5, 0 }
0x12cb   :  { %v4361_v32 = vsel %vm171_vm0, %v4357_v29, 0.0  ;;  %v4358_v2 = vadd.f32 %v4354_v27, %v6624_v8  ;;  %5359 = vmatpush3.bf16.xpose.msra.mxu1 %v4467_v18  ;;  %v5428_v8 = vld [vmem:[%s6764_s19 + $0x10] sm:$0xff]  }
0x12cc   :  { %4362 = vadd.xlane.f32.xlu0 %v4361_v32  ;;  %5360 = vmatprep.subr.bf16.mxu1 %v5701_v16  ;;  %v4470_v25 = vsel %vm171_vm0, %v5428_v8, 0 }
0x12cd   :  { %v4364_v41 = vsel %vm171_vm0, %v4358_v2, 0.0 }
0x12ce   :  { %4365 = vadd.xlane.f32.xlu1 %v4364_v41 }
0x12d3   :  { %5361 = vmatpush3.bf16.xpose.msra.mxu1 %v4470_v25 }
0x12d4   :  { %5362 = vmatprep.subr.bf16.mxu1 %v5701_v16 }
0x12db   :  { %5363 = vmatpush3.bf16.xpose.msra.mxu1 %v4473_v35 }
0x12dc   :  { %5364 = vmatprep.subr.bf16.mxu1 %v5701_v16 }
0x12e3   :  { %5365 = vmatpush3.bf16.xpose.msra.mxu1 %v4476_v31 }
0x12e4   :  { %5366 = vmatprep.subr.bf16.mxu1 %v5701_v16 }
0x12eb   :  { %5367 = vmatpush3.bf16.xpose.msra.mxu1 %v4479_v45 }
0x12ec   :  { %5368 = vmatprep.subr.bf16.mxu1 %v5701_v16 }
0x12f3   :  { %5369 = vmatpush3.bf16.xpose.msra.mxu1 %v4482_v49 }
0x12f4   :  { %5370 = vmatprep.subr.bf16.mxu1 %v5701_v16  ;;  %v4720_v16 = vld [vmem:[%s6762_s17] ss:$0 sm:$0xff] }
0x12fb   :  { %5371 = vmatpush3.bf16.xpose.msra.mxu1 %v4485_v26 }
0x1359   :  { %v4363_v38 = vpop.xlane.xlu0 %4362 }
0x135a   :  { %v4367_v40 = vmul.f32 0.03125, %v4363_v38 }
0x135b   :  { %v4366_v36 = vpop.xlane.xlu1 %4365 }
0x135c   :  { %v4369_v42 = vsub.f32 %v4357_v29, %v4367_v40  ;;  %v4368_v6 = vmul.f32 0.03125, %v4366_v36 }
0x135e   :  { %v4370_v3 = vsub.f32 %v4358_v2, %v4368_v6  ;;  %v4371_v11 = vmul.f32 %v4369_v42, %v4369_v42 }
0x1360   :  { %v4373_v14 = vsel %vm171_vm0, %v4371_v11, 0.0  ;;  %v4372_v47 = vmul.f32 %v4370_v3, %v4370_v3 }
0x1361   :  { %4374 = vadd.xlane.f32.xlu0 %v4373_v14 }
0x1362   :  { %v4376_v48 = vsel %vm171_vm0, %v4372_v47, 0.0 }
0x1363   :  { %4377 = vadd.xlane.f32.xlu1 %v4376_v48 }
0x13ee   :  { %v4375_v52 = vpop.xlane.xlu0 %4374 }
0x13ef   :  { %v4379_v53 = vmul.f32 0.03125, %v4375_v52 }
0x13f0   :  { %v4378_v55 = vpop.xlane.xlu1 %4377 }
0x13f1   :  { %v4381_v57 = vadd.f32 1e-05, %v4379_v53  ;;  %v4380_v54 = vmul.f32 0.03125, %v4378_v55 }
0x13f3   :  { %5522 = vrsqrt.f32 %v4381_v57  ;;  %v4382_v58 = vadd.f32 1e-05, %v4380_v54 }
0x13f5   :  { %5524 = vrsqrt.f32 %v4382_v58 }
0x13fd   :  { %v5523_v59 = vpop.eup %5522 }
0x13fe   :  { %v4385_v62 = vmul.f32 %v5523_v59, %v4369_v42 }
0x13ff   :  { %v5525_v63 = vpop.eup %5524 }
0x1400   :  { %v4393_v37 = vmul.f32 %v4720_v16, %v4385_v62  ;;  %v4386_v0 = vmul.f32 %v5525_v63, %v4370_v3 }
0x1402   :  { %v4394_v4 = vmul.f32 %v4720_v16, %v4386_v0  ;;  %v4401_v44 = vadd.f32 %v4721_v61, %v4393_v37 }
0x1404   :  { %v4402_v9 = vadd.f32 %v4721_v61, %v4394_v4 }
0x1406   :  { %v4403_v10 = vpack.c.bf16 %v4402_v9, %v4401_v44 }
0x1408   :  { %5373 = vmatmul.mubr.msk.bf16.vlgmr.msra.gmra.mrb[144].mxu1 %vm171_vm0, %v4403_v10 }
0x14db   :  { %v4521_v43 = vpop.f32.mrb[144].mxu1 }
0x14dc   :  { %4528 = vst [vmem:[%s6765_s20] sm:$0xff] %v4521_v43  ;;  %v5374_v60 = vpop.f32.mrb[145].mxu1 }
0x14dd   :  { %v4524_v46 = vpop.f32.mrb[146].mxu1 }
0x14de   :  { %4529 = vst [vmem:[%s6765_s20 + $0x8] sm:$0xff] %v4524_v46  ;;  %v5375_v12 = vpop.f32.mrb[147].mxu1 }
0x14df   :  { %4534 = vsyncpa [#allocation3], 1 }
0x14e0   :  { %4535 = vsyncpa [#allocation5], 1 }
0x14e1   :  { %4536 = vsyncpa [#allocation8], 1 }
0x14e2   :  { %4537 = vsyncpa [#allocation11], 1 }

</bundles_post_ra>
